<compile_context>
chip_gen: v7x
topology: tpu7x:2x2x1
jax: 0.10.0
libtpu: 0.0.40
codegen_flags: <defaults>
</compile_context>

<pallas_src>
import math

import jax
import jax.numpy as jnp
from jax import lax
from jax.experimental import pallas as pl
from jax.experimental.pallas import tpu as pltpu


def _round_up(x, m):
    return ((x + m - 1) // m) * m


def _pick_q_tile(lq):
    """Q-tile length; Lq is padded in the wrapper to a multiple of it."""
    if lq < 128:
        return max(_round_up(lq, 8), 8)
    # Choose the candidate minimizing padding (prefer the larger on ties).
    return min((256, 128), key=lambda c: (_round_up(lq, c), -c))


def _pick_kv_tile(lk):
    """K/V chunk length; must divide Lk exactly."""
    for c in (512, 256, 128, 64, 32, 16, 8):
        if lk % c == 0:
            return c
    # TODO(synk): pad + mask keys instead of one full-length tile for ragged Lk.
    return lk


def _make_mha_kernel(n_head, d_head, tq, tk, l_kv, approx_recip):
    scale = 1.0 / math.sqrt(d_head)
    n_kv = l_kv // tk
    f32 = jnp.float32

    def kernel(q_ref, k_ref, v_ref,
               wq_ref, bq_ref, wk_ref, bk_ref, wv_ref, bv_ref,
               wo_ref, bo_ref,
               o_ref,
               k_scr, v_scr, m_scr, l_scr, acc_scr):
        cdtype = q_ref.dtype   # compute dtype == input dtype (bf16 for MXU)

        # ---- K/V projections: once per batch element (first q tile), in TK
        # chunks written straight into head-major scratch (no (Lk, D) f32
        # temporary). ---------------------------------------------------------
        @pl.when(pl.program_id(1) == 0)
        def _project_kv():
            def proj_body(t, carry):
                start = pl.multiple_of(t * tk, tk)
                kc = (jnp.dot(k_ref[pl.ds(start, tk), :], wk_ref[...],
                              preferred_element_type=f32)
                      + bk_ref[...]).astype(cdtype)             # (TK, D)
                vc = (jnp.dot(v_ref[pl.ds(start, tk), :], wv_ref[...],
                              preferred_element_type=f32)
                      + bv_ref[...]).astype(cdtype)
                for h in range(n_head):
                    sl = slice(h * d_head, (h + 1) * d_head)
                    k_scr[h, pl.ds(start, tk), :] = kc[:, sl]
                    v_scr[h, pl.ds(start, tk), :] = vc[:, sl]
                return carry
            lax.fori_loop(0, n_kv, proj_body, 0, unroll=(n_kv <= 4))

        # ---- Q projection for this tile (pre-scaled); stays in registers. ---
        qp = (jnp.dot(q_ref[...], wq_ref[...], preferred_element_type=f32)
              + bq_ref[...]) * scale                            # (TQ, D) f32
        qp = qp.astype(cdtype)
        qh = jnp.stack([qp[:, h * d_head:(h + 1) * d_head]
                        for h in range(n_head)], axis=0)        # (H, TQ, dh)

        # ---- Flash attention over K/V tiles (online softmax); stats and the
        # PV accumulator live in VMEM scratch, updated in place. --------------
        m_scr[...] = jnp.full(m_scr.shape, -jnp.inf, dtype=m_scr.dtype)
        l_scr[...] = jnp.zeros(l_scr.shape, dtype=l_scr.dtype)
        acc_scr[...] = jnp.zeros(acc_scr.shape, dtype=acc_scr.dtype)

        def kv_body(t, carry):
            start = pl.multiple_of(t * tk, tk)
            kt = k_scr[:, pl.ds(start, tk), :]                  # (H, TK, dh)
            vt = v_scr[:, pl.ds(start, tk), :]
            s = jnp.einsum("hqd,hkd->hqk", qh, kt,
                           preferred_element_type=f32)          # (H, TQ, TK)
            m_prev = m_scr[...]
            m_new = jnp.maximum(m_prev, s.max(axis=-1, keepdims=True))
            alpha = jnp.exp(m_prev - m_new)
            p = jnp.exp(s - m_new)                              # f32 exp (EUP)
            l_scr[...] = alpha * l_scr[...] + p.sum(axis=-1, keepdims=True)
            acc_scr[...] = alpha * acc_scr[...] + jnp.einsum(
                "hqk,hkd->hqd", p.astype(cdtype), vt,
                preferred_element_type=f32)
            m_scr[...] = m_new
            return carry
        lax.fori_loop(0, n_kv, kv_body, 0, unroll=(n_kv <= 8))

        # ---- Normalize, merge heads (single lane concat), output projection.
        if approx_recip:
            inv_l = pl.reciprocal(l_scr[...], approx=True)      # EUP slot
        else:
            inv_l = 1.0 / l_scr[...]                            # exact (f32 parity)
        ctx = jnp.concatenate(
            [(acc_scr[h] * inv_l[h]).astype(cdtype) for h in range(n_head)],
            axis=-1)                                            # (TQ, D)
        out = (jnp.dot(ctx, wo_ref[...], preferred_element_type=f32)
               + bo_ref[...])
        o_ref[...] = out.astype(o_ref.dtype)

    return kernel


def multi_head_attention(q, k, v, params, n_head):
    """q: (B, Lq, D); k, v: (B, Lk, D). Returns (B, Lq, D) in q.dtype."""
    B, Lq, D = q.shape
    _, Lk, _ = k.shape
    assert k.shape == v.shape and k.shape[0] == B and k.shape[2] == D
    assert D % n_head == 0
    d_head = D // n_head

    cdtype = q.dtype           # matmuls run in the input dtype (bf16 for speed)
    out_dtype = q.dtype
    approx_recip = (cdtype == jnp.bfloat16)

    tq = _pick_q_tile(Lq)
    tk = _pick_kv_tile(Lk)
    lq_pad = _round_up(Lq, tq)
    n_q = lq_pad // tq

    q_in = q.astype(cdtype)
    if lq_pad != Lq:
        # Padded query rows attend to real keys; their outputs are dropped.
        q_in = jnp.pad(q_in, ((0, 0), (0, lq_pad - Lq), (0, 0)))
    k_in = k.astype(cdtype)
    v_in = v.astype(cdtype)

    wq = params["w_q"].astype(cdtype)
    wk = params["w_k"].astype(cdtype)
    wv = params["w_v"].astype(cdtype)
    wo = params["w_o"].astype(cdtype)
    # Biases stay f32: added to the f32 matmul accumulators; shape (1, D).
    bq, bk, bv, bo = (params[name].astype(jnp.float32).reshape(1, D)
                      for name in ("b_q", "b_k", "b_v", "b_o"))

    kernel = _make_mha_kernel(n_head, d_head, tq, tk, Lk, approx_recip)

    csize = jnp.dtype(cdtype).itemsize
    # Resident-VMEM estimate (single-buffered constants) -> explicit limit,
    # capped at 64 MiB so the setting is also valid on v7x.
    vmem_est = (2 * 2 * tq * D * csize            # q in / out tiles (x2 buffers)
                + 2 * Lk * D * csize              # raw K, V blocks
                + 4 * D * D * csize               # weights
                + 8 * D * 4                       # biases
                + 2 * Lk * D * csize              # projected K/V scratch
                + tq * D * 4                      # f32 PV accumulator
                + 2 * n_head * tq * 4             # m / l stats
                + 4 * tq * D * 4)                 # in-flight f32 temporaries
    vmem_limit = int(min(max(2 * vmem_est, 32 * 1024 * 1024),
                         64 * 1024 * 1024))

    cost = pl.CostEstimate(
        flops=int(4 * B * D * D * (lq_pad + Lk) + 4 * B * lq_pad * Lk * D),
        transcendentals=int(B * n_head * lq_pad * Lk),
        bytes_accessed=int((q_in.size + k_in.size + v_in.size) * csize
                           + 4 * D * D * csize + 4 * D * 4
                           + B * lq_pad * D * jnp.dtype(out_dtype).itemsize),
    )

    def run(single_buffer_constants):
        const_kw = ({"pipeline_mode": pl.Buffered(1)}
                    if single_buffer_constants else {})
        q_spec = pl.BlockSpec((None, tq, D), lambda b, i: (b, i, 0))
        kv_spec = pl.BlockSpec((None, Lk, D), lambda b, i: (b, 0, 0), **const_kw)
        w_spec = pl.BlockSpec((D, D), lambda b, i: (0, 0), **const_kw)
        b_spec = pl.BlockSpec((1, D), lambda b, i: (0, 0), **const_kw)
        o_spec = pl.BlockSpec((None, tq, D), lambda b, i: (b, i, 0))

        return pl.pallas_call(
            kernel,
            out_shape=jax.ShapeDtypeStruct((B, lq_pad, D), out_dtype),
            grid=(B, n_q),
            in_specs=[q_spec, kv_spec, kv_spec,
                      w_spec, b_spec, w_spec, b_spec, w_spec, b_spec,
                      w_spec, b_spec],
            out_specs=o_spec,
            scratch_shapes=[
                pltpu.VMEM((n_head, Lk, d_head), cdtype),       # projected K
                pltpu.VMEM((n_head, Lk, d_head), cdtype),       # projected V
                pltpu.VMEM((n_head, tq, 1), jnp.float32),       # running max
                pltpu.VMEM((n_head, tq, 1), jnp.float32),       # running denom
                pltpu.VMEM((n_head, tq, d_head), jnp.float32),  # PV accumulator
            ],
            compiler_params=pltpu.CompilerParams(
                dimension_semantics=("parallel", "arbitrary"),
                vmem_limit_bytes=vmem_limit),
            cost_estimate=cost,
        )(q_in, k_in, v_in, wq, bq, wk, bk, wv, bv, wo, bo)

    try:
        out = run(True)
    except Exception:
        # pipeline_mode=pl.Buffered(1) not supported on this jax version:
        # fall back to default double-buffering (correctness unaffected).
        out = run(False)

    if lq_pad != Lq:
        out = out[:, :Lq, :]
    return out


def _reference_mha(q, k, v, params, n_head):
    """Pure-JAX (f32) reference mirroring the PyTorch forward (mask=None)."""
    B, Lq, D = q.shape
    dh = D // n_head
    f32 = jnp.float32

    def lin(x, w, b):
        return x.astype(f32) @ w.astype(f32) + b.astype(f32)

    qp = lin(q, params["w_q"], params["b_q"])
    kp = lin(k, params["w_k"], params["b_k"])
    vp = lin(v, params["w_v"], params["b_v"])

    def split(t):  # (B, L, D) -> (B, H, L, dh)
        return t.reshape(t.shape[0], t.shape[1], n_head, dh).transpose(0, 2, 1, 3)

    qh, kh, vh = split(qp), split(kp), split(vp)
    score = jnp.einsum("bhld,bhmd->bhlm", qh, kh) / math.sqrt(dh)
    attn = jax.nn.softmax(score, axis=-1)
    ctx = jnp.einsum("bhlm,bhmd->bhld", attn, vh)
    ctx = ctx.transpose(0, 2, 1, 3).reshape(B, Lq, D)
    return ctx @ params["w_o"].astype(f32) + params["b_o"].astype(f32)


if __name__ == "__main__":
    B, L, D, H = 2, 8, 32, 4

    key = jax.random.PRNGKey(0)
    ks = jax.random.split(key, 11)

    def winit(kk):
        return jax.random.normal(kk, (D, D), jnp.float32) / math.sqrt(D)

    def binit(kk):
        return jax.random.normal(kk, (D,), jnp.float32) * 0.02

    params = {
        "w_q": winit(ks[0]), "b_q": binit(ks[1]),
        "w_k": winit(ks[2]), "b_k": binit(ks[3]),
        "w_v": winit(ks[4]), "b_v": binit(ks[5]),
        "w_o": winit(ks[6]), "b_o": binit(ks[7]),
    }

    q = jax.random.normal(ks[8], (B, L, D), jnp.float32)
    k = jax.random.normal(ks[9], (B, L, D), jnp.float32)
    v = jax.random.normal(ks[10], (B, L, D), jnp.float32)

    # --- f32 path (exact reciprocal) --------------------------------------
    out_f32 = jax.block_until_ready(multi_head_attention(q, k, v, params, H))
    ref_f32 = _reference_mha(q, k, v, params, H)
    assert out_f32.shape == (B, L, D)
    assert jnp.allclose(out_f32, ref_f32, atol=5e-2, rtol=5e-2), "f32 mismatch"

    # --- bf16 path (MXU-native matmuls, f32 accumulation, approx recip) ----
    q16, k16, v16 = (t.astype(jnp.bfloat16) for t in (q, k, v))
    p16 = {n: (w.astype(jnp.bfloat16) if n.startswith("w_") else w)
           for n, w in params.items()}
    out_bf16 = jax.block_until_ready(multi_head_attention(q16, k16, v16, p16, H))
    ref_bf16 = _reference_mha(q16, k16, v16, p16, H)
    assert out_bf16.dtype == jnp.bfloat16
    err = float(jnp.max(jnp.abs(out_bf16.astype(jnp.float32) - ref_bf16)))
    assert err < 0.25, f"bf16 mismatch, max abs err {err}"

    print("KERNEL_OK")
</pallas_src>

<mosaic_0001>
module attributes {stable_mosaic.version = 11 : i64} {
  func.func @kernel(%arg0: i32, %arg1: i32, %arg2: memref<1x8x32xf32, #tpu.memory_space<vmem>>, %arg3: memref<1x8x32xf32, #tpu.memory_space<vmem>>, %arg4: memref<1x8x32xf32, #tpu.memory_space<vmem>>, %arg5: memref<32x32xf32, #tpu.memory_space<vmem>>, %arg6: memref<1x32xf32, #tpu.memory_space<vmem>>, %arg7: memref<32x32xf32, #tpu.memory_space<vmem>>, %arg8: memref<1x32xf32, #tpu.memory_space<vmem>>, %arg9: memref<32x32xf32, #tpu.memory_space<vmem>>, %arg10: memref<1x32xf32, #tpu.memory_space<vmem>>, %arg11: memref<32x32xf32, #tpu.memory_space<vmem>>, %arg12: memref<1x32xf32, #tpu.memory_space<vmem>>, %arg13: memref<1x8x32xf32, #tpu.memory_space<vmem>>, %arg14: memref<4x8x8xf32, #tpu.memory_space<vmem>>, %arg15: memref<4x8x8xf32, #tpu.memory_space<vmem>>, %arg16: memref<4x8x1xf32, #tpu.memory_space<vmem>>, %arg17: memref<4x8x1xf32, #tpu.memory_space<vmem>>, %arg18: memref<4x8x8xf32, #tpu.memory_space<vmem>>) attributes {dimension_semantics = [#tpu.dimension_semantics<parallel>, #tpu.dimension_semantics<arbitrary>], iteration_bounds = array<i64: 2, 1>, scalar_prefetch = 0 : i64, scratch_operands = 5 : i64, tpu.core_type = #tpu.core_type<tc>, window_params = [{transform_indices = @transform_0, window_bounds = array<i64: 1, 8, 32>}, {pipeline_mode = #tpu.pipeline_mode<synchronous>, transform_indices = @transform_1, window_bounds = array<i64: 1, 8, 32>}, {pipeline_mode = #tpu.pipeline_mode<synchronous>, transform_indices = @transform_2, window_bounds = array<i64: 1, 8, 32>}, {pipeline_mode = #tpu.pipeline_mode<synchronous>, transform_indices = @transform_3, window_bounds = array<i64: 32, 32>}, {pipeline_mode = #tpu.pipeline_mode<synchronous>, transform_indices = @transform_4, window_bounds = array<i64: 1, 32>}, {pipeline_mode = #tpu.pipeline_mode<synchronous>, transform_indices = @transform_5, window_bounds = array<i64: 32, 32>}, {pipeline_mode = #tpu.pipeline_mode<synchronous>, transform_indices = @transform_6, window_bounds = array<i64: 1, 32>}, {pipeline_mode = #tpu.pipeline_mode<synchronous>, transform_indices = @transform_7, window_bounds = array<i64: 32, 32>}, {pipeline_mode = #tpu.pipeline_mode<synchronous>, transform_indices = @transform_8, window_bounds = array<i64: 1, 32>}, {pipeline_mode = #tpu.pipeline_mode<synchronous>, transform_indices = @transform_9, window_bounds = array<i64: 32, 32>}, {pipeline_mode = #tpu.pipeline_mode<synchronous>, transform_indices = @transform_10, window_bounds = array<i64: 1, 32>}, {transform_indices = @transform_11, window_bounds = array<i64: 1, 8, 32>}]} {
    %c0_i32 = arith.constant 0 : i32
    %0 = arith.cmpi eq, %arg1, %c0_i32 : i32
    %1 = arith.extui %0 : i1 to i32
    %c0_i32_0 = arith.constant 0 : i32
    %2 = arith.cmpi ne, %1, %c0_i32_0 : i32
    scf.if %2 {
      %c0_i32_68 = arith.constant 0 : i32
      %c8_i32_69 = arith.constant 8 : i32
      %92 = arith.muli %c0_i32_68, %c8_i32_69 : i32
      %93 = tpu.assume_multiple %92, 8 : i32
      %c0_70 = arith.constant 0 : index
      %94 = arith.index_cast %93 : i32 to index
      %c0_71 = arith.constant 0 : index
      %95 = vector.load %arg3[%c0_70, %94, %c0_71] : memref<1x8x32xf32, #tpu.memory_space<vmem>>, vector<1x8x32xf32>
      %96 = vector.shape_cast %95 : vector<1x8x32xf32> to vector<8x32xf32>
      %c0_72 = arith.constant 0 : index
      %c0_73 = arith.constant 0 : index
      %97 = vector.load %arg7[%c0_72, %c0_73] : memref<32x32xf32, #tpu.memory_space<vmem>>, vector<32x32xf32>
      %cst_74 = arith.constant dense<0.000000e+00> : vector<8x32xf32>
      %98 = tpu.matmul %96, %97, %cst_74 {dimension_numbers = #tpu.dot_dimension_numbers<[1], [0], [0], [1], [0, 0, 1, 1], [], []>} : vector<8x32xf32>, vector<32x32xf32>, vector<8x32xf32> -> vector<8x32xf32>
      %c0_75 = arith.constant 0 : index
      %c0_76 = arith.constant 0 : index
      %99 = vector.load %arg8[%c0_75, %c0_76] : memref<1x32xf32, #tpu.memory_space<vmem>>, vector<1x32xf32>
      %100 = vector.broadcast %99 : vector<1x32xf32> to vector<8x32xf32>
      %101 = arith.addf %98, %100 : vector<8x32xf32>
      %c0_77 = arith.constant 0 : index
      %102 = arith.index_cast %93 : i32 to index
      %c0_78 = arith.constant 0 : index
      %103 = vector.load %arg4[%c0_77, %102, %c0_78] : memref<1x8x32xf32, #tpu.memory_space<vmem>>, vector<1x8x32xf32>
      %104 = vector.shape_cast %103 : vector<1x8x32xf32> to vector<8x32xf32>
      %c0_79 = arith.constant 0 : index
      %c0_80 = arith.constant 0 : index
      %105 = vector.load %arg9[%c0_79, %c0_80] : memref<32x32xf32, #tpu.memory_space<vmem>>, vector<32x32xf32>
      %cst_81 = arith.constant dense<0.000000e+00> : vector<8x32xf32>
      %106 = tpu.matmul %104, %105, %cst_81 {dimension_numbers = #tpu.dot_dimension_numbers<[1], [0], [0], [1], [0, 0, 1, 1], [], []>} : vector<8x32xf32>, vector<32x32xf32>, vector<8x32xf32> -> vector<8x32xf32>
      %c0_82 = arith.constant 0 : index
      %c0_83 = arith.constant 0 : index
      %107 = vector.load %arg10[%c0_82, %c0_83] : memref<1x32xf32, #tpu.memory_space<vmem>>, vector<1x32xf32>
      %108 = vector.broadcast %107 : vector<1x32xf32> to vector<8x32xf32>
      %109 = arith.addf %106, %108 : vector<8x32xf32>
      %110 = vector.extract_strided_slice %101 {offsets = [0, 0], sizes = [8, 8], strides = [1, 1]} : vector<8x32xf32> to vector<8x8xf32>
      %c0_84 = arith.constant 0 : index
      %111 = arith.index_cast %93 : i32 to index
      %c0_85 = arith.constant 0 : index
      %112 = vector.load %arg14[%c0_84, %111, %c0_85] : memref<4x8x8xf32, #tpu.memory_space<vmem>>, vector<1x8x8xf32>
      %113 = vector.shape_cast %112 : vector<1x8x8xf32> to vector<8x8xf32>
      %114 = vector.shape_cast %110 : vector<8x8xf32> to vector<1x8x8xf32>
      tpu.vector_store %arg14[%c0_84, %111, %c0_85], %114 {strides = array<i32>} : memref<4x8x8xf32, #tpu.memory_space<vmem>>, vector<1x8x8xf32>,
      %115 = vector.extract_strided_slice %109 {offsets = [0, 0], sizes = [8, 8], strides = [1, 1]} : vector<8x32xf32> to vector<8x8xf32>
      %c0_86 = arith.constant 0 : index
      %116 = arith.index_cast %93 : i32 to index
      %c0_87 = arith.constant 0 : index
      %117 = vector.load %arg15[%c0_86, %116, %c0_87] : memref<4x8x8xf32, #tpu.memory_space<vmem>>, vector<1x8x8xf32>
      %118 = vector.shape_cast %117 : vector<1x8x8xf32> to vector<8x8xf32>
      %119 = vector.shape_cast %115 : vector<8x8xf32> to vector<1x8x8xf32>
      tpu.vector_store %arg15[%c0_86, %116, %c0_87], %119 {strides = array<i32>} : memref<4x8x8xf32, #tpu.memory_space<vmem>>, vector<1x8x8xf32>,
      %120 = vector.extract_strided_slice %101 {offsets = [0, 8], sizes = [8, 8], strides = [1, 1]} : vector<8x32xf32> to vector<8x8xf32>
      %c1_88 = arith.constant 1 : index
      %121 = arith.index_cast %93 : i32 to index
      %c0_89 = arith.constant 0 : index
      %122 = vector.load %arg14[%c1_88, %121, %c0_89] : memref<4x8x8xf32, #tpu.memory_space<vmem>>, vector<1x8x8xf32>
      %123 = vector.shape_cast %122 : vector<1x8x8xf32> to vector<8x8xf32>
      %124 = vector.shape_cast %120 : vector<8x8xf32> to vector<1x8x8xf32>
      tpu.vector_store %arg14[%c1_88, %121, %c0_89], %124 {strides = array<i32>} : memref<4x8x8xf32, #tpu.memory_space<vmem>>, vector<1x8x8xf32>,
      %125 = vector.extract_strided_slice %109 {offsets = [0, 8], sizes = [8, 8], strides = [1, 1]} : vector<8x32xf32> to vector<8x8xf32>
      %c1_90 = arith.constant 1 : index
      %126 = arith.index_cast %93 : i32 to index
      %c0_91 = arith.constant 0 : index
      %127 = vector.load %arg15[%c1_90, %126, %c0_91] : memref<4x8x8xf32, #tpu.memory_space<vmem>>, vector<1x8x8xf32>
      %128 = vector.shape_cast %127 : vector<1x8x8xf32> to vector<8x8xf32>
      %129 = vector.shape_cast %125 : vector<8x8xf32> to vector<1x8x8xf32>
      tpu.vector_store %arg15[%c1_90, %126, %c0_91], %129 {strides = array<i32>} : memref<4x8x8xf32, #tpu.memory_space<vmem>>, vector<1x8x8xf32>,
      %130 = vector.extract_strided_slice %101 {offsets = [0, 16], sizes = [8, 8], strides = [1, 1]} : vector<8x32xf32> to vector<8x8xf32>
      %c2_92 = arith.constant 2 : index
      %131 = arith.index_cast %93 : i32 to index
      %c0_93 = arith.constant 0 : index
      %132 = vector.load %arg14[%c2_92, %131, %c0_93] : memref<4x8x8xf32, #tpu.memory_space<vmem>>, vector<1x8x8xf32>
      %133 = vector.shape_cast %132 : vector<1x8x8xf32> to vector<8x8xf32>
      %134 = vector.shape_cast %130 : vector<8x8xf32> to vector<1x8x8xf32>
      tpu.vector_store %arg14[%c2_92, %131, %c0_93], %134 {strides = array<i32>} : memref<4x8x8xf32, #tpu.memory_space<vmem>>, vector<1x8x8xf32>,
      %135 = vector.extract_strided_slice %109 {offsets = [0, 16], sizes = [8, 8], strides = [1, 1]} : vector<8x32xf32> to vector<8x8xf32>
      %c2_94 = arith.constant 2 : index
      %136 = arith.index_cast %93 : i32 to index
      %c0_95 = arith.constant 0 : index
      %137 = vector.load %arg15[%c2_94, %136, %c0_95] : memref<4x8x8xf32, #tpu.memory_space<vmem>>, vector<1x8x8xf32>
      %138 = vector.shape_cast %137 : vector<1x8x8xf32> to vector<8x8xf32>
      %139 = vector.shape_cast %135 : vector<8x8xf32> to vector<1x8x8xf32>
      tpu.vector_store %arg15[%c2_94, %136, %c0_95], %139 {strides = array<i32>} : memref<4x8x8xf32, #tpu.memory_space<vmem>>, vector<1x8x8xf32>,
      %140 = vector.extract_strided_slice %101 {offsets = [0, 24], sizes = [8, 8], strides = [1, 1]} : vector<8x32xf32> to vector<8x8xf32>
      %c3_96 = arith.constant 3 : index
      %141 = arith.index_cast %93 : i32 to index
      %c0_97 = arith.constant 0 : index
      %142 = vector.load %arg14[%c3_96, %141, %c0_97] : memref<4x8x8xf32, #tpu.memory_space<vmem>>, vector<1x8x8xf32>
      %143 = vector.shape_cast %142 : vector<1x8x8xf32> to vector<8x8xf32>
      %144 = vector.shape_cast %140 : vector<8x8xf32> to vector<1x8x8xf32>
      tpu.vector_store %arg14[%c3_96, %141, %c0_97], %144 {strides = array<i32>} : memref<4x8x8xf32, #tpu.memory_space<vmem>>, vector<1x8x8xf32>,
      %145 = vector.extract_strided_slice %109 {offsets = [0, 24], sizes = [8, 8], strides = [1, 1]} : vector<8x32xf32> to vector<8x8xf32>
      %c3_98 = arith.constant 3 : index
      %146 = arith.index_cast %93 : i32 to index
      %c0_99 = arith.constant 0 : index
      %147 = vector.load %arg15[%c3_98, %146, %c0_99] : memref<4x8x8xf32, #tpu.memory_space<vmem>>, vector<1x8x8xf32>
      %148 = vector.shape_cast %147 : vector<1x8x8xf32> to vector<8x8xf32>
      %149 = vector.shape_cast %145 : vector<8x8xf32> to vector<1x8x8xf32>
      tpu.vector_store %arg15[%c3_98, %146, %c0_99], %149 {strides = array<i32>} : memref<4x8x8xf32, #tpu.memory_space<vmem>>, vector<1x8x8xf32>,
      %c1_i32_100 = arith.constant 1 : i32
    } else {
    }
    %c0 = arith.constant 0 : index
    %c0_1 = arith.constant 0 : index
    %c0_2 = arith.constant 0 : index
    %3 = vector.load %arg2[%c0, %c0_1, %c0_2] : memref<1x8x32xf32, #tpu.memory_space<vmem>>, vector<1x8x32xf32>
    %4 = vector.shape_cast %3 : vector<1x8x32xf32> to vector<8x32xf32>
    %c0_3 = arith.constant 0 : index
    %c0_4 = arith.constant 0 : index
    %5 = vector.load %arg5[%c0_3, %c0_4] : memref<32x32xf32, #tpu.memory_space<vmem>>, vector<32x32xf32>
    %cst = arith.constant dense<0.000000e+00> : vector<8x32xf32>
    %6 = tpu.matmul %4, %5, %cst {dimension_numbers = #tpu.dot_dimension_numbers<[1], [0], [0], [1], [0, 0, 1, 1], [], []>} : vector<8x32xf32>, vector<32x32xf32>, vector<8x32xf32> -> vector<8x32xf32>
    %c0_5 = arith.constant 0 : index
    %c0_6 = arith.constant 0 : index
    %7 = vector.load %arg6[%c0_5, %c0_6] : memref<1x32xf32, #tpu.memory_space<vmem>>, vector<1x32xf32>
    %8 = vector.broadcast %7 : vector<1x32xf32> to vector<8x32xf32>
    %9 = arith.addf %6, %8 : vector<8x32xf32>
    %cst_7 = arith.constant 0.353553385 : f32
    %10 = vector.broadcast %cst_7 : f32 to vector<8x32xf32>
    %11 = arith.mulf %9, %10 : vector<8x32xf32>
    %12 = vector.extract_strided_slice %11 {offsets = [0, 0], sizes = [8, 8], strides = [1, 1]} : vector<8x32xf32> to vector<8x8xf32>
    %13 = vector.extract_strided_slice %11 {offsets = [0, 8], sizes = [8, 8], strides = [1, 1]} : vector<8x32xf32> to vector<8x8xf32>
    %14 = vector.extract_strided_slice %11 {offsets = [0, 16], sizes = [8, 8], strides = [1, 1]} : vector<8x32xf32> to vector<8x8xf32>
    %15 = vector.extract_strided_slice %11 {offsets = [0, 24], sizes = [8, 8], strides = [1, 1]} : vector<8x32xf32> to vector<8x8xf32>
    %16 = vector.shape_cast %12 : vector<8x8xf32> to vector<1x8x8xf32>
    %17 = vector.shape_cast %13 : vector<8x8xf32> to vector<1x8x8xf32>
    %18 = vector.shape_cast %14 : vector<8x8xf32> to vector<1x8x8xf32>
    %19 = vector.shape_cast %15 : vector<8x8xf32> to vector<1x8x8xf32>
    %20 = tpu.concatenate %16, %17, %18, %19 in 0 : vector<1x8x8xf32>, vector<1x8x8xf32>, vector<1x8x8xf32>, vector<1x8x8xf32> -> vector<4x8x8xf32>
    %cst_8 = arith.constant 0xFF800000 : f32
    %21 = vector.broadcast %cst_8 : f32 to vector<4x8x1xf32>
    %c0_9 = arith.constant 0 : index
    %c0_10 = arith.constant 0 : index
    %c0_11 = arith.constant 0 : index
    %22 = vector.load %arg16[%c0_9, %c0_10, %c0_11] : memref<4x8x1xf32, #tpu.memory_space<vmem>>, vector<4x8x1xf32>
    tpu.vector_store %arg16[%c0_9, %c0_10, %c0_11], %21 {strides = array<i32>} : memref<4x8x1xf32, #tpu.memory_space<vmem>>, vector<4x8x1xf32>,
    %cst_12 = arith.constant 0.000000e+00 : f32
    %23 = vector.broadcast %cst_12 : f32 to vector<4x8x1xf32>
    %c0_13 = arith.constant 0 : index
    %c0_14 = arith.constant 0 : index
    %c0_15 = arith.constant 0 : index
    %24 = vector.load %arg17[%c0_13, %c0_14, %c0_15] : memref<4x8x1xf32, #tpu.memory_space<vmem>>, vector<4x8x1xf32>
    tpu.vector_store %arg17[%c0_13, %c0_14, %c0_15], %23 {strides = array<i32>} : memref<4x8x1xf32, #tpu.memory_space<vmem>>, vector<4x8x1xf32>,
    %cst_16 = arith.constant 0.000000e+00 : f32
    %25 = vector.broadcast %cst_16 : f32 to vector<4x8x8xf32>
    %c0_17 = arith.constant 0 : index
    %c0_18 = arith.constant 0 : index
    %c0_19 = arith.constant 0 : index
    %26 = vector.load %arg18[%c0_17, %c0_18, %c0_19] : memref<4x8x8xf32, #tpu.memory_space<vmem>>, vector<4x8x8xf32>
    tpu.vector_store %arg18[%c0_17, %c0_18, %c0_19], %25 {strides = array<i32>} : memref<4x8x8xf32, #tpu.memory_space<vmem>>, vector<4x8x8xf32>,
    %c0_i32_20 = arith.constant 0 : i32
    %c8_i32 = arith.constant 8 : i32
    %27 = arith.muli %c0_i32_20, %c8_i32 : i32
    %28 = tpu.assume_multiple %27, 8 : i32
    %c0_21 = arith.constant 0 : index
    %29 = arith.index_cast %28 : i32 to index
    %c0_22 = arith.constant 0 : index
    %30 = vector.load %arg14[%c0_21, %29, %c0_22] : memref<4x8x8xf32, #tpu.memory_space<vmem>>, vector<4x8x8xf32>
    %c0_23 = arith.constant 0 : index
    %31 = arith.index_cast %28 : i32 to index
    %c0_24 = arith.constant 0 : index
    %32 = vector.load %arg15[%c0_23, %31, %c0_24] : memref<4x8x8xf32, #tpu.memory_space<vmem>>, vector<4x8x8xf32>
    "tpu.trace_start"() <{level = 10 : i32, message = "hqd,hkd->hqk"}> : () -> ()
    %cst_25 = arith.constant dense<0.000000e+00> : vector<4x8x8xf32>
    %33 = tpu.matmul %20, %30, %cst_25 {dimension_numbers = #tpu.dot_dimension_numbers<[2], [2], [1], [1], [0, 0, 0, 1, 1, 1], [0], [0]>} : vector<4x8x8xf32>, vector<4x8x8xf32>, vector<4x8x8xf32> -> vector<4x8x8xf32>
    "tpu.trace_stop"() : () -> ()
    %c0_26 = arith.constant 0 : index
    %c0_27 = arith.constant 0 : index
    %c0_28 = arith.constant 0 : index
    %34 = vector.load %arg16[%c0_26, %c0_27, %c0_28] : memref<4x8x1xf32, #tpu.memory_space<vmem>>, vector<4x8x1xf32>
    %cst_29 = arith.constant dense<0xFF800000> : vector<4x8xf32>
    %35 = vector.multi_reduction <maximumf>, %33, %cst_29 [2] : vector<4x8x8xf32> to vector<4x8xf32>
    %36 = vector.shape_cast %35 : vector<4x8xf32> to vector<4x8x1xf32>
    %37 = arith.maximumf %34, %36 : vector<4x8x1xf32>
    %38 = arith.subf %34, %37 : vector<4x8x1xf32>
    %39 = math.exp %38 : vector<4x8x1xf32>
    %40 = vector.broadcast %37 : vector<4x8x1xf32> to vector<4x8x8xf32>
    %41 = arith.subf %33, %40 : vector<4x8x8xf32>
    %42 = math.exp %41 : vector<4x8x8xf32>
    %c0_30 = arith.constant 0 : index
    %c0_31 = arith.constant 0 : index
    %c0_32 = arith.constant 0 : index
    %43 = vector.load %arg17[%c0_30, %c0_31, %c0_32] : memref<4x8x1xf32, #tpu.memory_space<vmem>>, vector<4x8x1xf32>
    %44 = arith.mulf %39, %43 : vector<4x8x1xf32>
    %cst_33 = arith.constant dense<0.000000e+00> : vector<4x8xf32>
    %45 = vector.multi_reduction <add>, %42, %cst_33 [2] : vector<4x8x8xf32> to vector<4x8xf32>
    %46 = vector.shape_cast %45 : vector<4x8xf32> to vector<4x8x1xf32>
    %47 = arith.addf %44, %46 : vector<4x8x1xf32>
    %c0_34 = arith.constant 0 : index
    %c0_35 = arith.constant 0 : index
    %c0_36 = arith.constant 0 : index
    %48 = vector.load %arg17[%c0_34, %c0_35, %c0_36] : memref<4x8x1xf32, #tpu.memory_space<vmem>>, vector<4x8x1xf32>
    tpu.vector_store %arg17[%c0_34, %c0_35, %c0_36], %47 {strides = array<i32>} : memref<4x8x1xf32, #tpu.memory_space<vmem>>, vector<4x8x1xf32>,
    %c0_37 = arith.constant 0 : index
    %c0_38 = arith.constant 0 : index
    %c0_39 = arith.constant 0 : index
    %49 = vector.load %arg18[%c0_37, %c0_38, %c0_39] : memref<4x8x8xf32, #tpu.memory_space<vmem>>, vector<4x8x8xf32>
    %50 = vector.broadcast %39 : vector<4x8x1xf32> to vector<4x8x8xf32>
    %51 = arith.mulf %50, %49 : vector<4x8x8xf32>
    "tpu.trace_start"() <{level = 10 : i32, message = "hqk,hkd->hqd"}> : () -> ()
    %cst_40 = arith.constant dense<0.000000e+00> : vector<4x8x8xf32>
    %52 = tpu.matmul %42, %32, %cst_40 {dimension_numbers = #tpu.dot_dimension_numbers<[2], [1], [1], [2], [0, 0, 0, 1, 1, 2], [0], [0]>} : vector<4x8x8xf32>, vector<4x8x8xf32>, vector<4x8x8xf32> -> vector<4x8x8xf32>
    "tpu.trace_stop"() : () -> ()
    %53 = arith.addf %51, %52 : vector<4x8x8xf32>
    %c0_41 = arith.constant 0 : index
    %c0_42 = arith.constant 0 : index
    %c0_43 = arith.constant 0 : index
    %54 = vector.load %arg18[%c0_41, %c0_42, %c0_43] : memref<4x8x8xf32, #tpu.memory_space<vmem>>, vector<4x8x8xf32>
    tpu.vector_store %arg18[%c0_41, %c0_42, %c0_43], %53 {strides = array<i32>} : memref<4x8x8xf32, #tpu.memory_space<vmem>>, vector<4x8x8xf32>,
    %c0_44 = arith.constant 0 : index
    %c0_45 = arith.constant 0 : index
    %c0_46 = arith.constant 0 : index
    %55 = vector.load %arg16[%c0_44, %c0_45, %c0_46] : memref<4x8x1xf32, #tpu.memory_space<vmem>>, vector<4x8x1xf32>
    tpu.vector_store %arg16[%c0_44, %c0_45, %c0_46], %37 {strides = array<i32>} : memref<4x8x1xf32, #tpu.memory_space<vmem>>, vector<4x8x1xf32>,
    %c1_i32 = arith.constant 1 : i32
    %c0_47 = arith.constant 0 : index
    %c0_48 = arith.constant 0 : index
    %c0_49 = arith.constant 0 : index
    %56 = vector.load %arg17[%c0_47, %c0_48, %c0_49] : memref<4x8x1xf32, #tpu.memory_space<vmem>>, vector<4x8x1xf32>
    %cst_50 = arith.constant 1.000000e+00 : f32
    %57 = vector.broadcast %cst_50 : f32 to vector<4x8x1xf32>
    %58 = arith.divf %57, %56 : vector<4x8x1xf32>
    %c0_51 = arith.constant 0 : index
    %c0_52 = arith.constant 0 : index
    %c0_53 = arith.constant 0 : index
    %59 = vector.load %arg18[%c0_51, %c0_52, %c0_53] : memref<4x8x8xf32, #tpu.memory_space<vmem>>, vector<1x8x8xf32>
    %60 = vector.shape_cast %59 : vector<1x8x8xf32> to vector<8x8xf32>
    %61 = vector.extract_strided_slice %58 {offsets = [0, 0, 0], sizes = [1, 8, 1], strides = [1, 1, 1]} : vector<4x8x1xf32> to vector<1x8x1xf32>
    %62 = vector.shape_cast %61 : vector<1x8x1xf32> to vector<8x1xf32>
    %63 = vector.broadcast %62 : vector<8x1xf32> to vector<8x8xf32>
    %64 = arith.mulf %60, %63 : vector<8x8xf32>
    %c1 = arith.constant 1 : index
    %c0_54 = arith.constant 0 : index
    %c0_55 = arith.constant 0 : index
    %65 = vector.load %arg18[%c1, %c0_54, %c0_55] : memref<4x8x8xf32, #tpu.memory_space<vmem>>, vector<1x8x8xf32>
    %66 = vector.shape_cast %65 : vector<1x8x8xf32> to vector<8x8xf32>
    %67 = vector.extract_strided_slice %58 {offsets = [1, 0, 0], sizes = [1, 8, 1], strides = [1, 1, 1]} : vector<4x8x1xf32> to vector<1x8x1xf32>
    %68 = vector.shape_cast %67 : vector<1x8x1xf32> to vector<8x1xf32>
    %69 = vector.broadcast %68 : vector<8x1xf32> to vector<8x8xf32>
    %70 = arith.mulf %66, %69 : vector<8x8xf32>
    %c2 = arith.constant 2 : index
    %c0_56 = arith.constant 0 : index
    %c0_57 = arith.constant 0 : index
    %71 = vector.load %arg18[%c2, %c0_56, %c0_57] : memref<4x8x8xf32, #tpu.memory_space<vmem>>, vector<1x8x8xf32>
    %72 = vector.shape_cast %71 : vector<1x8x8xf32> to vector<8x8xf32>
    %73 = vector.extract_strided_slice %58 {offsets = [2, 0, 0], sizes = [1, 8, 1], strides = [1, 1, 1]} : vector<4x8x1xf32> to vector<1x8x1xf32>
    %74 = vector.shape_cast %73 : vector<1x8x1xf32> to vector<8x1xf32>
    %75 = vector.broadcast %74 : vector<8x1xf32> to vector<8x8xf32>
    %76 = arith.mulf %72, %75 : vector<8x8xf32>
    %c3 = arith.constant 3 : index
    %c0_58 = arith.constant 0 : index
    %c0_59 = arith.constant 0 : index
    %77 = vector.load %arg18[%c3, %c0_58, %c0_59] : memref<4x8x8xf32, #tpu.memory_space<vmem>>, vector<1x8x8xf32>
    %78 = vector.shape_cast %77 : vector<1x8x8xf32> to vector<8x8xf32>
    %79 = vector.extract_strided_slice %58 {offsets = [3, 0, 0], sizes = [1, 8, 1], strides = [1, 1, 1]} : vector<4x8x1xf32> to vector<1x8x1xf32>
    %80 = vector.shape_cast %79 : vector<1x8x1xf32> to vector<8x1xf32>
    %81 = vector.broadcast %80 : vector<8x1xf32> to vector<8x8xf32>
    %82 = arith.mulf %78, %81 : vector<8x8xf32>
    %83 = tpu.concatenate %64, %70, %76, %82 in 1 : vector<8x8xf32>, vector<8x8xf32>, vector<8x8xf32>, vector<8x8xf32> -> vector<8x32xf32>
    %c0_60 = arith.constant 0 : index
    %c0_61 = arith.constant 0 : index
    %84 = vector.load %arg11[%c0_60, %c0_61] : memref<32x32xf32, #tpu.memory_space<vmem>>, vector<32x32xf32>
    %cst_62 = arith.constant dense<0.000000e+00> : vector<8x32xf32>
    %85 = tpu.matmul %83, %84, %cst_62 {dimension_numbers = #tpu.dot_dimension_numbers<[1], [0], [0], [1], [0, 0, 1, 1], [], []>} : vector<8x32xf32>, vector<32x32xf32>, vector<8x32xf32> -> vector<8x32xf32>
    %c0_63 = arith.constant 0 : index
    %c0_64 = arith.constant 0 : index
    %86 = vector.load %arg12[%c0_63, %c0_64] : memref<1x32xf32, #tpu.memory_space<vmem>>, vector<1x32xf32>
    %87 = vector.broadcast %86 : vector<1x32xf32> to vector<8x32xf32>
    %88 = arith.addf %85, %87 : vector<8x32xf32>
    %c0_65 = arith.constant 0 : index
    %c0_66 = arith.constant 0 : index
    %c0_67 = arith.constant 0 : index
    %89 = vector.load %arg13[%c0_65, %c0_66, %c0_67] : memref<1x8x32xf32, #tpu.memory_space<vmem>>, vector<1x8x32xf32>
    %90 = vector.shape_cast %89 : vector<1x8x32xf32> to vector<8x32xf32>
    %91 = vector.shape_cast %88 : vector<8x32xf32> to vector<1x8x32xf32>
    tpu.vector_store %arg13[%c0_65, %c0_66, %c0_67], %91 {strides = array<i32>} : memref<1x8x32xf32, #tpu.memory_space<vmem>>, vector<1x8x32xf32>,
    return
  }
  func.func @transform_0(%arg0: i32, %arg1: i32) -> (i32, i32, i32) {
    %c0_i32 = arith.constant 0 : i32
    %c0_i32_0 = arith.constant 0 : i32
    return %arg0, %arg1, %c0_i32 : i32, i32, i32
  }
  func.func @transform_1(%arg0: i32, %arg1: i32) -> (i32, i32, i32) {
    %c0_i32 = arith.constant 0 : i32
    %c0_i32_0 = arith.constant 0 : i32
    %c0_i32_1 = arith.constant 0 : i32
    return %arg0, %c0_i32, %c0_i32_0 : i32, i32, i32
  }
  func.func @transform_2(%arg0: i32, %arg1: i32) -> (i32, i32, i32) {
    %c0_i32 = arith.constant 0 : i32
    %c0_i32_0 = arith.constant 0 : i32
    %c0_i32_1 = arith.constant 0 : i32
    return %arg0, %c0_i32, %c0_i32_0 : i32, i32, i32
  }
  func.func @transform_3(%arg0: i32, %arg1: i32) -> (i32, i32) {
    %c0_i32 = arith.constant 0 : i32
    %c0_i32_0 = arith.constant 0 : i32
    %c0_i32_1 = arith.constant 0 : i32
    return %c0_i32, %c0_i32_0 : i32, i32
  }
  func.func @transform_4(%arg0: i32, %arg1: i32) -> (i32, i32) {
    %c0_i32 = arith.constant 0 : i32
    %c0_i32_0 = arith.constant 0 : i32
    %c0_i32_1 = arith.constant 0 : i32
    return %c0_i32, %c0_i32_0 : i32, i32
  }
  func.func @transform_5(%arg0: i32, %arg1: i32) -> (i32, i32) {
    %c0_i32 = arith.constant 0 : i32
    %c0_i32_0 = arith.constant 0 : i32
    %c0_i32_1 = arith.constant 0 : i32
    return %c0_i32, %c0_i32_0 : i32, i32
  }
  func.func @transform_6(%arg0: i32, %arg1: i32) -> (i32, i32) {
    %c0_i32 = arith.constant 0 : i32
    %c0_i32_0 = arith.constant 0 : i32
    %c0_i32_1 = arith.constant 0 : i32
    return %c0_i32, %c0_i32_0 : i32, i32
  }
  func.func @transform_7(%arg0: i32, %arg1: i32) -> (i32, i32) {
    %c0_i32 = arith.constant 0 : i32
    %c0_i32_0 = arith.constant 0 : i32
    %c0_i32_1 = arith.constant 0 : i32
    return %c0_i32, %c0_i32_0 : i32, i32
  }
  func.func @transform_8(%arg0: i32, %arg1: i32) -> (i32, i32) {
    %c0_i32 = arith.constant 0 : i32
    %c0_i32_0 = arith.constant 0 : i32
    %c0_i32_1 = arith.constant 0 : i32
    return %c0_i32, %c0_i32_0 : i32, i32
  }
  func.func @transform_9(%arg0: i32, %arg1: i32) -> (i32, i32) {
    %c0_i32 = arith.constant 0 : i32
    %c0_i32_0 = arith.constant 0 : i32
    %c0_i32_1 = arith.constant 0 : i32
    return %c0_i32, %c0_i32_0 : i32, i32
  }
  func.func @transform_10(%arg0: i32, %arg1: i32) -> (i32, i32) {
    %c0_i32 = arith.constant 0 : i32
    %c0_i32_0 = arith.constant 0 : i32
    %c0_i32_1 = arith.constant 0 : i32
    return %c0_i32, %c0_i32_0 : i32, i32
  }
  func.func @transform_11(%arg0: i32, %arg1: i32) -> (i32, i32, i32) {
    %c0_i32 = arith.constant 0 : i32
    %c0_i32_0 = arith.constant 0 : i32
    return %arg0, %arg1, %c0_i32 : i32, i32, i32
  }
}

module attributes {stable_mosaic.version = 11 : i64} {
  func.func @kernel(%arg0: i32, %arg1: i32, %arg2: memref<1x8x32xf32, #tpu.memory_space<vmem>>, %arg3: memref<1x8x32xf32, #tpu.memory_space<vmem>>, %arg4: memref<1x8x32xf32, #tpu.memory_space<vmem>>, %arg5: memref<32x32xf32, #tpu.memory_space<vmem>>, %arg6: memref<1x32xf32, #tpu.memory_space<vmem>>, %arg7: memref<32x32xf32, #tpu.memory_space<vmem>>, %arg8: memref<1x32xf32, #tpu.memory_space<vmem>>, %arg9: memref<32x32xf32, #tpu.memory_space<vmem>>, %arg10: memref<1x32xf32, #tpu.memory_space<vmem>>, %arg11: memref<32x32xf32, #tpu.memory_space<vmem>>, %arg12: memref<1x32xf32, #tpu.memory_space<vmem>>, %arg13: memref<1x8x32xf32, #tpu.memory_space<vmem>>, %arg14: memref<4x8x8xf32, #tpu.memory_space<vmem>>, %arg15: memref<4x8x8xf32, #tpu.memory_space<vmem>>, %arg16: memref<4x8x1xf32, #tpu.memory_space<vmem>>, %arg17: memref<4x8x1xf32, #tpu.memory_space<vmem>>, %arg18: memref<4x8x8xf32, #tpu.memory_space<vmem>>) attributes {dimension_semantics = [#tpu.dimension_semantics<parallel>, #tpu.dimension_semantics<arbitrary>], iteration_bounds = array<i64: 2, 1>, scalar_prefetch = 0 : i64, scratch_operands = 5 : i64, tpu.core_type = #tpu.core_type<tc>, window_params = [{transform_indices = @transform_0, window_bounds = array<i64: 1, 8, 32>}, {transform_indices = @transform_1, window_bounds = array<i64: 1, 8, 32>}, {transform_indices = @transform_2, window_bounds = array<i64: 1, 8, 32>}, {pipeline_mode = #tpu.pipeline_mode<synchronous>, transform_indices = @transform_3, window_bounds = array<i64: 32, 32>}, {pipeline_mode = #tpu.pipeline_mode<synchronous>, transform_indices = @transform_4, window_bounds = array<i64: 1, 32>}, {pipeline_mode = #tpu.pipeline_mode<synchronous>, transform_indices = @transform_5, window_bounds = array<i64: 32, 32>}, {pipeline_mode = #tpu.pipeline_mode<synchronous>, transform_indices = @transform_6, window_bounds = array<i64: 1, 32>}, {pipeline_mode = #tpu.pipeline_mode<synchronous>, transform_indices = @transform_7, window_bounds = array<i64: 32, 32>}, {pipeline_mode = #tpu.pipeline_mode<synchronous>, transform_indices = @transform_8, window_bounds = array<i64: 1, 32>}, {pipeline_mode = #tpu.pipeline_mode<synchronous>, transform_indices = @transform_9, window_bounds = array<i64: 32, 32>}, {pipeline_mode = #tpu.pipeline_mode<synchronous>, transform_indices = @transform_10, window_bounds = array<i64: 1, 32>}, {transform_indices = @transform_11, window_bounds = array<i64: 1, 8, 32>}]} {
    %c0_i32 = arith.constant 0 : i32
    %0 = arith.cmpi eq, %arg1, %c0_i32 : i32
    %1 = arith.extui %0 : i1 to i32
    %c0_i32_0 = arith.constant 0 : i32
    %2 = arith.cmpi ne, %1, %c0_i32_0 : i32
    scf.if %2 {
      %c0_i32_68 = arith.constant 0 : i32
      %c8_i32_69 = arith.constant 8 : i32
      %92 = arith.muli %c0_i32_68, %c8_i32_69 : i32
      %93 = tpu.assume_multiple %92, 8 : i32
      %c0_70 = arith.constant 0 : index
      %94 = arith.index_cast %93 : i32 to index
      %c0_71 = arith.constant 0 : index
      %95 = vector.load %arg3[%c0_70, %94, %c0_71] : memref<1x8x32xf32, #tpu.memory_space<vmem>>, vector<1x8x32xf32>
      %96 = vector.shape_cast %95 : vector<1x8x32xf32> to vector<8x32xf32>
      %c0_72 = arith.constant 0 : index
      %c0_73 = arith.constant 0 : index
      %97 = vector.load %arg7[%c0_72, %c0_73] : memref<32x32xf32, #tpu.memory_space<vmem>>, vector<32x32xf32>
      %cst_74 = arith.constant dense<0.000000e+00> : vector<8x32xf32>
      %98 = tpu.matmul %96, %97, %cst_74 {dimension_numbers = #tpu.dot_dimension_numbers<[1], [0], [0], [1], [0, 0, 1, 1], [], []>} : vector<8x32xf32>, vector<32x32xf32>, vector<8x32xf32> -> vector<8x32xf32>
      %c0_75 = arith.constant 0 : index
      %c0_76 = arith.constant 0 : index
      %99 = vector.load %arg8[%c0_75, %c0_76] : memref<1x32xf32, #tpu.memory_space<vmem>>, vector<1x32xf32>
      %100 = vector.broadcast %99 : vector<1x32xf32> to vector<8x32xf32>
      %101 = arith.addf %98, %100 : vector<8x32xf32>
      %c0_77 = arith.constant 0 : index
      %102 = arith.index_cast %93 : i32 to index
      %c0_78 = arith.constant 0 : index
      %103 = vector.load %arg4[%c0_77, %102, %c0_78] : memref<1x8x32xf32, #tpu.memory_space<vmem>>, vector<1x8x32xf32>
      %104 = vector.shape_cast %103 : vector<1x8x32xf32> to vector<8x32xf32>
      %c0_79 = arith.constant 0 : index
      %c0_80 = arith.constant 0 : index
      %105 = vector.load %arg9[%c0_79, %c0_80] : memref<32x32xf32, #tpu.memory_space<vmem>>, vector<32x32xf32>
      %cst_81 = arith.constant dense<0.000000e+00> : vector<8x32xf32>
      %106 = tpu.matmul %104, %105, %cst_81 {dimension_numbers = #tpu.dot_dimension_numbers<[1], [0], [0], [1], [0, 0, 1, 1], [], []>} : vector<8x32xf32>, vector<32x32xf32>, vector<8x32xf32> -> vector<8x32xf32>
      %c0_82 = arith.constant 0 : index
      %c0_83 = arith.constant 0 : index
      %107 = vector.load %arg10[%c0_82, %c0_83] : memref<1x32xf32, #tpu.memory_space<vmem>>, vector<1x32xf32>
      %108 = vector.broadcast %107 : vector<1x32xf32> to vector<8x32xf32>
      %109 = arith.addf %106, %108 : vector<8x32xf32>
      %110 = vector.extract_strided_slice %101 {offsets = [0, 0], sizes = [8, 8], strides = [1, 1]} : vector<8x32xf32> to vector<8x8xf32>
      %c0_84 = arith.constant 0 : index
      %111 = arith.index_cast %93 : i32 to index
      %c0_85 = arith.constant 0 : index
      %112 = vector.load %arg14[%c0_84, %111, %c0_85] : memref<4x8x8xf32, #tpu.memory_space<vmem>>, vector<1x8x8xf32>
      %113 = vector.shape_cast %112 : vector<1x8x8xf32> to vector<8x8xf32>
      %114 = vector.shape_cast %110 : vector<8x8xf32> to vector<1x8x8xf32>
      tpu.vector_store %arg14[%c0_84, %111, %c0_85], %114 {strides = array<i32>} : memref<4x8x8xf32, #tpu.memory_space<vmem>>, vector<1x8x8xf32>,
      %115 = vector.extract_strided_slice %109 {offsets = [0, 0], sizes = [8, 8], strides = [1, 1]} : vector<8x32xf32> to vector<8x8xf32>
      %c0_86 = arith.constant 0 : index
      %116 = arith.index_cast %93 : i32 to index
      %c0_87 = arith.constant 0 : index
      %117 = vector.load %arg15[%c0_86, %116, %c0_87] : memref<4x8x8xf32, #tpu.memory_space<vmem>>, vector<1x8x8xf32>
      %118 = vector.shape_cast %117 : vector<1x8x8xf32> to vector<8x8xf32>
      %119 = vector.shape_cast %115 : vector<8x8xf32> to vector<1x8x8xf32>
      tpu.vector_store %arg15[%c0_86, %116, %c0_87], %119 {strides = array<i32>} : memref<4x8x8xf32, #tpu.memory_space<vmem>>, vector<1x8x8xf32>,
      %120 = vector.extract_strided_slice %101 {offsets = [0, 8], sizes = [8, 8], strides = [1, 1]} : vector<8x32xf32> to vector<8x8xf32>
      %c1_88 = arith.constant 1 : index
      %121 = arith.index_cast %93 : i32 to index
      %c0_89 = arith.constant 0 : index
      %122 = vector.load %arg14[%c1_88, %121, %c0_89] : memref<4x8x8xf32, #tpu.memory_space<vmem>>, vector<1x8x8xf32>
      %123 = vector.shape_cast %122 : vector<1x8x8xf32> to vector<8x8xf32>
      %124 = vector.shape_cast %120 : vector<8x8xf32> to vector<1x8x8xf32>
      tpu.vector_store %arg14[%c1_88, %121, %c0_89], %124 {strides = array<i32>} : memref<4x8x8xf32, #tpu.memory_space<vmem>>, vector<1x8x8xf32>,
      %125 = vector.extract_strided_slice %109 {offsets = [0, 8], sizes = [8, 8], strides = [1, 1]} : vector<8x32xf32> to vector<8x8xf32>
      %c1_90 = arith.constant 1 : index
      %126 = arith.index_cast %93 : i32 to index
      %c0_91 = arith.constant 0 : index
      %127 = vector.load %arg15[%c1_90, %126, %c0_91] : memref<4x8x8xf32, #tpu.memory_space<vmem>>, vector<1x8x8xf32>
      %128 = vector.shape_cast %127 : vector<1x8x8xf32> to vector<8x8xf32>
      %129 = vector.shape_cast %125 : vector<8x8xf32> to vector<1x8x8xf32>
      tpu.vector_store %arg15[%c1_90, %126, %c0_91], %129 {strides = array<i32>} : memref<4x8x8xf32, #tpu.memory_space<vmem>>, vector<1x8x8xf32>,
      %130 = vector.extract_strided_slice %101 {offsets = [0, 16], sizes = [8, 8], strides = [1, 1]} : vector<8x32xf32> to vector<8x8xf32>
      %c2_92 = arith.constant 2 : index
      %131 = arith.index_cast %93 : i32 to index
      %c0_93 = arith.constant 0 : index
      %132 = vector.load %arg14[%c2_92, %131, %c0_93] : memref<4x8x8xf32, #tpu.memory_space<vmem>>, vector<1x8x8xf32>
      %133 = vector.shape_cast %132 : vector<1x8x8xf32> to vector<8x8xf32>
      %134 = vector.shape_cast %130 : vector<8x8xf32> to vector<1x8x8xf32>
      tpu.vector_store %arg14[%c2_92, %131, %c0_93], %134 {strides = array<i32>} : memref<4x8x8xf32, #tpu.memory_space<vmem>>, vector<1x8x8xf32>,
      %135 = vector.extract_strided_slice %109 {offsets = [0, 16], sizes = [8, 8], strides = [1, 1]} : vector<8x32xf32> to vector<8x8xf32>
      %c2_94 = arith.constant 2 : index
      %136 = arith.index_cast %93 : i32 to index
      %c0_95 = arith.constant 0 : index
      %137 = vector.load %arg15[%c2_94, %136, %c0_95] : memref<4x8x8xf32, #tpu.memory_space<vmem>>, vector<1x8x8xf32>
      %138 = vector.shape_cast %137 : vector<1x8x8xf32> to vector<8x8xf32>
      %139 = vector.shape_cast %135 : vector<8x8xf32> to vector<1x8x8xf32>
      tpu.vector_store %arg15[%c2_94, %136, %c0_95], %139 {strides = array<i32>} : memref<4x8x8xf32, #tpu.memory_space<vmem>>, vector<1x8x8xf32>,
      %140 = vector.extract_strided_slice %101 {offsets = [0, 24], sizes = [8, 8], strides = [1, 1]} : vector<8x32xf32> to vector<8x8xf32>
      %c3_96 = arith.constant 3 : index
      %141 = arith.index_cast %93 : i32 to index
      %c0_97 = arith.constant 0 : index
      %142 = vector.load %arg14[%c3_96, %141, %c0_97] : memref<4x8x8xf32, #tpu.memory_space<vmem>>, vector<1x8x8xf32>
      %143 = vector.shape_cast %142 : vector<1x8x8xf32> to vector<8x8xf32>
      %144 = vector.shape_cast %140 : vector<8x8xf32> to vector<1x8x8xf32>
      tpu.vector_store %arg14[%c3_96, %141, %c0_97], %144 {strides = array<i32>} : memref<4x8x8xf32, #tpu.memory_space<vmem>>, vector<1x8x8xf32>,
      %145 = vector.extract_strided_slice %109 {offsets = [0, 24], sizes = [8, 8], strides = [1, 1]} : vector<8x32xf32> to vector<8x8xf32>
      %c3_98 = arith.constant 3 : index
      %146 = arith.index_cast %93 : i32 to index
      %c0_99 = arith.constant 0 : index
      %147 = vector.load %arg15[%c3_98, %146, %c0_99] : memref<4x8x8xf32, #tpu.memory_space<vmem>>, vector<1x8x8xf32>
      %148 = vector.shape_cast %147 : vector<1x8x8xf32> to vector<8x8xf32>
      %149 = vector.shape_cast %145 : vector<8x8xf32> to vector<1x8x8xf32>
      tpu.vector_store %arg15[%c3_98, %146, %c0_99], %149 {strides = array<i32>} : memref<4x8x8xf32, #tpu.memory_space<vmem>>, vector<1x8x8xf32>,
      %c1_i32_100 = arith.constant 1 : i32
    } else {
    }
    %c0 = arith.constant 0 : index
    %c0_1 = arith.constant 0 : index
    %c0_2 = arith.constant 0 : index
    %3 = vector.load %arg2[%c0, %c0_1, %c0_2] : memref<1x8x32xf32, #tpu.memory_space<vmem>>, vector<1x8x32xf32>
    %4 = vector.shape_cast %3 : vector<1x8x32xf32> to vector<8x32xf32>
    %c0_3 = arith.constant 0 : index
    %c0_4 = arith.constant 0 : index
    %5 = vector.load %arg5[%c0_3, %c0_4] : memref<32x32xf32, #tpu.memory_space<vmem>>, vector<32x32xf32>
    %cst = arith.constant dense<0.000000e+00> : vector<8x32xf32>
    %6 = tpu.matmul %4, %5, %cst {dimension_numbers = #tpu.dot_dimension_numbers<[1], [0], [0], [1], [0, 0, 1, 1], [], []>} : vector<8x32xf32>, vector<32x32xf32>, vector<8x32xf32> -> vector<8x32xf32>
    %c0_5 = arith.constant 0 : index
    %c0_6 = arith.constant 0 : index
    %7 = vector.load %arg6[%c0_5, %c0_6] : memref<1x32xf32, #tpu.memory_space<vmem>>, vector<1x32xf32>
    %8 = vector.broadcast %7 : vector<1x32xf32> to vector<8x32xf32>
    %9 = arith.addf %6, %8 : vector<8x32xf32>
    %cst_7 = arith.constant 0.353553385 : f32
    %10 = vector.broadcast %cst_7 : f32 to vector<8x32xf32>
    %11 = arith.mulf %9, %10 : vector<8x32xf32>
    %12 = vector.extract_strided_slice %11 {offsets = [0, 0], sizes = [8, 8], strides = [1, 1]} : vector<8x32xf32> to vector<8x8xf32>
    %13 = vector.extract_strided_slice %11 {offsets = [0, 8], sizes = [8, 8], strides = [1, 1]} : vector<8x32xf32> to vector<8x8xf32>
    %14 = vector.extract_strided_slice %11 {offsets = [0, 16], sizes = [8, 8], strides = [1, 1]} : vector<8x32xf32> to vector<8x8xf32>
    %15 = vector.extract_strided_slice %11 {offsets = [0, 24], sizes = [8, 8], strides = [1, 1]} : vector<8x32xf32> to vector<8x8xf32>
    %16 = vector.shape_cast %12 : vector<8x8xf32> to vector<1x8x8xf32>
    %17 = vector.shape_cast %13 : vector<8x8xf32> to vector<1x8x8xf32>
    %18 = vector.shape_cast %14 : vector<8x8xf32> to vector<1x8x8xf32>
    %19 = vector.shape_cast %15 : vector<8x8xf32> to vector<1x8x8xf32>
    %20 = tpu.concatenate %16, %17, %18, %19 in 0 : vector<1x8x8xf32>, vector<1x8x8xf32>, vector<1x8x8xf32>, vector<1x8x8xf32> -> vector<4x8x8xf32>
    %cst_8 = arith.constant 0xFF800000 : f32
    %21 = vector.broadcast %cst_8 : f32 to vector<4x8x1xf32>
    %c0_9 = arith.constant 0 : index
    %c0_10 = arith.constant 0 : index
    %c0_11 = arith.constant 0 : index
    %22 = vector.load %arg16[%c0_9, %c0_10, %c0_11] : memref<4x8x1xf32, #tpu.memory_space<vmem>>, vector<4x8x1xf32>
    tpu.vector_store %arg16[%c0_9, %c0_10, %c0_11], %21 {strides = array<i32>} : memref<4x8x1xf32, #tpu.memory_space<vmem>>, vector<4x8x1xf32>,
    %cst_12 = arith.constant 0.000000e+00 : f32
    %23 = vector.broadcast %cst_12 : f32 to vector<4x8x1xf32>
    %c0_13 = arith.constant 0 : index
    %c0_14 = arith.constant 0 : index
    %c0_15 = arith.constant 0 : index
    %24 = vector.load %arg17[%c0_13, %c0_14, %c0_15] : memref<4x8x1xf32, #tpu.memory_space<vmem>>, vector<4x8x1xf32>
    tpu.vector_store %arg17[%c0_13, %c0_14, %c0_15], %23 {strides = array<i32>} : memref<4x8x1xf32, #tpu.memory_space<vmem>>, vector<4x8x1xf32>,
    %cst_16 = arith.constant 0.000000e+00 : f32
    %25 = vector.broadcast %cst_16 : f32 to vector<4x8x8xf32>
    %c0_17 = arith.constant 0 : index
    %c0_18 = arith.constant 0 : index
    %c0_19 = arith.constant 0 : index
    %26 = vector.load %arg18[%c0_17, %c0_18, %c0_19] : memref<4x8x8xf32, #tpu.memory_space<vmem>>, vector<4x8x8xf32>
    tpu.vector_store %arg18[%c0_17, %c0_18, %c0_19], %25 {strides = array<i32>} : memref<4x8x8xf32, #tpu.memory_space<vmem>>, vector<4x8x8xf32>,
    %c0_i32_20 = arith.constant 0 : i32
    %c8_i32 = arith.constant 8 : i32
    %27 = arith.muli %c0_i32_20, %c8_i32 : i32
    %28 = tpu.assume_multiple %27, 8 : i32
    %c0_21 = arith.constant 0 : index
    %29 = arith.index_cast %28 : i32 to index
    %c0_22 = arith.constant 0 : index
    %30 = vector.load %arg14[%c0_21, %29, %c0_22] : memref<4x8x8xf32, #tpu.memory_space<vmem>>, vector<4x8x8xf32>
    %c0_23 = arith.constant 0 : index
    %31 = arith.index_cast %28 : i32 to index
    %c0_24 = arith.constant 0 : index
    %32 = vector.load %arg15[%c0_23, %31, %c0_24] : memref<4x8x8xf32, #tpu.memory_space<vmem>>, vector<4x8x8xf32>
    "tpu.trace_start"() <{level = 10 : i32, message = "hqd,hkd->hqk"}> : () -> ()
    %cst_25 = arith.constant dense<0.000000e+00> : vector<4x8x8xf32>
    %33 = tpu.matmul %20, %30, %cst_25 {dimension_numbers = #tpu.dot_dimension_numbers<[2], [2], [1], [1], [0, 0, 0, 1, 1, 1], [0], [0]>} : vector<4x8x8xf32>, vector<4x8x8xf32>, vector<4x8x8xf32> -> vector<4x8x8xf32>
    "tpu.trace_stop"() : () -> ()
    %c0_26 = arith.constant 0 : index
    %c0_27 = arith.constant 0 : index
    %c0_28 = arith.constant 0 : index
    %34 = vector.load %arg16[%c0_26, %c0_27, %c0_28] : memref<4x8x1xf32, #tpu.memory_space<vmem>>, vector<4x8x1xf32>
    %cst_29 = arith.constant dense<0xFF800000> : vector<4x8xf32>
    %35 = vector.multi_reduction <maximumf>, %33, %cst_29 [2] : vector<4x8x8xf32> to vector<4x8xf32>
    %36 = vector.shape_cast %35 : vector<4x8xf32> to vector<4x8x1xf32>
    %37 = arith.maximumf %34, %36 : vector<4x8x1xf32>
    %38 = arith.subf %34, %37 : vector<4x8x1xf32>
    %39 = math.exp %38 : vector<4x8x1xf32>
    %40 = vector.broadcast %37 : vector<4x8x1xf32> to vector<4x8x8xf32>
    %41 = arith.subf %33, %40 : vector<4x8x8xf32>
    %42 = math.exp %41 : vector<4x8x8xf32>
    %c0_30 = arith.constant 0 : index
    %c0_31 = arith.constant 0 : index
    %c0_32 = arith.constant 0 : index
    %43 = vector.load %arg17[%c0_30, %c0_31, %c0_32] : memref<4x8x1xf32, #tpu.memory_space<vmem>>, vector<4x8x1xf32>
    %44 = arith.mulf %39, %43 : vector<4x8x1xf32>
    %cst_33 = arith.constant dense<0.000000e+00> : vector<4x8xf32>
    %45 = vector.multi_reduction <add>, %42, %cst_33 [2] : vector<4x8x8xf32> to vector<4x8xf32>
    %46 = vector.shape_cast %45 : vector<4x8xf32> to vector<4x8x1xf32>
    %47 = arith.addf %44, %46 : vector<4x8x1xf32>
    %c0_34 = arith.constant 0 : index
    %c0_35 = arith.constant 0 : index
    %c0_36 = arith.constant 0 : index
    %48 = vector.load %arg17[%c0_34, %c0_35, %c0_36] : memref<4x8x1xf32, #tpu.memory_space<vmem>>, vector<4x8x1xf32>
    tpu.vector_store %arg17[%c0_34, %c0_35, %c0_36], %47 {strides = array<i32>} : memref<4x8x1xf32, #tpu.memory_space<vmem>>, vector<4x8x1xf32>,
    %c0_37 = arith.constant 0 : index
    %c0_38 = arith.constant 0 : index
    %c0_39 = arith.constant 0 : index
    %49 = vector.load %arg18[%c0_37, %c0_38, %c0_39] : memref<4x8x8xf32, #tpu.memory_space<vmem>>, vector<4x8x8xf32>
    %50 = vector.broadcast %39 : vector<4x8x1xf32> to vector<4x8x8xf32>
    %51 = arith.mulf %50, %49 : vector<4x8x8xf32>
    "tpu.trace_start"() <{level = 10 : i32, message = "hqk,hkd->hqd"}> : () -> ()
    %cst_40 = arith.constant dense<0.000000e+00> : vector<4x8x8xf32>
    %52 = tpu.matmul %42, %32, %cst_40 {dimension_numbers = #tpu.dot_dimension_numbers<[2], [1], [1], [2], [0, 0, 0, 1, 1, 2], [0], [0]>} : vector<4x8x8xf32>, vector<4x8x8xf32>, vector<4x8x8xf32> -> vector<4x8x8xf32>
    "tpu.trace_stop"() : () -> ()
    %53 = arith.addf %51, %52 : vector<4x8x8xf32>
    %c0_41 = arith.constant 0 : index
    %c0_42 = arith.constant 0 : index
    %c0_43 = arith.constant 0 : index
    %54 = vector.load %arg18[%c0_41, %c0_42, %c0_43] : memref<4x8x8xf32, #tpu.memory_space<vmem>>, vector<4x8x8xf32>
    tpu.vector_store %arg18[%c0_41, %c0_42, %c0_43], %53 {strides = array<i32>} : memref<4x8x8xf32, #tpu.memory_space<vmem>>, vector<4x8x8xf32>,
    %c0_44 = arith.constant 0 : index
    %c0_45 = arith.constant 0 : index
    %c0_46 = arith.constant 0 : index
    %55 = vector.load %arg16[%c0_44, %c0_45, %c0_46] : memref<4x8x1xf32, #tpu.memory_space<vmem>>, vector<4x8x1xf32>
    tpu.vector_store %arg16[%c0_44, %c0_45, %c0_46], %37 {strides = array<i32>} : memref<4x8x1xf32, #tpu.memory_space<vmem>>, vector<4x8x1xf32>,
    %c1_i32 = arith.constant 1 : i32
    %c0_47 = arith.constant 0 : index
    %c0_48 = arith.constant 0 : index
    %c0_49 = arith.constant 0 : index
    %56 = vector.load %arg17[%c0_47, %c0_48, %c0_49] : memref<4x8x1xf32, #tpu.memory_space<vmem>>, vector<4x8x1xf32>
    %cst_50 = arith.constant 1.000000e+00 : f32
    %57 = vector.broadcast %cst_50 : f32 to vector<4x8x1xf32>
    %58 = arith.divf %57, %56 : vector<4x8x1xf32>
    %c0_51 = arith.constant 0 : index
    %c0_52 = arith.constant 0 : index
    %c0_53 = arith.constant 0 : index
    %59 = vector.load %arg18[%c0_51, %c0_52, %c0_53] : memref<4x8x8xf32, #tpu.memory_space<vmem>>, vector<1x8x8xf32>
    %60 = vector.shape_cast %59 : vector<1x8x8xf32> to vector<8x8xf32>
    %61 = vector.extract_strided_slice %58 {offsets = [0, 0, 0], sizes = [1, 8, 1], strides = [1, 1, 1]} : vector<4x8x1xf32> to vector<1x8x1xf32>
    %62 = vector.shape_cast %61 : vector<1x8x1xf32> to vector<8x1xf32>
    %63 = vector.broadcast %62 : vector<8x1xf32> to vector<8x8xf32>
    %64 = arith.mulf %60, %63 : vector<8x8xf32>
    %c1 = arith.constant 1 : index
    %c0_54 = arith.constant 0 : index
    %c0_55 = arith.constant 0 : index
    %65 = vector.load %arg18[%c1, %c0_54, %c0_55] : memref<4x8x8xf32, #tpu.memory_space<vmem>>, vector<1x8x8xf32>
    %66 = vector.shape_cast %65 : vector<1x8x8xf32> to vector<8x8xf32>
    %67 = vector.extract_strided_slice %58 {offsets = [1, 0, 0], sizes = [1, 8, 1], strides = [1, 1, 1]} : vector<4x8x1xf32> to vector<1x8x1xf32>
    %68 = vector.shape_cast %67 : vector<1x8x1xf32> to vector<8x1xf32>
    %69 = vector.broadcast %68 : vector<8x1xf32> to vector<8x8xf32>
    %70 = arith.mulf %66, %69 : vector<8x8xf32>
    %c2 = arith.constant 2 : index
    %c0_56 = arith.constant 0 : index
    %c0_57 = arith.constant 0 : index
    %71 = vector.load %arg18[%c2, %c0_56, %c0_57] : memref<4x8x8xf32, #tpu.memory_space<vmem>>, vector<1x8x8xf32>
    %72 = vector.shape_cast %71 : vector<1x8x8xf32> to vector<8x8xf32>
    %73 = vector.extract_strided_slice %58 {offsets = [2, 0, 0], sizes = [1, 8, 1], strides = [1, 1, 1]} : vector<4x8x1xf32> to vector<1x8x1xf32>
    %74 = vector.shape_cast %73 : vector<1x8x1xf32> to vector<8x1xf32>
    %75 = vector.broadcast %74 : vector<8x1xf32> to vector<8x8xf32>
    %76 = arith.mulf %72, %75 : vector<8x8xf32>
    %c3 = arith.constant 3 : index
    %c0_58 = arith.constant 0 : index
    %c0_59 = arith.constant 0 : index
    %77 = vector.load %arg18[%c3, %c0_58, %c0_59] : memref<4x8x8xf32, #tpu.memory_space<vmem>>, vector<1x8x8xf32>
    %78 = vector.shape_cast %77 : vector<1x8x8xf32> to vector<8x8xf32>
    %79 = vector.extract_strided_slice %58 {offsets = [3, 0, 0], sizes = [1, 8, 1], strides = [1, 1, 1]} : vector<4x8x1xf32> to vector<1x8x1xf32>
    %80 = vector.shape_cast %79 : vector<1x8x1xf32> to vector<8x1xf32>
    %81 = vector.broadcast %80 : vector<8x1xf32> to vector<8x8xf32>
    %82 = arith.mulf %78, %81 : vector<8x8xf32>
    %83 = tpu.concatenate %64, %70, %76, %82 in 1 : vector<8x8xf32>, vector<8x8xf32>, vector<8x8xf32>, vector<8x8xf32> -> vector<8x32xf32>
    %c0_60 = arith.constant 0 : index
    %c0_61 = arith.constant 0 : index
    %84 = vector.load %arg11[%c0_60, %c0_61] : memref<32x32xf32, #tpu.memory_space<vmem>>, vector<32x32xf32>
    %cst_62 = arith.constant dense<0.000000e+00> : vector<8x32xf32>
    %85 = tpu.matmul %83, %84, %cst_62 {dimension_numbers = #tpu.dot_dimension_numbers<[1], [0], [0], [1], [0, 0, 1, 1], [], []>} : vector<8x32xf32>, vector<32x32xf32>, vector<8x32xf32> -> vector<8x32xf32>
    %c0_63 = arith.constant 0 : index
    %c0_64 = arith.constant 0 : index
    %86 = vector.load %arg12[%c0_63, %c0_64] : memref<1x32xf32, #tpu.memory_space<vmem>>, vector<1x32xf32>
    %87 = vector.broadcast %86 : vector<1x32xf32> to vector<8x32xf32>
    %88 = arith.addf %85, %87 : vector<8x32xf32>
    %c0_65 = arith.constant 0 : index
    %c0_66 = arith.constant 0 : index
    %c0_67 = arith.constant 0 : index
    %89 = vector.load %arg13[%c0_65, %c0_66, %c0_67] : memref<1x8x32xf32, #tpu.memory_space<vmem>>, vector<1x8x32xf32>
    %90 = vector.shape_cast %89 : vector<1x8x32xf32> to vector<8x32xf32>
    %91 = vector.shape_cast %88 : vector<8x32xf32> to vector<1x8x32xf32>
    tpu.vector_store %arg13[%c0_65, %c0_66, %c0_67], %91 {strides = array<i32>} : memref<1x8x32xf32, #tpu.memory_space<vmem>>, vector<1x8x32xf32>,
    return
  }
  func.func @transform_0(%arg0: i32, %arg1: i32) -> (i32, i32, i32) {
    %c0_i32 = arith.constant 0 : i32
    %c0_i32_0 = arith.constant 0 : i32
    return %arg0, %arg1, %c0_i32 : i32, i32, i32
  }
  func.func @transform_1(%arg0: i32, %arg1: i32) -> (i32, i32, i32) {
    %c0_i32 = arith.constant 0 : i32
    %c0_i32_0 = arith.constant 0 : i32
    %c0_i32_1 = arith.constant 0 : i32
    return %arg0, %c0_i32, %c0_i32_0 : i32, i32, i32
  }
  func.func @transform_2(%arg0: i32, %arg1: i32) -> (i32, i32, i32) {
    %c0_i32 = arith.constant 0 : i32
    %c0_i32_0 = arith.constant 0 : i32
    %c0_i32_1 = arith.constant 0 : i32
    return %arg0, %c0_i32, %c0_i32_0 : i32, i32, i32
  }
  func.func @transform_3(%arg0: i32, %arg1: i32) -> (i32, i32) {
    %c0_i32 = arith.constant 0 : i32
    %c0_i32_0 = arith.constant 0 : i32
    %c0_i32_1 = arith.constant 0 : i32
    return %c0_i32, %c0_i32_0 : i32, i32
  }
  func.func @transform_4(%arg0: i32, %arg1: i32) -> (i32, i32) {
    %c0_i32 = arith.constant 0 : i32
    %c0_i32_0 = arith.constant 0 : i32
    %c0_i32_1 = arith.constant 0 : i32
    return %c0_i32, %c0_i32_0 : i32, i32
  }
  func.func @transform_5(%arg0: i32, %arg1: i32) -> (i32, i32) {
    %c0_i32 = arith.constant 0 : i32
    %c0_i32_0 = arith.constant 0 : i32
    %c0_i32_1 = arith.constant 0 : i32
    return %c0_i32, %c0_i32_0 : i32, i32
  }
  func.func @transform_6(%arg0: i32, %arg1: i32) -> (i32, i32) {
    %c0_i32 = arith.constant 0 : i32
    %c0_i32_0 = arith.constant 0 : i32
    %c0_i32_1 = arith.constant 0 : i32
    return %c0_i32, %c0_i32_0 : i32, i32
  }
  func.func @transform_7(%arg0: i32, %arg1: i32) -> (i32, i32) {
    %c0_i32 = arith.constant 0 : i32
    %c0_i32_0 = arith.constant 0 : i32
    %c0_i32_1 = arith.constant 0 : i32
    return %c0_i32, %c0_i32_0 : i32, i32
  }
  func.func @transform_8(%arg0: i32, %arg1: i32) -> (i32, i32) {
    %c0_i32 = arith.constant 0 : i32
    %c0_i32_0 = arith.constant 0 : i32
    %c0_i32_1 = arith.constant 0 : i32
    return %c0_i32, %c0_i32_0 : i32, i32
  }
  func.func @transform_9(%arg0: i32, %arg1: i32) -> (i32, i32) {
    %c0_i32 = arith.constant 0 : i32
    %c0_i32_0 = arith.constant 0 : i32
    %c0_i32_1 = arith.constant 0 : i32
    return %c0_i32, %c0_i32_0 : i32, i32
  }
  func.func @transform_10(%arg0: i32, %arg1: i32) -> (i32, i32) {
    %c0_i32 = arith.constant 0 : i32
    %c0_i32_0 = arith.constant 0 : i32
    %c0_i32_1 = arith.constant 0 : i32
    return %c0_i32, %c0_i32_0 : i32, i32
  }
  func.func @transform_11(%arg0: i32, %arg1: i32) -> (i32, i32, i32) {
    %c0_i32 = arith.constant 0 : i32
    %c0_i32_0 = arith.constant 0 : i32
    return %arg0, %arg1, %c0_i32 : i32, i32, i32
  }
}

</mosaic_0001>

<bundles_post_ra>
// kernel: tpu_custom_call.1
= control target key start
LH: loop header
LB: loop body
LE: loop exit
PB: predicated region body
PF: predicated region fallthrough
CT: control target
= control target key end

     0   :  { %s3127_s0 = inlined_call_operand.hbm [shape: f32[2,8,32], index: 0, kind: input, shape index: {}]   ;;  %s3128_s1 = inlined_call_operand.hbm [shape: f32[2,8,32], index: 1, kind: input, shape index: {}]   ;;  %s3129_s2 = inlined_call_operand.hbm [shape: f32[2,8,32], index: 2, kind: input, shape index: {}]   ;;  %s3130_s3 = inlined_call_operand.hbm [shape: f32[32,32], index: 3, kind: input, shape index: {}]   ;;  %s3131_s4 = inlined_call_operand.vmem [shape: f32[1,32], index: 4, kind: input, shape index: {}]   ;;  %s3132_s5 = inlined_call_operand.hbm [shape: f32[32,32], index: 5, kind: input, shape index: {}]   ;;  %s3133_s6 = inlined_call_operand.vmem [shape: f32[1,32], index: 6, kind: input, shape index: {}]   ;;  %s3134_s7 = inlined_call_operand.hbm [shape: f32[32,32], index: 7, kind: input, shape index: {}]   ;;  %s3135_s8 = inlined_call_operand.hbm [shape: f32[1,32], index: 8, kind: input, shape index: {}]   ;;  %s3136_s9 = inlined_call_operand.vmem [shape: f32[32,32], index: 9, kind: input, shape index: {}]   ;;  %s3137_s10 = inlined_call_operand.vmem [shape: f32[1,32], index: 10, kind: input, shape index: {}]   ;;  %s3138_s11 = inlined_call_operand.hbm [shape: f32[2,8,32], index: 11, kind: output, shape index: {}]  }
   0x1   :  { %3161 = sst [smem:[#allocation30_spill]] %s3127_s0 }
   0x2   :  { %3162 = sst [smem:[#allocation31_spill]] %s3128_s1 }
   0x3   :  { %3163 = sst [smem:[#allocation32_spill]] %s3131_s4 }
   0x4   :  { %3164 = sst [smem:[#allocation33_spill]] %s3133_s6 }
   0x5   :  { %3165 = sst [smem:[#allocation34_spill]] %s3136_s9 }
   0x6   :  { %3166 = sst [smem:[#allocation35_spill]] %s3137_s10 }
   0x7   :  { %3167 = sst [smem:[#allocation36_spill]] %s3138_s11 }
   0x8   :  { %16 = vsyncpa [#allocation8], 0 }
   0x9   :  { %18 = vsyncpa [#allocation8 + $0x1], 0 }
   0xa   :  { %19 = vsyncpa [#allocation11], 0 }
   0xb   :  { %20 = vsyncpa [#allocation14], 0 }
   0xc   :  { %21 = vsyncpa [#allocation17], 0 }
   0xd   :  { %22 = vsyncpa [#allocation9], 0 }
   0xe   :  { %24 = vsyncpa [#allocation9 + $0x1], 0  ;;  %s2594_s17 = smov 0   ;;  %s2596_s18 = smov 0  }
   0xf   :  { %s2598_s19 = smov 0   ;;  %s2600_s20 = smov 0  }
  0x10   :  { %s2602_s21 = smov 0   ;;  %s2604_s22 = smov 0  }
  0x11 LB: > { %3168 = sst [smem:[#allocation25_spill]] %s2491_s17  ;;  %s1874_s23 = sadd.s32 4294967295, %s2511_s22   ;;  %s2511_s22 = sphi %s2604_s22, %s30_s22   ;;  %s2507_s21 = sphi %s2602_s21, %s3211_s21   ;;  %s2503_s20 = sphi %s2600_s20, %s3210_s20   ;;  %s2499_s19 = sphi %s2598_s19, %s3209_s19   ;;  %s2495_s18 = sphi %s2596_s18, %s3208_s18   ;;  %s2491_s17 = sphi %s2594_s17, %s3207_s17  }
  0x12   : > { %s1875_s24 = sadd.s32 4294967294, %s2511_s22   ;;  %p64_p0 = scmp.ne.s32.totalorder %s2495_s18, %s2491_s17 }
  0x13   : > { %p2626_p1 = scmp.eq.s32.totalorder %s1874_s23, 0  ;;  %p2630_p2 = scmp.eq.s32.totalorder %s1874_s23, 1 }
  0x14   : > { %p316_p3 = scmp.eq.s32.totalorder %s1875_s24, 1  ;;  %p1876_p5 = scmp.ge.s32.totalorder %s2511_s22, 1 }
  0x15   : > { %s3169_s25 = scalar_select %p2626_p1, 1, 0 }
  0x16   : > { %s3171_s26 = scalar_select %p2630_p2, 1, 0 }
  0x17   : > { %3170 = sst [smem:[#allocation26_spill]] %s3169_s25  ;;  %p2636_p4 = por %p2626_p1, %p64_p0 }
  0x18   : > { %p2641_p6 = por %p316_p3, %p64_p0  ;;  %p323_p7 = scmp.lt.s32.totalorder %s2511_s22, 3 }
  0x19   : > { %s3172_s27 = scalar_select %p2636_p4, 1, 0 }
  0x1a   : > { %s3174_s28 = scalar_select %p2641_p6, 1, 0 }
  0x1b   : > { %3173 = sst [smem:[#allocation27_spill]] %s3172_s27  ;;  %s2646_s29 = sshll.u32 %s2503_s20, 7 }
  0x1c   : > { %3175 = sst [smem:[#allocation28_spill]] %s3174_s28  ;;  %p2648_p8 = pnand %p1876_p5, %p323_p7 }
  0x1d   : > { %s3178_s1 = sld [smem:[#allocation31_spill]]  ;;  %s2513_s15 = smov [#allocation10]  }
  0x1e   : > { %s3176_s30 = scalar_select %p2648_p8, 1, 0 }
  0x1f   : > { %s338_s16 = sshll.u32 %s2513_s15, 4  ;;  %p2085_p9 = pneg %p2648_p8  ;;  %s339_s16 = int_to_ptr.vmem [resolvable:$true] %s338_s16 }
  0x20   : > { %3177 = sst [smem:[#allocation29_spill]] %s3176_s30  ;;  %s2514_s24 = smov [#allocation13]  }
  0x21   : > { %p2663_p11 = pnand %p2085_p9, %p2636_p4  ;;  %p2669_p12 = pnand %p2085_p9, %p2626_p1 }
  0x22   : > { %s361_s12 = sshll.u32 %s2514_s24, 4  ;;  %s362_s12 = int_to_ptr.vmem [resolvable:$true] %s361_s12 }
  0x23   : > { %s2656_s14 = scalar_lea.hbm %s3178_s1, %s2646_s29  ;;  %p3148_p0 = pneg %p2663_p11 }
  0x24   : > { %s3179_s20 = scalar_select %p2663_p11, 1, 0 }
  0x25   : > { %s3180_s23 = scalar_select %p2669_p12, 1, 0 }
  0x26   : > { %s2215_s13 = scalar_lea.hbm %s2656_s14, 128  ;;  %s2220_s17 = scalar_lea.hbm %s3178_s1, 256 }
  0x27   : > { %p2216_p13 = scmp.ne.s32.totalorder %s2656_s14, %s2215_s13  ;;  %p2221_p7 = scmp.lt.u32.totalorder %s2656_s14, %s3178_s1 }
  0x28   : > { %p2222_p9 = scmp.lt.u32.totalorder %s2220_s17, %s2215_s13  ;;  %p2224_p6 = scmp.lt.u32.totalorder %s2215_s13, %s2656_s14 }
  0x29   : > { %p2218_p3 = pnand %p3148_p0, %p2216_p13 }
  0x2a   : > { %p2223_p10 = por %p2222_p9, %p2221_p7 }
  0x2b   : > { %p2219_p5 = pneg %p2218_p3 }
  0x2c   : > { %p2225_p1 = por %p2224_p6, %p2223_p10 }
  0x2e   : > { %p2226_p4 = pnand %p2225_p1, %p2219_p5 }
  0x30   : > { %2229 = shalt.err (!%p2226_p4)
}
  0x31   : > { %s2230_s24 = scalar_lea.vmem %s339_s16, 128  ;;  %p2238_p2 = scmp.lt.s32.totalorder %s339_s16, %s339_s16 }
  0x32   : > { %p2231_p8 = scmp.ne.s32.totalorder %s339_s16, %s2230_s24  ;;  %p2239_p12 = scmp.lt.s32.totalorder %s2230_s24, %s2230_s24 }
  0x34   : > { %p2233_p13 = pnand %p2231_p8, %p3148_p0  ;;  %p2240_p7 = por %p2239_p12, %p2238_p2 }
  0x36   : > { %p2234_p3 = pneg %p2233_p13 }
  0x38   : > { %p2241_p9 = pnand %p2240_p7, %p2234_p3 }
  0x3a   : > { %2244 = shalt.err (!%p2241_p9)
}
  0x3b   : > { %2088 = dma.hbm_to_vmem [thread:$0]  (!%p2663_p11), %s2656_s14, 128, %s339_s16, [#allocation11]  }
  0x3c   : > { %s2245_s17 = scalar_lea.hbm %s3130_s3, 512  ;;  %p3181_p4 = scmp.ne.s32.totalorder %s3180_s23, 0 }
  0x3d   : > { %p2246_p1 = scmp.ne.s32.totalorder %s3130_s3, %s2245_s17  ;;  %p2252_p10 = scmp.lt.u32.totalorder %s2245_s17, %s3130_s3 }
  0x3e   : > { %p2702_p6 = pneg %p3181_p4 }
  0x40   : > { %s3182_s15 = scalar_select %p2702_p6, 1, 0 }
  0x41   : > { %p2248_p2 = pnand %p2702_p6, %p2246_p1 }
  0x43   : > { %p2249_p8 = pneg %p2248_p2 }
  0x45   : > { %p2254_p12 = pnand %p2252_p10, %p2249_p8 }
  0x47   : > { %2257 = shalt.err (!%p2254_p12)
}
  0x48   : > { %s2258_s16 = scalar_lea.vmem %s362_s12, 512  ;;  %p2266_p7 = scmp.lt.s32.totalorder %s362_s12, %s362_s12 }
  0x49   : > { %p2259_p5 = scmp.ne.s32.totalorder %s362_s12, %s2258_s16  ;;  %p2267_p9 = scmp.lt.s32.totalorder %s2258_s16, %s2258_s16 }
  0x4b   : > { %p2261_p13 = pnand %p2259_p5, %p2702_p6  ;;  %p2268_p0 = por %p2267_p9, %p2266_p7 }
  0x4d   : > { %p2262_p3 = pneg %p2261_p13 }
  0x4f   : > { %p2269_p11 = pnand %p2268_p0, %p2262_p3 }
  0x51   : > { %2272 = shalt.err (!%p2269_p11)
}
  0x52   : > { %s2515_s10 = smov 128   ;;  %s2516_s11 = smov 8  }
  0x53   : > { %2094 = dma.hbm_to_vmem [thread:$0]  (!%p3181_p4), %s3130_s3, 512, %s362_s12, [#allocation14], %s2515_s10, %s2515_s10, %s2516_s11  }
  0x54   : > { %s2725_s14 = scalar_lea.hbm %s3129_s2, %s2646_s29  ;;  %s2517_s16 = smov [#allocation16]  }
  0x55   : > { %s393_s1 = sshll.u32 %s2517_s16, 4  ;;  %s2518_s9 = smov [#allocation12]   ;;  %s394_s1 = int_to_ptr.vmem [resolvable:$true] %s393_s1 }
  0x56   : > { %s351_s4 = sshll.u32 %s2518_s9, 4  ;;  %s2273_s27 = scalar_lea.hbm %s3134_s7, 512  ;;  %s352_s4 = int_to_ptr.vmem [resolvable:$true] %s351_s4 }
  0x57   : > { %p2274_p11 = scmp.ne.s32.totalorder %s3134_s7, %s2273_s27  ;;  %p2280_p2 = scmp.lt.u32.totalorder %s2273_s27, %s3134_s7 }
  0x59   : > { %p2276_p0 = pnand %p2274_p11, %p2702_p6 }
  0x5b   : > { %p2277_p1 = pneg %p2276_p0 }
  0x5d   : > { %p2282_p8 = pnand %p2280_p2, %p2277_p1 }
  0x5f   : > { %2285 = shalt.err (!%p2282_p8)
}
  0x60   : > { %s2286_s28 = scalar_lea.vmem %s394_s1, 512  ;;  %p2294_p13 = scmp.lt.s32.totalorder %s394_s1, %s394_s1 }
  0x61   : > { %p2287_p10 = scmp.ne.s32.totalorder %s394_s1, %s2286_s28  ;;  %p2295_p3 = scmp.lt.s32.totalorder %s2286_s28, %s2286_s28 }
  0x63   : > { %p2289_p12 = pnand %p2287_p10, %p2702_p6  ;;  %p2296_p7 = por %p2295_p3, %p2294_p13 }
  0x65   : > { %p2290_p5 = pneg %p2289_p12 }
  0x67   : > { %p2297_p9 = pnand %p2296_p7, %p2290_p5 }
  0x69   : > { %2300 = shalt.err (!%p2297_p9)
}
  0x6a   : > { %2100 = dma.hbm_to_vmem [thread:$0]  (!%p3181_p4), %s3134_s7, 512, %s394_s1, [#allocation17], %s2515_s10, %s2515_s10, %s2516_s11  }
  0x6b   : > { %s2301_s9 = scalar_lea.hbm %s2725_s14, 128  ;;  %p3183_p0 = scmp.ne.s32.totalorder %s3179_s20, 0 }
  0x6c   : > { %p2302_p11 = scmp.ne.s32.totalorder %s2725_s14, %s2301_s9  ;;  %s2306_s30 = scalar_lea.hbm %s3129_s2, 256 }
  0x6d   : > { %p3184_p1 = pneg %p3183_p0  ;;  %p2307_p10 = scmp.lt.u32.totalorder %s2725_s14, %s3129_s2 }
  0x6e   : > { %p2308_p12 = scmp.lt.u32.totalorder %s2306_s30, %s2301_s9  ;;  %p2310_p13 = scmp.lt.u32.totalorder %s2301_s9, %s2725_s14 }
  0x6f   : > { %p2304_p2 = pnand %p2302_p11, %p3184_p1 }
  0x70   : > { %p2309_p5 = por %p2308_p12, %p2307_p10 }
  0x71   : > { %p2305_p8 = pneg %p2304_p2 }
  0x72   : > { %p2311_p3 = por %p2310_p13, %p2309_p5 }
  0x74   : > { %p2312_p7 = pnand %p2311_p3, %p2305_p8 }
  0x76   : > { %2315 = shalt.err (!%p2312_p7)
}
  0x77   : > { %s2316_s1 = scalar_lea.vmem %s352_s4, 128  ;;  %p3185_p11 = pmov %p3184_p1 }
  0x78   : > { %p2317_p9 = scmp.ne.s32.totalorder %s352_s4, %s2316_s1  ;;  %p2324_p4 = scmp.lt.s32.totalorder %s352_s4, %s352_s4 }
  0x79   : > { %p2325_p6 = scmp.lt.s32.totalorder %s2316_s1, %s2316_s1 }
  0x7a   : > { %p2319_p1 = pnand %p2317_p9, %p3185_p11 }
  0x7b   : > { %p2326_p10 = por %p2325_p6, %p2324_p4 }
  0x7c   : > { %p2320_p2 = pneg %p2319_p1 }
  0x7e   : > { %p2327_p12 = pnand %p2326_p10, %p2320_p2 }
  0x80   : > { %2330 = shalt.err (!%p2327_p12)
}
  0x81   : > { %2091 = dma.hbm_to_vmem [thread:$0]  (!%p3183_p0), %s2725_s14, 128, %s352_s4, [#allocation11]  }
  0x82   : > { %s2519_s16 = smov [#allocation15]   ;;  %s2520_s17 = smov [#allocation18]  }
  0x83   : > { %s377_s12 = sshll.u32 %s2519_s16, 4  ;;  %s407_s28 = sshll.u32 %s2520_s17, 4  ;;  %s378_s12 = int_to_ptr.vmem [resolvable:$true] %s377_s12  ;;  %s408_s28 = int_to_ptr.vmem [resolvable:$true] %s407_s28 }
  0x84   : > { %s2331_s9 = scalar_lea.hbm %s3132_s5, 512  ;;  %p3186_p6 = scmp.ne.s32.totalorder %s3182_s15, 0 }
  0x85   : > { %p2332_p4 = scmp.ne.s32.totalorder %s3132_s5, %s2331_s9  ;;  %p2338_p0 = scmp.lt.u32.totalorder %s2331_s9, %s3132_s5 }
  0x87   : > { %p2334_p8 = pnand %p2332_p4, %p3186_p6 }
  0x89   : > { %p2335_p5 = pneg %p2334_p8 }
  0x8b   : > { %p2340_p13 = pnand %p2338_p0, %p2335_p5 }
  0x8d   : > { %2343 = shalt.err (!%p2340_p13)
}
  0x8e   : > { %s2344_s4 = scalar_lea.vmem %s378_s12, 512  ;;  %p2352_p11 = scmp.lt.s32.totalorder %s378_s12, %s378_s12 }
  0x8f   : > { %p2345_p3 = scmp.ne.s32.totalorder %s378_s12, %s2344_s4  ;;  %p2353_p1 = scmp.lt.s32.totalorder %s2344_s4, %s2344_s4 }
  0x91   : > { %p2347_p7 = pnand %p2345_p3, %p3186_p6  ;;  %p2354_p2 = por %p2353_p1, %p2352_p11 }
  0x93   : > { %p2348_p9 = pneg %p2347_p7 }
  0x95   : > { %p2355_p10 = pnand %p2354_p2, %p2348_p9 }
  0x97   : > { %2358 = shalt.err (!%p2355_p10)
}
  0x98   : > { %p3187_p12 = scmp.ne.s32.totalorder %s3180_s23, 0  ;;  %s2359_s16 = scalar_lea.hbm %s3135_s8, 16 }
  0x99   : > { %p2360_p4 = scmp.ne.s32.totalorder %s3135_s8, %s2359_s16  ;;  %p2366_p0 = scmp.lt.u32.totalorder %s2359_s16, %s3135_s8 }
  0x9a   : > { %2097 = dma.hbm_to_vmem [thread:$0]  (!%p3187_p12), %s3132_s5, 512, %s378_s12, [#allocation14], %s2515_s10, %s2515_s10, %s2516_s11  }
  0x9b   : > { %p2362_p8 = pnand %p2360_p4, %p3186_p6 }
  0x9d   : > { %p2363_p5 = pneg %p2362_p8 }
  0x9f   : > { %p2368_p13 = pnand %p2366_p0, %p2363_p5 }
  0xa1   : > { %2371 = shalt.err (!%p2368_p13)
}
  0xa2   : > { %s2372_s25 = scalar_lea.vmem %s408_s28, 16  ;;  %s2379_s10 = scalar_lea.vmem %s408_s28, 32 }
  0xa3   : > { %p2373_p3 = scmp.ne.s32.totalorder %s408_s28, %s2372_s25  ;;  %p2380_p11 = scmp.lt.s32.totalorder %s408_s28, %s408_s28 }
  0xa4   : > { %p2381_p1 = scmp.lt.s32.totalorder %s2379_s10, %s2372_s25 }
  0xa5   : > { %p2375_p7 = pnand %p2373_p3, %p3186_p6 }
  0xa6   : > { %p2382_p2 = por %p2381_p1, %p2380_p11 }
  0xa7   : > { %p2376_p9 = pneg %p2375_p7 }
  0xa9   : > { %p2383_p10 = pnand %p2382_p2, %p2376_p9 }
  0xab   : > { %2386 = shalt.err (!%p2383_p10)
}
  0xac   : > { %2103 = dma.hbm_to_vmem [thread:$0]  (!%p3187_p12), %s3135_s8, 16, %s408_s28, [#allocation17]  }
  0xad   : > { %s51_s15 = sadd.s32 1, %s2499_s19  ;;  %s42_s27 = sadd.s32 1, %s2507_s21 }
  0xae   : > { %p58_p6 = scmp.ne.s32.totalorder %s2499_s19, %s2495_s18  ;;  %p44_p4 = scmp.ge.s32.totalorder %s42_s27, 2 }
  0xaf   : > { %p59_p8 = scmp.eq.s32.totalorder %s2511_s22, 0  ;;  %p3188_p5 = scmp.ne.s32.totalorder %s3171_s26, 0 }
  0xb0   : > { %p2116_p13 = scmp.lt.s32.totalorder %s2511_s22, 2  ;;  %s3213_s27 = smov (%p44_p4, %s42_s27), 0 }
  0xb1   : > { %p2813_p0 = por %p3188_p5, %p58_p6  ;;  %p60_p3 = por %p59_p8, %p58_p6 }
  0xb2   : > { %s424_s20 = sand.u32 1, %s2499_s19   ;;  %s46_s30 = ssub.s32 %s2507_s21, %s3213_s27 }
  0xb3   : > { %p49_p7 = scmp.eq.s32.totalorder %s46_s30, 0  ;;  %s1884_s28 = sshll.u32 %s424_s20, 3 }
  0xb4   : > { %s1885_s4 = sshll.u32 %s2507_s21, 7  ;;  %s3190_s1 = sld [smem:[#allocation30_spill]] }
  0xb5   : > { %s2825_s14 = scalar_select %p49_p7, %s2499_s19, %s51_s15  }
  0xb6   : > { %s428_s16 = scalar_lea.vmem [#allocation7], %s1884_s28  ;;  %p2836_p12 = pnand %p2116_p13, %p60_p3 }
  0xb7   : > { %s436_s17 = sshll.u32 %s428_s16, 4  ;;  %s425_s6 = scalar_lea.sflag [#allocation8], %s424_s20  ;;  %s2832_s17 = int_to_ptr.vmem [resolvable:$true] %s436_s17 }
  0xb8   : > { %p2389_p11 = pneg %p2836_p12 }
  0xba   : > { %s2830_s26 = scalar_lea.hbm %s3190_s1, %s1885_s4  ;;  %s2392_s11 = scalar_lea.hbm %s3190_s1, 256 }
  0xbb   : > { %s2387_s9 = scalar_lea.hbm %s2830_s26, 128  ;;  %p2393_p10 = scmp.lt.u32.totalorder %s2830_s26, %s3190_s1 }
  0xbc   : > { %p2388_p9 = scmp.ne.s32.totalorder %s2830_s26, %s2387_s9  ;;  %p2394_p6 = scmp.lt.u32.totalorder %s2392_s11, %s2387_s9 }
  0xbd   : > { %p2396_p8 = scmp.lt.u32.totalorder %s2387_s9, %s2830_s26 }
  0xbe   : > { %p2390_p1 = pnand %p2389_p11, %p2388_p9  ;;  %p2395_p4 = por %p2394_p6, %p2393_p10 }
  0xc0   : > { %p2391_p2 = pneg %p2390_p1  ;;  %p2397_p5 = por %p2396_p8, %p2395_p4 }
  0xc2   : > { %p2398_p13 = pnand %p2397_p5, %p2391_p2 }
  0xc4   : > { %2401 = shalt.err (!%p2398_p13)
}
  0xc5   : > { %s2402_s20 = scalar_lea.vmem %s2832_s17, 128  ;;  %s2521_s30 = smov [#allocation7]  }
  0xc6   : > { %p2403_p3 = scmp.ne.s32.totalorder %s2832_s17, %s2402_s20  ;;  %s2407_s28 = sshll.u32 %s2521_s30, 4  ;;  %s2408_s28 = int_to_ptr.vmem [resolvable:$false] %s2407_s28 }
  0xc7   : > { %s2409_s4 = scalar_lea.vmem %s2408_s28, 256  ;;  %p2410_p1 = scmp.lt.s32.totalorder %s2832_s17, %s2408_s28 }
  0xc8   : > { %p2405_p7 = pnand %p2403_p3, %p2389_p11  ;;  %p2411_p10 = scmp.lt.s32.totalorder %s2409_s4, %s2402_s20 }
  0xca   : > { %p2406_p9 = pneg %p2405_p7  ;;  %p2412_p6 = por %p2411_p10, %p2410_p1 }
  0xcc   : > { %p2413_p4 = pnand %p2412_p6, %p2406_p9 }
  0xce   : > { %2416 = shalt.err (!%p2413_p4)
}
  0xcf   : > { %2107 = dma.hbm_to_vmem [thread:$0]  (!%p2836_p12), %s2830_s26, 128, %s2832_s17, %s425_s6  }
  0xd0   : > { %s3192_s13 = sld [smem:[#allocation29_spill]] }
  0xd6   : > { %p3193_p2 = scmp.ne.s32.totalorder %s3192_s13, 0 }
  0xd7   : > { %s3194_s24 = sld [smem:[#allocation27_spill]] (!%p3193_p2)  ;;  %s2868_s16 = sand.u32 (!%p3193_p2), 1, %s2495_s18  }
  0xd8   : > { %445 = sbr.rel (%p3193_p2) target bundleno = 1734 (0x6c6), region = 64  ;;  %s1887_s9 = sshll.u32 (!%p3193_p2), %s2868_s16, 3 }
  0xd9   : > { %s448_s25 = scalar_lea.sflag (!%p3193_p2), [#allocation8], %s2868_s16  ;;  %s2874_s10 = scalar_lea.vmem (!%p3193_p2), [#allocation7], %s1887_s9 }
  0xdd   : > { %p3195_p11 = scmp.ne.s32.totalorder (!%p3193_p2), %s3194_s24, 0 }
  0xdf   : > { %2470 = dma.done.wait (%p3195_p11), %s448_s25, 128  }
  0xe0   : > { %2472 = vsyncadd (%p3195_p11), %s448_s25, 4294967168 }
  0xe1   : > { %2474 = dma.done.wait (%p3195_p11), [#allocation11], 256  }
  0xe2   : > { %2476 = vsyncadd (%p3195_p11), [#allocation11], 4294967040  ;;  %s3196_s26 = sld [smem:[#allocation26_spill]] }
  0xe8   : > { %p3197_p12 = scmp.ne.s32.totalorder %s3196_s26, 0 }
  0xea   : > { %2478 = dma.done.wait (%p3197_p12), [#allocation14], 1024  }
  0xeb   : > { %2480 = vsyncadd (%p3197_p12), [#allocation14], 4294966272 }
  0xec   : > { %2482 = dma.done.wait (%p3197_p12), [#allocation17], 528  }
  0xed   : > { %2484 = vsyncadd (%p3197_p12), [#allocation17], 4294966768  ;;  %v2522_v0 = vmov 0.0|0.0   ;;  %vm2523_vm0 = vmmov 0   ;;  %v2524_v1 = vmov 0.0   ;;  %v519_v2 = vld [vmem:[#allocation15] sm:$0xff] }
  0xee   : > { %2037 = vmatprep.subr.bf16.mxu0 %v2522_v0  ;;  %1961 = vmatprep.mubr.msk.f32.mxu0 %vm2523_vm0, %v2524_v1  ;;  %v520_v3 = vld [vmem:[#allocation15 + $0x8] sm:$0xff]  ;;  %v521_v4 = vld [vmem:[#allocation15 + $0x10] sm:$0xff]  ;;  %v522_v6 = vld [vmem:[#allocation15 + $0x18] sm:$0xff]  ;;  %vm530_vm1 = vcmask 261120   ;;  %vm689_vm2 = vcmask 64512   ;;  %s3198_s6 = sld [smem:[#allocation33_spill]] }
  0xef   : > { %2043 = vmatprep.subr.bf16.mxu1 %v2522_v0  ;;  %1972 = vmatprep.mubr.msk.f32.mxu1 %vm2523_vm0, %v2524_v1  ;;  %v2038_v5 = vpack.c.bf16 %v520_v3, %v519_v2  ;;  %v2041_v7 = vpack.c.bf16 %v522_v6, %v521_v4  ;;  %v605_v8 = vld [vmem:[#allocation16] sm:$0xff]  ;;  %v606_v9 = vld [vmem:[#allocation16 + $0x8] sm:$0xff]  ;;  %v518_v13 = vld [vmem:[#allocation10] sm:$0xff]  ;;  %831 = vst.msk [vmem:[#allocation6] sm:$0xff] %vm689_vm2, %v2524_v1  ;;  %s2525_s11 = smov 104   ;;  %s2526_s12 = smov 120  }
  0xf0   : > { %v728_v10 = vld [vmem:[#allocation13] sm:$0xff]  ;;  %v729_v11 = vld [vmem:[#allocation13 + $0x8] sm:$0xff]  ;;  %v2044_v12 = vpack.c.bf16 %v606_v9, %v605_v8  ;;  %v730_v15 = vld [vmem:[#allocation13 + $0x10] sm:$0xff]  ;;  %832 = vst.msk [vmem:[#allocation6 + $0x8] sm:$0xff] %vm689_vm2, %v2524_v1  ;;  %s3199_s30 = sld [smem:[#allocation32_spill]]  ;;  %s2527_s28 = smov 112  }
  0xf1   : > { %2039 = vmatpush3.bf16.msra.mxu0 %v2038_v5  ;;  %v2050_v14 = vpack.c.bf16 %v729_v11, %v728_v10  ;;  %v731_v16 = vld [vmem:[#allocation13 + $0x18] sm:$0xff]  ;;  %v727_v18 = vld [vmem:[%s2874_s10] sm:$0xff]  ;;  %v607_v19 = vld [vmem:[#allocation16 + $0x10] sm:$0xff]  ;;  %833 = vst.msk [vmem:[#allocation6 + $0x10] sm:$0xff] %vm689_vm2, %v2524_v1  ;;  %vm821_vm3 = vcmask 7168   ;;  %v2528_v47 = vmov -inf  }
  0xf2   : > { %2040 = vmatprep.subr.bf16.mxu0 %v2522_v0  ;;  %2045 = vmatpush3.bf16.msra.mxu1 %v2044_v12  ;;  %v2053_v17 = vpack.c.bf16 %v731_v16, %v730_v15  ;;  %v608_v20 = vld [vmem:[#allocation16 + $0x18] sm:$0xff]  ;;  %834 = vst.msk [vmem:[#allocation6 + $0x18] sm:$0xff] %vm689_vm2, %v2524_v1  ;;  %v1895_v33 = vld [vmem:[#allocation18] ss:$0 sm:$0xff]  ;;  %v2529_v51 = vmov 0   ;;  %s3200_s24 = sld [smem:[#allocation34_spill]] }
  0xf3   : > { %2046 = vmatprep.subr.bf16.mxu1 %v2522_v0  ;;  %v2047_v21 = vpack.c.bf16 %v608_v20, %v607_v19  ;;  %v604_v22 = vld [vmem:[#allocation12] sm:$0xff]  ;;  %822 = vst.msk [vmem:[#allocation4] sm:$0xff] %vm821_vm3, %v2528_v47  ;;  %823 = vst.msk [vmem:[#allocation4 + $0x8] sm:$0xff] %vm821_vm3, %v2528_v47  ;;  %2189 = vset.pattern.permute.xlu1 %v2529_v51  ;;  %s2532_s15 = smov 24   ;;  %vm1623_vm4 = vcmask 130048   ;;  %vm1625_vm5 = vcmask 195584  }
  0xf4   : > { %v1893_v23 = vld [vmem:[%s3198_s6] ss:$0 sm:$0xff]  ;;  %824 = vst.msk [vmem:[#allocation4 + $0x10] sm:$0xff] %vm821_vm3, %v2528_v47  ;;  %825 = vst.msk [vmem:[#allocation4 + $0x18] sm:$0xff] %vm821_vm3, %v2528_v47  ;;  %2190 = vset.pattern.permute.xlu0 %v2529_v51  ;;  %s513_s4 = scalar_lea.vmem [#allocation19], %s1887_s9  ;;  %s3202_s26 = sld [smem:[#allocation36_spill]] }
  0xf5   : > { %2042 = vmatpush3.bf16.msra.mxu0 %v2041_v7  ;;  %826 = vst.msk [vmem:[#allocation5] sm:$0xff] %vm821_vm3, %v2524_v1  ;;  %827 = vst.msk [vmem:[#allocation5 + $0x8] sm:$0xff] %vm821_vm3, %v2524_v1  ;;  %s1727_s13 = sshll.u32 %s513_s4, 4  ;;  %s1713_s0 = scalar_lea.sflag [#allocation9], %s2868_s16  ;;  %s3079_s13 = int_to_ptr.vmem [resolvable:$true] %s1727_s13 }
  0xf6   : > { %2049 = vmatprep.subr.bf16.mxu0 %v2522_v0  ;;  %2048 = vmatpush3.bf16.msra.mxu1 %v2047_v21  ;;  %v1897_v27 = vld [vmem:[%s3199_s30] ss:$0 sm:$0xff]  ;;  %828 = vst.msk [vmem:[#allocation5 + $0x10] sm:$0xff] %vm821_vm3, %v2524_v1  ;;  %829 = vst.msk [vmem:[#allocation5 + $0x18] sm:$0xff] %vm821_vm3, %v2524_v1  ;;  %s2417_s6 = scalar_lea.vmem %s3079_s13, 128  ;;  %s2533_s9 = smov [#allocation19]  }
  0xf7   : > { %1986 = vmatprep.subr.mxu1 %v2524_v1  ;;  %p2418_p8 = scmp.ne.s32.totalorder %s3079_s13, %s2417_s6 }
  0xf8   : > { %1962 = vmatmul.mubr.msk.f32.vlgmr.msra.gmra.mrb[0].mxu0 %vm530_vm1, %v518_v13 }
  0xf9   : > { %2051 = vmatpush3.bf16.msra.mxu0 %v2050_v14  ;;  %1983 = vmatprep.mubr.msk.f32.mxu0 %vm2523_vm0, %v2524_v1  ;;  %p2419_p5 = pnand %p2418_p8, %p2813_p0 }
  0xfa   : > { %2052 = vmatprep.subr.bf16.mxu0 %v2522_v0  ;;  %1973 = vmatmul.mubr.msk.f32.vlgmr.msra.gmra.mrb[0].mxu1 %vm530_vm1, %v604_v22  ;;  %v2979_v61 = vld [vmem:[#allocation4] sm:$0xff]  ;;  %v2989_v3 = vld [vmem:[#allocation4 + $0x8] sm:$0xff]  ;;  %s3077_s17 = scalar_lea.hbm %s3202_s26, %s2646_s29 }
  0xfb   : > { %1988 = vmatprep.mubr.msk.f32.mxu1 %vm2523_vm0, %v2524_v1  ;;  %v2994_v6 = vld [vmem:[#allocation4 + $0x10] sm:$0xff]  ;;  %v3004_v10 = vld [vmem:[#allocation4 + $0x18] sm:$0xff]  ;;  %p2420_p13 = pneg %p2419_p5 }
  0xfd   : > { %2054 = vmatpush3.bf16.msra.mxu0 %v2053_v17 }
  0xfe   : > { %2006 = vmatprep.subr.mxu0 %v2524_v1 }
 0x100   : > { %1984 = vmatmul.mubr.msk.f32.vlgmr.msra.gmra.mrb[2].mxu0 %vm530_vm1, %v727_v18 }
 0x101   : > { %2008 = vmatprep.mubr.msk.f32.mxu0 %vm2523_vm0, %v2524_v1 }
 0x1cb   : > { %v600_v24 = vpop.f32.mrb[0].mxu0 }
 0x1cc   : > { %v601_v25 = vadd.f32 %v1893_v23, %v600_v24  ;;  %v1963_v26 = vpop.f32.mrb[1].mxu0 }
 0x1cd   : > { %v685_v34 = vpop.f32.mrb[0].mxu1 }
 0x1ce   : > { %690 = vst.msk [vmem:[#allocation2] sm:$0xff] %vm689_vm2, %v601_v25  ;;  %716 = vrot.lane.b32.xlu1 %v601_v25, %s2525_s11  ;;  %693 = vrot.lane.b32.xlu0 %v601_v25, %s2526_s12  ;;  %v2940_v35 = vadd.f32 %v1895_v33, %v685_v34  ;;  %v1974_v36 = vpop.f32.mrb[1].mxu1 }
 0x1d0   : > { %691 = vst.msk [vmem:[#allocation3] sm:$0xff] %vm689_vm2, %v2940_v35 }
 0x1d2   : > { %705 = vrot.lane.b32.xlu0 %v601_v25, %s2527_s28 }
 0x1d3   : > { %v809_v28 = vpop.f32.mrb[2].mxu0 }
 0x1d4   : > { %v810_v29 = vadd.f32 %v1897_v27, %v809_v28  ;;  %v1985_v30 = vpop.f32.mrb[3].mxu0 }
 0x1d5   : > { %v835_v31 = vld [vmem:[#allocation2] sm:$0xff] }
 0x1d6   : > { %v813_v32 = vmul.f32 0.35355338, %v810_v29  ;;  %1987 = vmatpush3.xpose.msk.msra.mxu1 %vm689_vm2, %v835_v31 }
 0x1d7   : > { %1991 = vmatprep.subr.mxu1 %v2524_v1  ;;  %v839_v46 = vld [vmem:[#allocation3] sm:$0xff] }
 0x1d8   : > { %815 = vrot.lane.b32.xlu1 %v813_v32, %s2526_s12  ;;  %817 = vrot.lane.b32.xlu0 %v813_v32, %s2527_s28 }
 0x1d9   : > { %1989 = vmatmul.mubr.msk.f32.vlgmr.msra.gmra.mrb[2].mxu1 %vm689_vm2, %v813_v32  ;;  %2007 = vmatpush3.msra.mxu0 %v839_v46 }
 0x1da   : > { %1993 = vmatprep.mubr.msk.f32.mxu1 %vm2523_vm0, %v2524_v1  ;;  %2016 = vmatprep.subr.mxu0 %v2524_v1 }
 0x1dc   : > { %819 = vrot.lane.b32.xlu1 %v813_v32, %s2525_s11 }
 0x240   : > { %v717_v37 = vpop.permute.xlu1 %716  ;;  %v694_v38 = vpop.permute.xlu0 %693 }
 0x241   : > { %721 = vst.msk [vmem:[#allocation2 + $0x18] sm:$0xff] %vm689_vm2, %v717_v37  ;;  %698 = vst.msk [vmem:[#allocation2 + $0x8] sm:$0xff] %vm689_vm2, %v694_v38 }
 0x244   : > { %v706_v39 = vpop.permute.xlu0 %705 }
 0x245   : > { %710 = vst.msk [vmem:[#allocation2 + $0x10] sm:$0xff] %vm689_vm2, %v706_v39 }
 0x248   : > { %v836_v40 = vld [vmem:[#allocation2 + $0x8] sm:$0xff]  ;;  %v838_v44 = vld [vmem:[#allocation2 + $0x18] sm:$0xff] }
 0x249   : > { %1992 = vmatpush3.xpose.msk.msra.mxu1 %vm689_vm2, %v836_v40 }
 0x24a   : > { %v816_v41 = vpop.permute.xlu1 %815  ;;  %1996 = vmatprep.subr.mxu1 %v2524_v1  ;;  %v818_v43 = vpop.permute.xlu0 %817 }
 0x24c   : > { %1994 = vmatmul.mubr.msk.f32.vlgmr.msra.gmra.mrb[4].mxu1 %vm689_vm2, %v816_v41  ;;  %v837_v42 = vld [vmem:[#allocation2 + $0x10] sm:$0xff] }
 0x24d   : > { %1997 = vmatpush3.xpose.msk.msra.mxu1 %vm689_vm2, %v837_v42  ;;  %1998 = vmatprep.mubr.msk.f32.mxu1 %vm2523_vm0, %v2524_v1 }
 0x24e   : > { %2001 = vmatprep.subr.mxu1 %v2524_v1  ;;  %v820_v45 = vpop.permute.xlu1 %819 }
 0x250   : > { %1999 = vmatmul.mubr.msk.f32.vlgmr.msra.gmra.mrb[6].mxu1 %vm689_vm2, %v818_v43 }
 0x251   : > { %2002 = vmatpush3.xpose.msk.msra.mxu1 %vm689_vm2, %v838_v44  ;;  %2003 = vmatprep.mubr.msk.f32.mxu1 %vm2523_vm0, %v2524_v1 }
 0x252   : > { %2011 = vmatprep.subr.mxu1 %v2524_v1 }
 0x254   : > { %2004 = vmatmul.mubr.msk.f32.vlgmr.msra.gmra.mrb[8].mxu1 %vm689_vm2, %v820_v45 }
 0x255   : > { %2013 = vmatprep.mubr.msk.f32.mxu1 %vm2523_vm0, %v2524_v1 }
 0x2ac   : > { %v914_v48 = vpop.f32.mrb[2].mxu1 }
 0x2ad   : > { %v1990_v49 = vpop.f32.mrb[3].mxu1  ;;  %v1147_v50 = vsel %vm689_vm2, %v914_v48, -inf }
 0x2ae   : > { %1148 = vmax.xlane.f32.xlu0 %v1147_v50  ;;  %v1208_v49 = vld [vmem:[#allocation5 + $0x8] sm:$0xff] }
 0x31f   : > { %v989_v52 = vpop.f32.mrb[4].mxu1 }
 0x320   : > { %v1995_v53 = vpop.f32.mrb[5].mxu1  ;;  %v1150_v54 = vsel %vm689_vm2, %v989_v52, -inf }
 0x321   : > { %1151 = vmax.xlane.f32.xlu1 %v1150_v54 }
 0x323   : > { %v1064_v55 = vpop.f32.mrb[6].mxu1 }
 0x324   : > { %v2000_v56 = vpop.f32.mrb[7].mxu1  ;;  %v1153_v57 = vsel %vm689_vm2, %v1064_v55, -inf }
 0x325   : > { %1154 = vmax.xlane.f32.xlu0 %v1153_v57  ;;  %v1210_v56 = vld [vmem:[#allocation5 + $0x18] sm:$0xff] }
 0x327   : > { %v1139_v58 = vpop.f32.mrb[8].mxu1 }
 0x328   : > { %v2005_v59 = vpop.f32.mrb[9].mxu1  ;;  %v1156_v60 = vsel %vm689_vm2, %v1139_v58, -inf }
 0x329   : > { %1157 = vmax.xlane.f32.xlu0 %v1156_v60 }
 0x33b   : > { %v1149_v62 = vpop.xlane.xlu0 %1148 }
 0x33c   : > { %v2982_v63 = vmax.f32 %v2979_v61, %v1149_v62  ;;  %v1207_v62 = vld [vmem:[#allocation5] sm:$0xff] }
 0x33e   : > { %v1163_v2 = vsub.f32 %v2979_v61, %v2982_v63  ;;  %1563 = vst.msk [vmem:[#allocation4] sm:$0xff] %vm821_vm3, %v2982_v63  ;;  %1177 = vperm.xlu1 %2189, %v2982_v63  }
 0x3ae   : > { %v1152_v4 = vpop.xlane.xlu1 %1151 }
 0x3af   : > { %v2992_v5 = vmax.f32 %v2989_v3, %v1152_v4 }
 0x3b1   : > { %v1164_v7 = vsub.f32 %v2989_v3, %v2992_v5  ;;  %1564 = vst.msk [vmem:[#allocation4 + $0x8] sm:$0xff] %vm821_vm3, %v2992_v5  ;;  %1182 = vperm.xlu0 %2190, %v2992_v5  }
 0x3b2   : > { %v1155_v8 = vpop.xlane.xlu0 %1154 }
 0x3b3   : > { %v3002_v9 = vmax.f32 %v2994_v6, %v1155_v8  ;;  %v1169_v39 = vmul.f32 1.442695, %v1164_v7 }
 0x3b5   : > { %v1165_v11 = vsub.f32 %v2994_v6, %v3002_v9  ;;  %1565 = vst.msk [vmem:[#allocation4 + $0x10] sm:$0xff] %vm821_vm3, %v3002_v9  ;;  %1187 = vperm.xlu1 %2189, %v3002_v9  }
 0x3b6   : > { %v1158_v12 = vpop.xlane.xlu0 %1157 }
 0x3b7   : > { %v1162_v13 = vmax.f32 %v3004_v10, %v1158_v12  ;;  %v1171_v42 = vmul.f32 1.442695, %v1165_v11  ;;  %v1236_v12 = vld [vmem:[#allocation6 + $0x8] sm:$0xff] }
 0x3b9   : > { %v1166_v14 = vsub.f32 %v3004_v10, %v1162_v13  ;;  %1566 = vst.msk [vmem:[#allocation4 + $0x18] sm:$0xff] %vm821_vm3, %v1162_v13  ;;  %1192 = vperm.xlu1 %2189, %v1162_v13  }
 0x3bb   : > { %v1173_v43 = vmul.f32 1.442695, %v1166_v14 }
 0x3bd   : > { %v1178_v15 = vpop.permute.xlu1 %1177  ;;  %700 = vrot.lane.b32.xlu1 %v2940_v35, %s2526_s12  ;;  %s2531_s12 = smov 16  }
 0x3be   : > { %v1195_v16 = vsub.f32 %v914_v48, %v1178_v15  ;;  %v1167_v48 = vmul.f32 1.442695, %v1163_v2 }
 0x3c0   : > { %v1199_v17 = vmul.f32 1.442695, %v1195_v16  ;;  %v1237_v16 = vld [vmem:[#allocation6 + $0x10] sm:$0xff] }
 0x3c1   : > { %711 = vrot.lane.b32.xlu1 %v2940_v35, %s2527_s28  ;;  %s3201_s28 = sld [smem:[#allocation35_spill]] }
 0x3c2   : > { %2191 = vpow2.f32 %v1199_v17 }
 0x3c5   : > { %722 = vrot.lane.b32.xlu1 %v2940_v35, %s2525_s11  ;;  %s2530_s11 = smov 8  }
 0x3cc   : > { %v2192_v18 = vpop.eup %2191 }
 0x3cd   : > { %2009 = vmatmul.mubr.msk.f32.vlgmr.msra.gmra.mrb[4].mxu0 %vm689_vm2, %v2192_v18  ;;  %v1215_v41 = vsel %vm689_vm2, %v2192_v18, 0.0 }
 0x3ce   : > { %2018 = vmatprep.mubr.msk.f32.mxu0 %vm2523_vm0, %v2524_v1 }
 0x430   : > { %v1183_v19 = vpop.permute.xlu0 %1182 }
 0x431   : > { %v1196_v20 = vsub.f32 %v989_v52, %v1183_v19  ;;  %v1209_v52 = vld [vmem:[#allocation5 + $0x10] sm:$0xff] }
 0x433   : > { %v1201_v21 = vmul.f32 1.442695, %v1196_v20 }
 0x434   : > { %v1188_v22 = vpop.permute.xlu1 %1187 }
 0x435   : > { %2193 = vpow2.f32 %v1201_v21  ;;  %v1197_v23 = vsub.f32 %v1064_v55, %v1188_v22  ;;  %v1238_v21 = vld [vmem:[#allocation6 + $0x18] sm:$0xff] }
 0x437   : > { %v1203_v24 = vmul.f32 1.442695, %v1197_v23 }
 0x438   : > { %v1193_v25 = vpop.permute.xlu1 %1192 }
 0x439   : > { %2195 = vpow2.f32 %v1203_v24  ;;  %v1198_v26 = vsub.f32 %v1139_v58, %v1193_v25 }
 0x43b   : > { %v1205_v27 = vmul.f32 1.442695, %v1198_v26 }
 0x43c   : > { %v701_v28 = vpop.permute.xlu1 %700 }
 0x43d   : > { %2197 = vpow2.f32 %v1205_v27  ;;  %704 = vst.msk [vmem:[#allocation3 + $0x8] sm:$0xff] %vm689_vm2, %v701_v28 }
 0x43e   : > { %2199 = vpow2.f32 %v1169_v39 }
 0x43f   : > { %v2194_v29 = vpop.eup %2193  ;;  %2201 = vpow2.f32 %v1171_v42  ;;  %v1235_v42 = vld [vmem:[#allocation6] sm:$0xff] }
 0x440   : > { %v712_v30 = vpop.permute.xlu1 %711  ;;  %v1218_v31 = vsel %vm689_vm2, %v2194_v29, 0.0  ;;  %2203 = vpow2.f32 %v1173_v43 }
 0x441   : > { %715 = vst.msk [vmem:[#allocation3 + $0x10] sm:$0xff] %vm689_vm2, %v712_v30  ;;  %1219 = vadd.xlane.f32.xlu1 %v1218_v31  ;;  %2205 = vpow2.f32 %v1167_v48  ;;  %v1627_v30 = vld [vmem:[%s3200_s24] sm:$0xff]  ;;  %v1628_v31 = vld [vmem:[%s3200_s24 + $0x8] sm:$0xff] }
 0x443   : > { %v2196_v32 = vpop.eup %2195 }
 0x444   : > { %v723_v33 = vpop.permute.xlu1 %722  ;;  %v1221_v34 = vsel %vm689_vm2, %v2196_v32, 0.0  ;;  %v840_v35 = vld [vmem:[#allocation3 + $0x8] sm:$0xff] }
 0x445   : > { %726 = vst.msk [vmem:[#allocation3 + $0x18] sm:$0xff] %vm689_vm2, %v723_v33  ;;  %1222 = vadd.xlane.f32.xlu0 %v1221_v34  ;;  %2012 = vmatpush3.msra.mxu1 %v840_v35  ;;  %v1629_v33 = vld [vmem:[%s3200_s24 + $0x10] sm:$0xff]  ;;  %v1630_v34 = vld [vmem:[%s3200_s24 + $0x18] sm:$0xff] }
 0x446   : > { %2014 = vmatmul.mubr.msk.f32.vlgmr.msra.gmra.mrb[10].mxu1 %vm689_vm2, %v2194_v29  ;;  %2021 = vmatprep.subr.mxu1 %v2524_v1  ;;  %v2059_v35 = vpack.c.bf16 %v1630_v34, %v1629_v33 }
 0x447   : > { %v2198_v36 = vpop.eup %2197  ;;  %2023 = vmatprep.mubr.msk.f32.mxu1 %vm2523_vm0, %v2524_v1 }
 0x448   : > { %v841_v37 = vld [vmem:[#allocation3 + $0x10] sm:$0xff]  ;;  %v1224_v38 = vsel %vm689_vm2, %v2198_v36, 0.0  ;;  %v2200_v44 = vpop.eup %2199 }
 0x449   : > { %2017 = vmatpush3.msra.mxu0 %v841_v37  ;;  %1225 = vadd.xlane.f32.xlu1 %v1224_v38  ;;  %v2202_v45 = vpop.eup %2201  ;;  %v1212_v50 = vmul.f32 %v2200_v44, %v1208_v49 }
 0x44a   : > { %2019 = vmatmul.mubr.msk.f32.vlgmr.msra.gmra.mrb[6].mxu0 %vm689_vm2, %v2196_v32  ;;  %2055 = vmatprep.subr.bf16.mxu0 %v2522_v0  ;;  %v2204_v46 = vpop.eup %2203  ;;  %v1213_v54 = vmul.f32 %v2202_v45, %v1209_v52  ;;  %v2056_v32 = vpack.c.bf16 %v1628_v31, %v1627_v30 }
 0x44b   : > { %2034 = vmatprep.mubr.msk.f32.mxu0 %vm2523_vm0, %v2524_v1  ;;  %v1214_v58 = vmul.f32 %v2204_v46, %v1210_v56  ;;  %v2206_v59 = vpop.eup %2205  ;;  %v1911_v56 = vld [vmem:[%s3201_s28] ss:$0 sm:$0xff] }
 0x44c   : > { %v842_v40 = vld [vmem:[#allocation3 + $0x18] sm:$0xff]  ;;  %v1211_v2 = vmul.f32 %v2206_v59, %v1207_v62  ;;  %2057 = vmatpush3.bf16.msra.mxu0 %v2056_v32 }
 0x44d   : > { %2022 = vmatpush3.msra.mxu1 %v842_v40  ;;  %1216 = vadd.xlane.f32.xlu1 %v1215_v41 }
 0x44e   : > { %2024 = vmatmul.mubr.msk.f32.vlgmr.msra.gmra.mrb[12].mxu1 %vm689_vm2, %v2198_v36  ;;  %2058 = vmatprep.subr.bf16.mxu0 %v2522_v0 }
 0x450   : > { %2060 = vmatpush3.bf16.msra.mxu0 %v2059_v35 }
 0x45b   : > { %1246 = vperm.xlu0 %2190, %v2200_v44  }
 0x45e   : > { %1251 = vperm.xlu1 %2189, %v2202_v45  }
 0x462   : > { %1256 = vperm.xlu1 %2189, %v2204_v46  }
 0x4a0   : > { %v3039_v1 = vpop.f32.mrb[4].mxu0 }
 0x4a1   : > { %v2010_v47 = vpop.f32.mrb[5].mxu0 }
 0x4ce   : > { %v1220_v51 = vpop.xlane.xlu1 %1219 }
 0x4cf   : > { %v1228_v53 = vadd.f32 %v1220_v51, %v1212_v50 }
 0x4d1   : > { %1232 = vst.msk [vmem:[#allocation5 + $0x8] sm:$0xff] %vm821_vm3, %v1228_v53 }
 0x4d2   : > { %v1223_v55 = vpop.xlane.xlu0 %1222 }
 0x4d3   : > { %v1229_v57 = vadd.f32 %v1223_v55, %v1213_v54 }
 0x4d5   : > { %1233 = vst.msk [vmem:[#allocation5 + $0x10] sm:$0xff] %vm821_vm3, %v1229_v57 }
 0x4d6   : > { %v1226_v60 = vpop.xlane.xlu1 %1225 }
 0x4d7   : > { %v1230_v61 = vadd.f32 %v1226_v60, %v1214_v58 }
 0x4d8   : > { %v1568_v63 = vld [vmem:[#allocation5 + $0x8] sm:$0xff] }
 0x4d9   : > { %1234 = vst.msk [vmem:[#allocation5 + $0x18] sm:$0xff] %vm821_vm3, %v1230_v61  ;;  %2207 = vrcp.f32 %v1568_v63 }
 0x4da   : > { %v1217_v3 = vpop.xlane.xlu1 %1216  ;;  %v1247_v13 = vpop.permute.xlu0 %1246 }
 0x4db   : > { %v1227_v4 = vadd.f32 %v1217_v3, %v1211_v2  ;;  %v1260_v15 = vmul.f32 %v1247_v13, %v1236_v12 }
 0x4dc   : > { %v1569_v5 = vld [vmem:[#allocation5 + $0x10] sm:$0xff] }
 0x4dd   : > { %1231 = vst.msk [vmem:[#allocation5] sm:$0xff] %vm821_vm3, %v1227_v4  ;;  %2209 = vrcp.f32 %v1569_v5 }
 0x4de   : > { %v1252_v14 = vpop.permute.xlu1 %1251 }
 0x4df   : > { %v1261_v20 = vmul.f32 %v1252_v14, %v1237_v16 }
 0x4e0   : > { %v1570_v6 = vld [vmem:[#allocation5 + $0x18] sm:$0xff] }
 0x4e1   : > { %2211 = vrcp.f32 %v1570_v6 }
 0x4e2   : > { %v1257_v22 = vpop.permute.xlu1 %1256 }
 0x4e3   : > { %v2208_v7 = vpop.eup %2207  ;;  %v1262_v26 = vmul.f32 %v1257_v22, %v1238_v21 }
 0x4e4   : > { %1590 = vperm.xlu0 %2190, %v2208_v7   ;;  %v1567_v8 = vld [vmem:[#allocation5] sm:$0xff] }
 0x4e5   : > { %2213 = vrcp.f32 %v1567_v8 }
 0x4e7   : > { %v2210_v9 = vpop.eup %2209 }
 0x4e8   : > { %1598 = vperm.xlu1 %2189, %v2210_v9  }
 0x4eb   : > { %v2212_v10 = vpop.eup %2211 }
 0x4ec   : > { %1606 = vperm.xlu0 %2190, %v2212_v10   ;;  %1241 = vperm.xlu1 %2189, %v2206_v59  }
 0x4ef   : > { %v2214_v11 = vpop.eup %2213 }
 0x4f0   : > { %1582 = vperm.xlu0 %2190, %v2214_v11  }
 0x519   : > { %v1405_v17 = vpop.f32.mrb[10].mxu1 }
 0x51a   : > { %v1556_v18 = vadd.f32 %v1405_v17, %v1260_v15  ;;  %v2015_v19 = vpop.f32.mrb[11].mxu1 }
 0x51c   : > { %1560 = vst.msk [vmem:[#allocation6 + $0x8] sm:$0xff] %vm689_vm2, %v1556_v18 }
 0x51d   : > { %v1478_v23 = vpop.f32.mrb[6].mxu0 }
 0x51e   : > { %v1557_v24 = vadd.f32 %v1478_v23, %v1261_v20  ;;  %v2020_v25 = vpop.f32.mrb[7].mxu0 }
 0x520   : > { %1561 = vst.msk [vmem:[#allocation6 + $0x10] sm:$0xff] %vm689_vm2, %v1557_v24 }
 0x521   : > { %v1551_v27 = vpop.f32.mrb[12].mxu1 }
 0x522   : > { %v1558_v28 = vadd.f32 %v1551_v27, %v1262_v26  ;;  %v2025_v29 = vpop.f32.mrb[13].mxu1 }
 0x523   : > { %v1587_v37 = vld [vmem:[#allocation6 + $0x8] sm:$0xff] }
 0x524   : > { %1562 = vst.msk [vmem:[#allocation6 + $0x18] sm:$0xff] %vm689_vm2, %v1558_v28 }
 0x527   : > { %v1595_v40 = vld [vmem:[#allocation6 + $0x10] sm:$0xff] }
 0x52b   : > { %v1603_v44 = vld [vmem:[#allocation6 + $0x18] sm:$0xff] }
 0x563   : > { %v1591_v36 = vpop.permute.xlu0 %1590 }
 0x564   : > { %v1593_v38 = vmul.f32 %v1591_v36, %v1587_v37 }
 0x566   : > { %1611 = vrot.lane.b32.xlu1 %v1593_v38, %s2530_s11  ;;  %s2421_s11 = sshll.u32 %s2533_s9, 4  ;;  %s2422_s11 = int_to_ptr.vmem [resolvable:$false] %s2421_s11 }
 0x567   : > { %v1599_v39 = vpop.permute.xlu1 %1598  ;;  %p2424_p3 = scmp.lt.s32.totalorder %s3079_s13, %s2422_s11 }
 0x568   : > { %v1601_v41 = vmul.f32 %v1599_v39, %v1595_v40 }
 0x56a   : > { %1615 = vrot.lane.b32.xlu0 %v1601_v41, %s2531_s12  ;;  %s2423_s12 = scalar_lea.vmem %s2422_s11, 256 }
 0x56b   : > { %v1242_v0 = vpop.permute.xlu1 %1241  ;;  %v1607_v43 = vpop.permute.xlu0 %1606  ;;  %p2425_p7 = scmp.lt.s32.totalorder %s2423_s12, %s2417_s6 }
 0x56c   : > { %v1259_v45 = vmul.f32 %v1242_v0, %v1235_v42  ;;  %v1609_v46 = vmul.f32 %v1607_v43, %v1603_v44 }
 0x56d   : > { %p2426_p9 = por %p2425_p7, %p2424_p3 }
 0x56e   : > { %v1555_v47 = vadd.f32 %v3039_v1, %v1259_v45  ;;  %1619 = vrot.lane.b32.xlu1 %v1609_v46, %s2532_s15 }
 0x56f   : > { %v1583_v48 = vpop.permute.xlu0 %1582  ;;  %p2427_p1 = pnand %p2426_p9, %p2420_p13 }
 0x570   : > { %1559 = vst.msk [vmem:[#allocation6] sm:$0xff] %vm689_vm2, %v1555_v47 }
 0x577   : > { %v1579_v49 = vld [vmem:[#allocation6] sm:$0xff] }
 0x578   : > { %v1585_v51 = vmul.f32 %v1583_v48, %v1579_v49 }
 0x5d8   : > { %v1612_v50 = vpop.permute.xlu1 %1611 }
 0x5d9   : > { %v1622_v53 = vsel %vm689_vm2, %v1585_v51, %v1612_v50 }
 0x5dc   : > { %v1616_v52 = vpop.permute.xlu0 %1615 }
 0x5dd   : > { %v1624_v54 = vsel %vm1623_vm4, %v1622_v53, %v1616_v52 }
 0x5e0   : > { %v1620_v55 = vpop.permute.xlu1 %1619 }
 0x5e1   : > { %v1626_v1 = vsel %vm1625_vm5, %v1624_v54, %v1620_v55 }
 0x5e2   : > { %2035 = vmatmul.mubr.msk.f32.vlgmr.msra.gmra.mrb[8].mxu0 %vm530_vm1, %v1626_v1 }
 0x6b5   : > { %v1707_v57 = vpop.f32.mrb[8].mxu0 }
 0x6b6   : > { %v1708_v58 = vadd.f32 %v1911_v56, %v1707_v57  ;;  %v2036_v59 = vpop.f32.mrb[9].mxu0 }
 0x6b8   : > { %1711 = vst.msk [vmem:[%s513_s4] sm:$0xff] %vm530_vm1, %v1708_v58 }
 0x6b9   : > { %2430 = shalt.err (!%p2427_p1)
}
 0x6ba   : > { %s2431_s29 = scalar_lea.hbm %s3077_s17, 128  ;;  %s2435_s20 = scalar_lea.hbm %s3202_s26, 256 }
 0x6bb   : > { %p2432_p10 = scmp.ne.s32.totalorder %s3077_s17, %s2431_s29  ;;  %p2436_p2 = scmp.lt.u32.totalorder %s3077_s17, %s3202_s26 }
 0x6bc   : > { %p2437_p11 = scmp.lt.u32.totalorder %s2435_s20, %s2431_s29  ;;  %p2439_p8 = scmp.lt.u32.totalorder %s2431_s29, %s3077_s17 }
 0x6bd   : > { %p2433_p6 = pnand %p2432_p10, %p2813_p0 }
 0x6be   : > { %p2438_p12 = por %p2437_p11, %p2436_p2 }
 0x6bf   : > { %p2434_p4 = pneg %p2433_p6 }
 0x6c0   : > { %p2440_p5 = por %p2439_p8, %p2438_p12 }
 0x6c2   : > { %p2441_p13 = pnand %p2440_p5, %p2434_p4 }
 0x6c4   : > { %2444 = shalt.err (!%p2441_p13)
}
 0x6c5   : > { %2083 = dma.vmem_to_hbm [thread:$0]  (%p2813_p0), %s3079_s13, 128, %s3077_s17, %s1713_s0  }
 0x6c6 PF: > { %s3203_s4 = sld [smem:[#allocation25_spill]]  ;;  %s3204_s25 = sld [smem:[#allocation28_spill]] }
 0x6c7   : > { %p3206_p7 = scmp.ge.s32.totalorder %s2511_s22, 2 }
 0x6cc   : > { %s1739_s10 = sand.u32 1, %s3203_s4   ;;  %p3205_p3 = scmp.ne.s32.totalorder %s3204_s25, 0 }
 0x6cd   : > { %s1740_s6 = scalar_lea.sflag [#allocation9], %s1739_s10 }
 0x6ce   : > { %p2109_p9 = pnand %p3206_p7, %p3205_p3 }
 0x6d0   : > { %2486 = dma.done.wait (!%p2109_p9), %s1740_s6, 128  }
 0x6d1   : > { %2488 = vsyncadd (!%p2109_p9), %s1740_s6, 4294967168  ;;  %s30_s22 = sadd.s32 1, %s2511_s22   ;;  %s3207_s17 = smov %s2495_s18 }
 0x6d2   : > { %p27_p1 = scmp.ge.s32.totalorder %s30_s22, 4   ;;  %s3208_s18 = smov %s2499_s19 }
 0x6d3   : > { %s3209_s19 = smov %s2825_s14  ;;  %s3210_s20 = smov %s2507_s21 }
 0x6d4   : > { %s3211_s21 = smov %s3213_s27  ;;  %29 = sbr.rel (!%p27_p1) target bundleno = 17 (0x11), region = 148 }
 0x6db   :  { %1745 = vsyncpa [#allocation8], 1 }
 0x6dc   :  { %1747 = vsyncpa [#allocation8 + $0x1], 1 }
 0x6dd   :  { %1748 = vsyncpa [#allocation11], 1 }
 0x6de   :  { %1749 = vsyncpa [#allocation14], 1 }
 0x6df   :  { %1750 = vsyncpa [#allocation17], 1 }
 0x6e0   :  { %1751 = vsyncpa [#allocation9], 1 }
 0x6e1   :  { %1753 = vsyncpa [#allocation9 + $0x1], 1 }

// kernel: tpu_custom_call.1
= control target key start
LH: loop header
LB: loop body
LE: loop exit
PB: predicated region body
PF: predicated region fallthrough
CT: control target
= control target key end

     0   :  { %s3210_s0 = inlined_call_operand.hbm [shape: f32[2,8,32], index: 0, kind: input, shape index: {}]   ;;  %s3211_s1 = inlined_call_operand.hbm [shape: f32[2,8,32], index: 1, kind: input, shape index: {}]   ;;  %s3212_s2 = inlined_call_operand.hbm [shape: f32[2,8,32], index: 2, kind: input, shape index: {}]   ;;  %s3213_s3 = inlined_call_operand.hbm [shape: f32[32,32], index: 3, kind: input, shape index: {}]   ;;  %s3214_s4 = inlined_call_operand.vmem [shape: f32[1,32], index: 4, kind: input, shape index: {}]   ;;  %s3215_s5 = inlined_call_operand.hbm [shape: f32[32,32], index: 5, kind: input, shape index: {}]   ;;  %s3216_s6 = inlined_call_operand.vmem [shape: f32[1,32], index: 6, kind: input, shape index: {}]   ;;  %s3217_s7 = inlined_call_operand.hbm [shape: f32[32,32], index: 7, kind: input, shape index: {}]   ;;  %s3218_s8 = inlined_call_operand.hbm [shape: f32[1,32], index: 8, kind: input, shape index: {}]   ;;  %s3219_s9 = inlined_call_operand.vmem [shape: f32[32,32], index: 9, kind: input, shape index: {}]   ;;  %s3220_s10 = inlined_call_operand.vmem [shape: f32[1,32], index: 10, kind: input, shape index: {}]   ;;  %s3221_s11 = inlined_call_operand.hbm [shape: f32[2,8,32], index: 11, kind: output, shape index: {}]  }
   0x1   :  { %3247 = sst [smem:[#allocation33_spill]] %s3211_s1 }
   0x2   :  { %3248 = sst [smem:[#allocation34_spill]] %s3213_s3 }
   0x3   :  { %3249 = sst [smem:[#allocation35_spill]] %s3217_s7 }
   0x4   :  { %3250 = sst [smem:[#allocation36_spill]] %s3219_s9 }
   0x5   :  { %3251 = sst [smem:[#allocation37_spill]] %s3220_s10 }
   0x6   :  { %3252 = sst [smem:[#allocation38_spill]] %s3221_s11 }
   0x7   :  { %16 = vsyncpa [#allocation8], 0 }
   0x8   :  { %18 = vsyncpa [#allocation8 + $0x1], 0 }
   0x9   :  { %19 = vsyncpa [#allocation11], 0 }
   0xa   :  { %21 = vsyncpa [#allocation11 + $0x1], 0 }
   0xb   :  { %22 = vsyncpa [#allocation14], 0 }
   0xc   :  { %23 = vsyncpa [#allocation17], 0 }
   0xd   :  { %24 = vsyncpa [#allocation9], 0 }
   0xe   :  { %26 = vsyncpa [#allocation9 + $0x1], 0  ;;  %s2648_s17 = smov 0   ;;  %s2650_s18 = smov 0  }
   0xf   :  { %s2652_s19 = smov 0   ;;  %s2654_s20 = smov 0  }
  0x10   :  { %s2656_s21 = smov 0   ;;  %s2658_s22 = smov 0  }
  0x11 LB: > { %3253 = sst [smem:[#allocation25_spill]] %s2545_s17  ;;  %s2679_s23 = sadd.s32 4294967295, %s2565_s22   ;;  %s2565_s22 = sphi %s2658_s22, %s32_s22   ;;  %s2561_s21 = sphi %s2656_s21, %s3300_s21   ;;  %s2557_s20 = sphi %s2654_s20, %s3299_s20   ;;  %s2553_s19 = sphi %s2652_s19, %s3303_s19   ;;  %s2549_s18 = sphi %s2650_s18, %s3302_s18   ;;  %s2545_s17 = sphi %s2648_s17, %s3301_s17  }
  0x12   : > { %3254 = sst [smem:[#allocation26_spill]] %s2557_s20  ;;  %p1928_p0 = scmp.ge.s32.totalorder %s2565_s22, 1 }
  0x13   : > { %3255 = sst [smem:[#allocation27_spill]] %s2561_s21  ;;  %p3231_p1 = scmp.eq.s32.totalorder %s2679_s23, 0 }
  0x14   : > { %3256 = sst [smem:[#allocation28_spill]] %s2565_s22  ;;  %p325_p2 = scmp.lt.s32.totalorder %s2565_s22, 3 }
  0x15   : > { %s2567_s25 = smov [#allocation13]   ;;  %s2568_s28 = smov [#allocation16]  }
  0x16   : > { %p2684_p3 = pnand %p1928_p0, %p325_p2  ;;  %s337_s26 = sshll.u32 %s2567_s25, 4  ;;  %s2688_s26 = int_to_ptr.vmem [resolvable:$true] %s337_s26 }
  0x17   : > { %s369_s29 = sshll.u32 %s2568_s28, 4  ;;  %s3259_s3 = sld [smem:[#allocation34_spill]]  ;;  %s2699_s29 = int_to_ptr.vmem [resolvable:$true] %s369_s29 }
  0x18   : > { %s3257_s24 = scalar_select %p2684_p3, 1, 0 }
  0x19   : > { %p2141_p4 = pneg %p2684_p3 }
  0x1b   : > { %p2695_p6 = pnand %p2141_p4, %p3231_p1 }
  0x1d   : > { %s3258_s27 = scalar_select %p2695_p6, 1, 0 }
  0x1e   : > { %s2269_s13 = scalar_lea.hbm %s3259_s3, 512  ;;  %p2709_p8 = pneg %p2695_p6 }
  0x1f   : > { %p2270_p7 = scmp.ne.s32.totalorder %s3259_s3, %s2269_s13  ;;  %p2276_p11 = scmp.lt.u32.totalorder %s2269_s13, %s3259_s3 }
  0x20   : > { %s3260_s16 = scalar_select %p2709_p8, 1, 0 }
  0x21   : > { %p2272_p9 = pnand %p2709_p8, %p2270_p7 }
  0x23   : > { %p2273_p10 = pneg %p2272_p9 }
  0x25   : > { %p2278_p12 = pnand %p2276_p11, %p2273_p10 }
  0x27   : > { %2281 = shalt.err (!%p2278_p12)
}
  0x28   : > { %s2282_s30 = scalar_lea.vmem %s2688_s26, 512  ;;  %p2290_p4 = scmp.lt.s32.totalorder %s2688_s26, %s2688_s26 }
  0x29   : > { %p2283_p13 = scmp.ne.s32.totalorder %s2688_s26, %s2282_s30  ;;  %p2291_p5 = scmp.lt.s32.totalorder %s2282_s30, %s2282_s30 }
  0x2b   : > { %p2285_p0 = pnand %p2283_p13, %p2709_p8  ;;  %p2292_p7 = por %p2291_p5, %p2290_p4 }
  0x2d   : > { %p2286_p2 = pneg %p2285_p0 }
  0x2f   : > { %p2293_p9 = pnand %p2292_p7, %p2286_p2 }
  0x31   : > { %2296 = shalt.err (!%p2293_p9)
}
  0x32   : > { %s3224_s12 = smov 128   ;;  %s3225_s13 = smov 8  }
  0x33   : > { %2144 = dma.hbm_to_vmem [thread:$0]  (!%p2695_p6), %s3259_s3, 512, %s2688_s26, [#allocation14], %s3224_s12, %s3224_s12, %s3225_s13  }
  0x34   : > { %s3261_s7 = sld [smem:[#allocation35_spill]] }
  0x3a   : > { %s2297_s30 = scalar_lea.hbm %s3261_s7, 512 }
  0x3b   : > { %p2298_p5 = scmp.ne.s32.totalorder %s3261_s7, %s2297_s30  ;;  %p2304_p12 = scmp.lt.u32.totalorder %s2297_s30, %s3261_s7 }
  0x3d   : > { %p2300_p10 = pnand %p2298_p5, %p2709_p8 }
  0x3f   : > { %p2301_p11 = pneg %p2300_p10 }
  0x41   : > { %p2306_p13 = pnand %p2304_p12, %p2301_p11 }
  0x43   : > { %2309 = shalt.err (!%p2306_p13)
}
  0x44   : > { %s2310_s26 = scalar_lea.vmem %s2699_s29, 512  ;;  %p2318_p7 = scmp.lt.s32.totalorder %s2699_s29, %s2699_s29 }
  0x45   : > { %p2311_p0 = scmp.ne.s32.totalorder %s2699_s29, %s2310_s26  ;;  %p2319_p9 = scmp.lt.s32.totalorder %s2310_s26, %s2310_s26 }
  0x47   : > { %p2313_p2 = pnand %p2311_p0, %p2709_p8  ;;  %p2320_p5 = por %p2319_p9, %p2318_p7 }
  0x49   : > { %p2314_p4 = pneg %p2313_p2 }
  0x4b   : > { %p2321_p10 = pnand %p2320_p5, %p2314_p4 }
  0x4d   : > { %2324 = shalt.err (!%p2321_p10)
}
  0x4e   : > { %2150 = dma.hbm_to_vmem [thread:$0]  (!%p2695_p6), %s3261_s7, 512, %s2699_s29, [#allocation17], %s3224_s12, %s3224_s12, %s3225_s13  }
  0x4f   : > { %s1927_s11 = sadd.s32 4294967294, %s2565_s22   ;;  %s44_s20 = sadd.s32 1, %s2561_s21 }
  0x50   : > { %p46_p11 = scmp.ge.s32.totalorder %s44_s20, 2  ;;  %s53_s14 = sadd.s32 1, %s2553_s19 }
  0x51   : > { %p60_p12 = scmp.ne.s32.totalorder %s2553_s19, %s2549_s18  ;;  %p61_p13 = scmp.eq.s32.totalorder %s2565_s22, 0 }
  0x52   : > { %s3305_s20 = smov (%p46_p11, %s44_s20), 0  ;;  %p66_p2 = scmp.ne.s32.totalorder %s2549_s18, %s2545_s17 }
  0x53   : > { %3262 = sst [smem:[#allocation29_spill]] %s3305_s20  ;;  %p2767_p0 = por %p61_p13, %p60_p12 }
  0x54   : > { %s48_s29 = ssub.s32 %s2561_s21, %s3305_s20  ;;  %p312_p4 = scmp.eq.s32.totalorder %s2679_s23, 1 }
  0x55   : > { %p51_p7 = scmp.eq.s32.totalorder %s48_s29, 0  ;;  %p2778_p9 = por %p3231_p1, %p66_p2 }
  0x56   : > { %p2782_p5 = por %p312_p4, %p60_p12  ;;  %p318_p10 = scmp.eq.s32.totalorder %s1927_s11, 1 }
  0x57   : > { %s3264_s25 = scalar_select %p2778_p9, 1, 0 }
  0x58   : > { %s3265_s28 = scalar_select %p2782_p5, 1, 0 }
  0x59   : > { %s2787_s30 = scalar_select %p51_p7, %s2553_s19, %s53_s14  }
  0x5a   : > { %3266 = sst [smem:[#allocation30_spill]] %s3265_s28  ;;  %p2789_p11 = por %p318_p10, %p66_p2 }
  0x5b   : > { %3267 = sst [smem:[#allocation31_spill]] %s2787_s30  ;;  %p2172_p13 = scmp.lt.s32.totalorder %s2565_s22, 2 }
  0x5c   : > { %s3268_s26 = scalar_select %p2789_p11, 1, 0 }
  0x5d   : > { %s3226_s9 = sand.u32 1, %s2553_s19   ;;  %s2796_s10 = sshll.u32 %s2561_s21, 7 }
  0x5e   : > { %3269 = sst [smem:[#allocation32_spill]] %s3268_s26  ;;  %s2800_s29 = sshll.u32 %s3226_s9, 3 }
  0x5f   : > { %p2804_p12 = pnand %p2172_p13, %p2767_p0  ;;  %s419_s11 = sand.u32 1, %s2565_s22  }
  0x60   : > { %s3271_s1 = sld [smem:[#allocation33_spill]]  ;;  %s423_s7 = scalar_lea.vmem [#allocation10], %s2800_s29 }
  0x61   : > { %s3270_s12 = scalar_select %p2804_p12, 1, 0 }
  0x62   : > { %s430_s9 = sshll.u32 %s423_s7, 4  ;;  %s2818_s15 = scalar_lea.sflag [#allocation11], %s419_s11  ;;  %s2816_s9 = int_to_ptr.vmem [resolvable:$true] %s430_s9 }
  0x63   : > { %p2824_p2 = pneg %p2804_p12 }
  0x65   : > { %s3272_s21 = scalar_select %p2824_p2, 1, 0 }
  0x66   : > { %s2813_s3 = scalar_lea.hbm %s3271_s1, %s2796_s10  ;;  %s2330_s30 = scalar_lea.hbm %s3271_s1, 256 }
  0x67   : > { %s2325_s20 = scalar_lea.hbm %s2813_s3, 128  ;;  %p2331_p10 = scmp.lt.u32.totalorder %s2813_s3, %s3271_s1 }
  0x68   : > { %p2326_p0 = scmp.ne.s32.totalorder %s2813_s3, %s2325_s20  ;;  %p2332_p13 = scmp.lt.u32.totalorder %s2330_s30, %s2325_s20 }
  0x69   : > { %p2334_p11 = scmp.lt.u32.totalorder %s2325_s20, %s2813_s3 }
  0x6a   : > { %p2328_p4 = pnand %p2824_p2, %p2326_p0  ;;  %p2333_p1 = por %p2332_p13, %p2331_p10 }
  0x6c   : > { %p2329_p7 = pneg %p2328_p4  ;;  %p2335_p5 = por %p2334_p11, %p2333_p1 }
  0x6e   : > { %p2336_p9 = pnand %p2335_p5, %p2329_p7 }
  0x70   : > { %2339 = shalt.err (!%p2336_p9)
}
  0x71   : > { %s2340_s11 = scalar_lea.vmem %s2816_s9, 128  ;;  %s2571_s13 = smov [#allocation10]  }
  0x72   : > { %p2341_p0 = scmp.ne.s32.totalorder %s2816_s9, %s2340_s11  ;;  %s2345_s14 = sshll.u32 %s2571_s13, 4  ;;  %s2346_s14 = int_to_ptr.vmem [resolvable:$false] %s2345_s14 }
  0x73   : > { %s2347_s22 = scalar_lea.vmem %s2346_s14, 256  ;;  %p2348_p6 = scmp.lt.s32.totalorder %s2816_s9, %s2346_s14 }
  0x74   : > { %p2343_p4 = pnand %p2341_p0, %p2824_p2  ;;  %p2349_p8 = scmp.lt.s32.totalorder %s2347_s22, %s2340_s11 }
  0x76   : > { %p2344_p3 = pneg %p2343_p4  ;;  %p2350_p10 = por %p2349_p8, %p2348_p6 }
  0x78   : > { %p2351_p13 = pnand %p2350_p10, %p2344_p3 }
  0x7a   : > { %2354 = shalt.err (!%p2351_p13)
}
  0x7b   : > { %2160 = dma.hbm_to_vmem [thread:$0]  (!%p2804_p12), %s2813_s3, 128, %s2816_s9, %s2818_s15  }
  0x7c   : > { %s2572_s20 = smov [#allocation15]   ;;  %s2573_s7 = smov [#allocation18]  }
  0x7d   : > { %s353_s30 = sshll.u32 %s2572_s20, 4  ;;  %s383_s1 = sshll.u32 %s2573_s7, 4  ;;  %s354_s30 = int_to_ptr.vmem [resolvable:$true] %s353_s30  ;;  %s384_s1 = int_to_ptr.vmem [resolvable:$true] %s383_s1 }
  0x7e   : > { %s2355_s14 = scalar_lea.hbm %s3215_s5, 512  ;;  %p3273_p3 = scmp.ne.s32.totalorder %s3260_s16, 0 }
  0x7f   : > { %p2356_p1 = scmp.ne.s32.totalorder %s3215_s5, %s2355_s14  ;;  %p2362_p9 = scmp.lt.u32.totalorder %s2355_s14, %s3215_s5 }
  0x81   : > { %p2358_p6 = pnand %p2356_p1, %p3273_p3 }
  0x83   : > { %p2359_p8 = pneg %p2358_p6 }
  0x85   : > { %p2364_p5 = pnand %p2362_p9, %p2359_p8 }
  0x87   : > { %2367 = shalt.err (!%p2364_p5)
}
  0x88   : > { %s2368_s3 = scalar_lea.vmem %s354_s30, 512  ;;  %p2376_p4 = scmp.lt.s32.totalorder %s354_s30, %s354_s30 }
  0x89   : > { %p2369_p11 = scmp.ne.s32.totalorder %s354_s30, %s2368_s3  ;;  %p2377_p10 = scmp.lt.s32.totalorder %s2368_s3, %s2368_s3 }
  0x8b   : > { %p2371_p7 = pnand %p2369_p11, %p3273_p3  ;;  %p2378_p13 = por %p2377_p10, %p2376_p4 }
  0x8d   : > { %p2372_p0 = pneg %p2371_p7 }
  0x8f   : > { %p2379_p12 = pnand %p2378_p13, %p2372_p0 }
  0x91   : > { %2382 = shalt.err (!%p2379_p12)
}
  0x92   : > { %p3274_p1 = scmp.ne.s32.totalorder %s3258_s27, 0  ;;  %s3275_s26 = smov 8  }
  0x93   : > { %s3276_s9 = smov 128   ;;  %s2383_s13 = scalar_lea.hbm %s3218_s8, 16 }
  0x94   : > { %2147 = dma.hbm_to_vmem [thread:$0]  (!%p3274_p1), %s3215_s5, 512, %s354_s30, [#allocation14], %s3276_s9, %s3276_s9, %s3275_s26  }
  0x95   : > { %p2384_p6 = scmp.ne.s32.totalorder %s3218_s8, %s2383_s13  ;;  %p2390_p9 = scmp.lt.u32.totalorder %s2383_s13, %s3218_s8 }
  0x97   : > { %p2386_p12 = pnand %p2384_p6, %p3273_p3 }
  0x99   : > { %p2387_p8 = pneg %p2386_p12 }
  0x9b   : > { %p2392_p5 = pnand %p2390_p9, %p2387_p8 }
  0x9d   : > { %2395 = shalt.err (!%p2392_p5)
}
  0x9e   : > { %s2396_s17 = scalar_lea.vmem %s384_s1, 16  ;;  %s2403_s30 = scalar_lea.vmem %s384_s1, 32 }
  0x9f   : > { %p2397_p11 = scmp.ne.s32.totalorder %s384_s1, %s2396_s17  ;;  %p2404_p4 = scmp.lt.s32.totalorder %s384_s1, %s384_s1 }
  0xa0   : > { %p2405_p10 = scmp.lt.s32.totalorder %s2403_s30, %s2396_s17 }
  0xa1   : > { %p2399_p7 = pnand %p2397_p11, %p3273_p3 }
  0xa2   : > { %p2406_p13 = por %p2405_p10, %p2404_p4 }
  0xa3   : > { %p2400_p0 = pneg %p2399_p7 }
  0xa5   : > { %p2407_p2 = pnand %p2406_p13, %p2400_p0 }
  0xa7   : > { %2410 = shalt.err (!%p2407_p2)
}
  0xa8   : > { %2153 = dma.hbm_to_vmem [thread:$0]  (!%p3274_p1), %s3218_s8, 16, %s384_s1, [#allocation17]  }
  0xa9   : > { %s2891_s20 = scalar_lea.hbm %s3210_s0, %s2796_s10  ;;  %s404_s7 = scalar_lea.vmem [#allocation7], %s2800_s29 }
  0xaa   : > { %s412_s27 = sshll.u32 %s404_s7, 4  ;;  %s2900_s11 = scalar_lea.hbm %s3212_s2, %s2796_s10  ;;  %s2894_s27 = int_to_ptr.vmem [resolvable:$true] %s412_s27 }
  0xab   : > { %s3277_s22 = sand.u32 1, %s2553_s19   ;;  %s2411_s3 = scalar_lea.hbm %s2891_s20, 128 }
  0xac   : > { %s401_s1 = scalar_lea.sflag [#allocation8], %s3277_s22  ;;  %p2412_p2 = scmp.ne.s32.totalorder %s2891_s20, %s2411_s3 }
  0xad   : > { %p3278_p3 = scmp.ne.s32.totalorder %s3272_s21, 0  ;;  %s2416_s26 = scalar_lea.hbm %s3210_s0, 256 }
  0xae   : > { %p2417_p12 = scmp.lt.u32.totalorder %s2891_s20, %s3210_s0  ;;  %p2418_p8 = scmp.lt.u32.totalorder %s2416_s26, %s2411_s3 }
  0xaf   : > { %p2414_p1 = pnand %p2412_p2, %p3278_p3  ;;  %p2420_p5 = scmp.lt.u32.totalorder %s2411_s3, %s2891_s20 }
  0xb0   : > { %p2419_p9 = por %p2418_p8, %p2417_p12 }
  0xb1   : > { %p2415_p6 = pneg %p2414_p1 }
  0xb2   : > { %p2421_p11 = por %p2420_p5, %p2419_p9 }
  0xb4   : > { %p2422_p7 = pnand %p2421_p11, %p2415_p6 }
  0xb6   : > { %2425 = shalt.err (!%p2422_p7)
}
  0xb7   : > { %s2426_s10 = scalar_lea.vmem %s2894_s27, 128  ;;  %s2574_s28 = smov [#allocation7]  }
  0xb8   : > { %p2427_p0 = scmp.ne.s32.totalorder %s2894_s27, %s2426_s10  ;;  %s2431_s7 = sshll.u32 %s2574_s28, 4  ;;  %s2432_s7 = int_to_ptr.vmem [resolvable:$false] %s2431_s7 }
  0xb9   : > { %s2433_s13 = scalar_lea.vmem %s2432_s7, 256  ;;  %p2434_p13 = scmp.lt.s32.totalorder %s2894_s27, %s2432_s7 }
  0xba   : > { %p2429_p4 = pnand %p2427_p0, %p3278_p3  ;;  %p2435_p2 = scmp.lt.s32.totalorder %s2433_s13, %s2426_s10 }
  0xbc   : > { %p2430_p10 = pneg %p2429_p4  ;;  %p2436_p1 = por %p2435_p2, %p2434_p13 }
  0xbe   : > { %p2437_p12 = pnand %p2436_p1, %p2430_p10 }
  0xc0   : > { %2440 = shalt.err (!%p2437_p12)
}
  0xc1   : > { %p3279_p6 = scmp.ne.s32.totalorder %s3270_s12, 0  ;;  %s441_s14 = scalar_lea.vmem [#allocation12], %s2800_s29 }
  0xc2   : > { %s448_s22 = sshll.u32 %s441_s14, 4  ;;  %s2441_s3 = scalar_lea.hbm %s2900_s11, 128  ;;  %s449_s22 = int_to_ptr.vmem [resolvable:$true] %s448_s22 }
  0xc3   : > { %2157 = dma.hbm_to_vmem [thread:$0]  (!%p3279_p6), %s2891_s20, 128, %s2894_s27, %s401_s1  }
  0xc4   : > { %p2442_p8 = scmp.ne.s32.totalorder %s2900_s11, %s2441_s3  ;;  %s2446_s26 = scalar_lea.hbm %s3212_s2, 256 }
  0xc5   : > { %p2447_p11 = scmp.lt.u32.totalorder %s2900_s11, %s3212_s2  ;;  %p2448_p7 = scmp.lt.u32.totalorder %s2446_s26, %s2441_s3 }
  0xc6   : > { %p2444_p9 = pnand %p2442_p8, %p3278_p3  ;;  %p2450_p4 = scmp.lt.u32.totalorder %s2441_s3, %s2900_s11 }
  0xc7   : > { %p2449_p0 = por %p2448_p7, %p2447_p11 }
  0xc8   : > { %p2445_p5 = pneg %p2444_p9 }
  0xc9   : > { %p2451_p10 = por %p2450_p4, %p2449_p0 }
  0xcb   : > { %p2452_p13 = pnand %p2451_p10, %p2445_p5 }
  0xcd   : > { %2455 = shalt.err (!%p2452_p13)
}
  0xce   : > { %s2456_s29 = scalar_lea.vmem %s449_s22, 128  ;;  %s2575_s20 = smov [#allocation12]  }
  0xcf   : > { %p2457_p2 = scmp.ne.s32.totalorder %s449_s22, %s2456_s29  ;;  %s2461_s27 = sshll.u32 %s2575_s20, 4  ;;  %s2462_s27 = int_to_ptr.vmem [resolvable:$false] %s2461_s27 }
  0xd0   : > { %s2463_s1 = scalar_lea.vmem %s2462_s27, 256  ;;  %p2464_p8 = scmp.lt.s32.totalorder %s449_s22, %s2462_s27 }
  0xd1   : > { %p2459_p1 = pnand %p2457_p2, %p3278_p3  ;;  %p2465_p9 = scmp.lt.s32.totalorder %s2463_s1, %s2456_s29 }
  0xd3   : > { %p2460_p12 = pneg %p2459_p1  ;;  %p2466_p6 = por %p2465_p9, %p2464_p8 }
  0xd5   : > { %p2467_p7 = pnand %p2466_p6, %p2460_p12 }
  0xd7   : > { %2470 = shalt.err (!%p2467_p7)
}
  0xd8   : > { %p3280_p11 = scmp.ne.s32.totalorder %s3270_s12, 0  ;;  %p3281_p5 = scmp.ne.s32.totalorder %s3257_s24, 0 }
  0xd9   : > { %s2947_s21 = sand.u32 (!%p3281_p5), 1, %s2549_s18   ;;  %p3282_p3 = scmp.ne.s32.totalorder (!%p3281_p5), %s3264_s25, 0 }
  0xda   : > { %2163 = dma.hbm_to_vmem [thread:$0]  (!%p3280_p11), %s2900_s11, 128, %s449_s22, %s2818_s15  }
  0xdb   : > { %457 = sbr.rel (%p3281_p5) target bundleno = 1734 (0x6c6), region = 64  ;;  %s2950_s10 = sshll.u32 (!%p3281_p5), %s2947_s21, 3 }
  0xdc   : > { %s460_s28 = scalar_lea.sflag (!%p3281_p5), [#allocation8], %s2947_s21  ;;  %s463_s7 = scalar_lea.vmem (!%p3281_p5), [#allocation7], %s2950_s10 }
  0xe2   : > { %2524 = dma.done.wait (%p3282_p3), %s460_s28, 128  }
  0xe3   : > { %2526 = vsyncadd (%p3282_p3), %s460_s28, 4294967168  ;;  %s468_s24 = sand.u32 1, %s2679_s23   ;;  %s472_s15 = scalar_lea.vmem [#allocation10], %s2950_s10 }
  0xe4   : > { %s469_s12 = scalar_lea.sflag [#allocation11], %s468_s24 }
  0xe5   : > { %2528 = dma.done.wait (%p3282_p3), %s469_s12, 256  }
  0xe6   : > { %2530 = vsyncadd (%p3282_p3), %s469_s12, 4294967040  ;;  %s481_s11 = scalar_lea.vmem [#allocation12], %s2950_s10  ;;  %p3283_p6 = scmp.eq.s32.totalorder %s2679_s23, 0 }
  0xe8   : > { %2532 = dma.done.wait (%p3283_p6), [#allocation14], 1024   ;;  %p3284_p0 = pmov %p3283_p6 }
  0xea   : > { %2534 = vsyncadd (%p3284_p0), [#allocation14], 4294966272  ;;  %p3285_p4 = pmov %p3284_p0 }
  0xeb   : > { %p3286_p10 = pmov %p3284_p0 }
  0xec   : > { %2536 = dma.done.wait (%p3285_p4), [#allocation17], 528  }
  0xed   : > { %2538 = vsyncadd (%p3286_p10), [#allocation17], 4294966768  ;;  %v2576_v0 = vmov 0.0|0.0   ;;  %vm2577_vm0 = vmmov 0   ;;  %v2578_v1 = vmov 0.0   ;;  %v551_v2 = vld [vmem:[#allocation15] sm:$0xff] }
  0xee   : > { %2093 = vmatprep.subr.bf16.mxu0 %v2576_v0  ;;  %2017 = vmatprep.mubr.msk.f32.mxu0 %vm2577_vm0, %v2578_v1  ;;  %v552_v3 = vld [vmem:[#allocation15 + $0x8] sm:$0xff]  ;;  %v553_v4 = vld [vmem:[#allocation15 + $0x10] sm:$0xff]  ;;  %v554_v6 = vld [vmem:[#allocation15 + $0x18] sm:$0xff]  ;;  %vm562_vm1 = vcmask 261120   ;;  %vm721_vm2 = vcmask 64512   ;;  %s2579_s13 = smov 104  }
  0xef   : > { %2099 = vmatprep.subr.bf16.mxu1 %v2576_v0  ;;  %2028 = vmatprep.mubr.msk.f32.mxu1 %vm2577_vm0, %v2578_v1  ;;  %v2094_v5 = vpack.c.bf16 %v552_v3, %v551_v2  ;;  %v2097_v7 = vpack.c.bf16 %v554_v6, %v553_v4  ;;  %v637_v8 = vld [vmem:[#allocation16] sm:$0xff]  ;;  %v638_v9 = vld [vmem:[#allocation16 + $0x8] sm:$0xff]  ;;  %v762_v15 = vld [vmem:[#allocation13 + $0x10] sm:$0xff]  ;;  %863 = vst.msk [vmem:[#allocation6] sm:$0xff] %vm721_vm2, %v2578_v1  ;;  %s2580_s14 = smov 120   ;;  %s2581_s17 = smov 112  }
  0xf0   : > { %v760_v10 = vld [vmem:[#allocation13] sm:$0xff]  ;;  %v761_v11 = vld [vmem:[#allocation13 + $0x8] sm:$0xff]  ;;  %v2100_v12 = vpack.c.bf16 %v638_v9, %v637_v8  ;;  %v763_v16 = vld [vmem:[#allocation13 + $0x18] sm:$0xff]  ;;  %864 = vst.msk [vmem:[#allocation6 + $0x8] sm:$0xff] %vm721_vm2, %v2578_v1  ;;  %vm853_vm3 = vcmask 7168   ;;  %v2582_v47 = vmov -inf  }
  0xf1   : > { %2095 = vmatpush3.bf16.msra.mxu0 %v2094_v5  ;;  %v550_v13 = vld [vmem:[%s472_s15] sm:$0xff]  ;;  %v2106_v14 = vpack.c.bf16 %v761_v11, %v760_v10  ;;  %v2109_v17 = vpack.c.bf16 %v763_v16, %v762_v15  ;;  %v759_v18 = vld [vmem:[%s463_s7] sm:$0xff]  ;;  %865 = vst.msk [vmem:[#allocation6 + $0x10] sm:$0xff] %vm721_vm2, %v2578_v1  ;;  %866 = vst.msk [vmem:[#allocation6 + $0x18] sm:$0xff] %vm721_vm2, %v2578_v1  ;;  %v2583_v51 = vmov 0   ;;  %s3287_s9 = sld [smem:[#allocation36_spill]] }
  0xf2   : > { %2096 = vmatprep.subr.bf16.mxu0 %v2576_v0  ;;  %2101 = vmatpush3.bf16.msra.mxu1 %v2100_v12  ;;  %v639_v19 = vld [vmem:[#allocation16 + $0x10] sm:$0xff]  ;;  %v640_v20 = vld [vmem:[#allocation16 + $0x18] sm:$0xff]  ;;  %v1951_v33 = vld [vmem:[#allocation18] ss:$0 sm:$0xff]  ;;  %854 = vst.msk [vmem:[#allocation4] sm:$0xff] %vm853_vm3, %v2582_v47  ;;  %s2584_s7 = smov 8  }
  0xf3   : > { %2102 = vmatprep.subr.bf16.mxu1 %v2576_v0  ;;  %v2103_v21 = vpack.c.bf16 %v640_v20, %v639_v19  ;;  %v636_v22 = vld [vmem:[%s481_s11] sm:$0xff]  ;;  %855 = vst.msk [vmem:[#allocation4 + $0x8] sm:$0xff] %vm853_vm3, %v2582_v47  ;;  %856 = vst.msk [vmem:[#allocation4 + $0x10] sm:$0xff] %vm853_vm3, %v2582_v47  ;;  %2243 = vset.pattern.permute.xlu1 %v2583_v51  ;;  %s2585_s24 = smov 16   ;;  %s2586_s12 = smov 24   ;;  %vm1655_vm4 = vcmask 130048  }
  0xf4   : > { %v1949_v23 = vld [vmem:[%s3216_s6] ss:$0 sm:$0xff]  ;;  %857 = vst.msk [vmem:[#allocation4 + $0x18] sm:$0xff] %vm853_vm3, %v2582_v47  ;;  %858 = vst.msk [vmem:[#allocation5] sm:$0xff] %vm853_vm3, %v2578_v1  ;;  %2244 = vset.pattern.permute.xlu0 %v2583_v51  ;;  %s3288_s15 = sld [smem:[#allocation26_spill]]  ;;  %vm1657_vm5 = vcmask 195584  }
  0xf5   : > { %2098 = vmatpush3.bf16.msra.mxu0 %v2097_v7  ;;  %v1953_v27 = vld [vmem:[%s3214_s4] ss:$0 sm:$0xff]  ;;  %859 = vst.msk [vmem:[#allocation5 + $0x8] sm:$0xff] %vm853_vm3, %v2578_v1  ;;  %860 = vst.msk [vmem:[#allocation5 + $0x10] sm:$0xff] %vm853_vm3, %v2578_v1  ;;  %s3289_s11 = sld [smem:[#allocation30_spill]]  ;;  %s545_s22 = scalar_lea.vmem [#allocation19], %s2950_s10 }
  0xf6   : > { %2105 = vmatprep.subr.bf16.mxu0 %v2576_v0  ;;  %2104 = vmatpush3.bf16.msra.mxu1 %v2103_v21  ;;  %861 = vst.msk [vmem:[#allocation5 + $0x18] sm:$0xff] %vm853_vm3, %v2578_v1  ;;  %s1759_s3 = sshll.u32 %s545_s22, 4  ;;  %s3291_s26 = sld [smem:[#allocation38_spill]]  ;;  %s3162_s3 = int_to_ptr.vmem [resolvable:$true] %s1759_s3 }
  0xf7   : > { %2042 = vmatprep.subr.mxu1 %v2578_v1  ;;  %s1745_s29 = scalar_lea.sflag [#allocation9], %s2947_s21  ;;  %s2471_s20 = scalar_lea.vmem %s3162_s3, 128 }
  0xf8   : > { %2018 = vmatmul.mubr.msk.f32.vlgmr.msra.gmra.mrb[0].mxu0 %vm562_vm1, %v550_v13  ;;  %p2472_p13 = scmp.ne.s32.totalorder %s3162_s3, %s2471_s20  ;;  %s2587_s10 = smov [#allocation19]  }
  0xf9   : > { %2107 = vmatpush3.bf16.msra.mxu0 %v2106_v14  ;;  %2039 = vmatprep.mubr.msk.f32.mxu0 %vm2577_vm0, %v2578_v1  ;;  %v3063_v61 = vld [vmem:[#allocation4] sm:$0xff]  ;;  %s2475_s27 = sshll.u32 %s2587_s10, 4  ;;  %s2476_s27 = int_to_ptr.vmem [resolvable:$false] %s2475_s27 }
  0xfa   : > { %2108 = vmatprep.subr.bf16.mxu0 %v2576_v0  ;;  %2029 = vmatmul.mubr.msk.f32.vlgmr.msra.gmra.mrb[0].mxu1 %vm562_vm1, %v636_v22  ;;  %v3073_v3 = vld [vmem:[#allocation4 + $0x8] sm:$0xff]  ;;  %v3078_v6 = vld [vmem:[#allocation4 + $0x10] sm:$0xff]  ;;  %s2477_s1 = scalar_lea.vmem %s2476_s27, 256  ;;  %p2478_p8 = scmp.lt.s32.totalorder %s3162_s3, %s2476_s27 }
  0xfb   : > { %2044 = vmatprep.mubr.msk.f32.mxu1 %vm2577_vm0, %v2578_v1  ;;  %v3088_v10 = vld [vmem:[#allocation4 + $0x18] sm:$0xff]  ;;  %p3292_p2 = scmp.ne.s32.totalorder %s3289_s11, 0  ;;  %p2479_p9 = scmp.lt.s32.totalorder %s2477_s1, %s2471_s20 }
  0xfd   : > { %2110 = vmatpush3.bf16.msra.mxu0 %v2109_v17  ;;  %p2473_p1 = pnand %p2472_p13, %p3292_p2  ;;  %p2480_p7 = por %p2479_p9, %p2478_p8 }
  0xfe   : > { %2062 = vmatprep.subr.mxu0 %v2578_v1 }
  0xff   : > { %p2474_p12 = pneg %p2473_p1 }
 0x100   : > { %2040 = vmatmul.mubr.msk.f32.vlgmr.msra.gmra.mrb[2].mxu0 %vm562_vm1, %v759_v18 }
 0x101   : > { %2064 = vmatprep.mubr.msk.f32.mxu0 %vm2577_vm0, %v2578_v1  ;;  %p2481_p11 = pnand %p2480_p7, %p2474_p12 }
 0x1cb   : > { %v632_v24 = vpop.f32.mrb[0].mxu0 }
 0x1cc   : > { %v633_v25 = vadd.f32 %v1949_v23, %v632_v24  ;;  %v2019_v26 = vpop.f32.mrb[1].mxu0 }
 0x1cd   : > { %v717_v34 = vpop.f32.mrb[0].mxu1 }
 0x1ce   : > { %722 = vst.msk [vmem:[#allocation2] sm:$0xff] %vm721_vm2, %v633_v25  ;;  %748 = vrot.lane.b32.xlu1 %v633_v25, %s2579_s13  ;;  %725 = vrot.lane.b32.xlu0 %v633_v25, %s2580_s14  ;;  %v3024_v35 = vadd.f32 %v1951_v33, %v717_v34  ;;  %v2030_v36 = vpop.f32.mrb[1].mxu1 }
 0x1d0   : > { %723 = vst.msk [vmem:[#allocation3] sm:$0xff] %vm721_vm2, %v3024_v35 }
 0x1d2   : > { %737 = vrot.lane.b32.xlu0 %v633_v25, %s2581_s17 }
 0x1d3   : > { %v841_v28 = vpop.f32.mrb[2].mxu0 }
 0x1d4   : > { %v842_v29 = vadd.f32 %v1953_v27, %v841_v28  ;;  %v2041_v30 = vpop.f32.mrb[3].mxu0 }
 0x1d5   : > { %v867_v31 = vld [vmem:[#allocation2] sm:$0xff] }
 0x1d6   : > { %v845_v32 = vmul.f32 0.35355338, %v842_v29  ;;  %2043 = vmatpush3.xpose.msk.msra.mxu1 %vm721_vm2, %v867_v31 }
 0x1d7   : > { %2047 = vmatprep.subr.mxu1 %v2578_v1  ;;  %v871_v46 = vld [vmem:[#allocation3] sm:$0xff] }
 0x1d8   : > { %847 = vrot.lane.b32.xlu1 %v845_v32, %s2580_s14  ;;  %849 = vrot.lane.b32.xlu0 %v845_v32, %s2581_s17 }
 0x1d9   : > { %2045 = vmatmul.mubr.msk.f32.vlgmr.msra.gmra.mrb[2].mxu1 %vm721_vm2, %v845_v32  ;;  %2063 = vmatpush3.msra.mxu0 %v871_v46 }
 0x1da   : > { %2049 = vmatprep.mubr.msk.f32.mxu1 %vm2577_vm0, %v2578_v1  ;;  %2072 = vmatprep.subr.mxu0 %v2578_v1 }
 0x1dc   : > { %851 = vrot.lane.b32.xlu1 %v845_v32, %s2579_s13 }
 0x240   : > { %v749_v37 = vpop.permute.xlu1 %748  ;;  %v726_v38 = vpop.permute.xlu0 %725 }
 0x241   : > { %753 = vst.msk [vmem:[#allocation2 + $0x18] sm:$0xff] %vm721_vm2, %v749_v37  ;;  %730 = vst.msk [vmem:[#allocation2 + $0x8] sm:$0xff] %vm721_vm2, %v726_v38 }
 0x244   : > { %v738_v39 = vpop.permute.xlu0 %737 }
 0x245   : > { %742 = vst.msk [vmem:[#allocation2 + $0x10] sm:$0xff] %vm721_vm2, %v738_v39 }
 0x248   : > { %v868_v40 = vld [vmem:[#allocation2 + $0x8] sm:$0xff]  ;;  %v870_v44 = vld [vmem:[#allocation2 + $0x18] sm:$0xff] }
 0x249   : > { %2048 = vmatpush3.xpose.msk.msra.mxu1 %vm721_vm2, %v868_v40 }
 0x24a   : > { %v848_v41 = vpop.permute.xlu1 %847  ;;  %2052 = vmatprep.subr.mxu1 %v2578_v1  ;;  %v850_v43 = vpop.permute.xlu0 %849 }
 0x24c   : > { %2050 = vmatmul.mubr.msk.f32.vlgmr.msra.gmra.mrb[4].mxu1 %vm721_vm2, %v848_v41  ;;  %v869_v42 = vld [vmem:[#allocation2 + $0x10] sm:$0xff] }
 0x24d   : > { %2053 = vmatpush3.xpose.msk.msra.mxu1 %vm721_vm2, %v869_v42  ;;  %2054 = vmatprep.mubr.msk.f32.mxu1 %vm2577_vm0, %v2578_v1 }
 0x24e   : > { %2057 = vmatprep.subr.mxu1 %v2578_v1  ;;  %v852_v45 = vpop.permute.xlu1 %851 }
 0x250   : > { %2055 = vmatmul.mubr.msk.f32.vlgmr.msra.gmra.mrb[6].mxu1 %vm721_vm2, %v850_v43 }
 0x251   : > { %2058 = vmatpush3.xpose.msk.msra.mxu1 %vm721_vm2, %v870_v44  ;;  %2059 = vmatprep.mubr.msk.f32.mxu1 %vm2577_vm0, %v2578_v1 }
 0x252   : > { %2067 = vmatprep.subr.mxu1 %v2578_v1 }
 0x254   : > { %2060 = vmatmul.mubr.msk.f32.vlgmr.msra.gmra.mrb[8].mxu1 %vm721_vm2, %v852_v45 }
 0x255   : > { %2069 = vmatprep.mubr.msk.f32.mxu1 %vm2577_vm0, %v2578_v1 }
 0x2ac   : > { %v946_v48 = vpop.f32.mrb[2].mxu1 }
 0x2ad   : > { %v2046_v49 = vpop.f32.mrb[3].mxu1  ;;  %v1179_v50 = vsel %vm721_vm2, %v946_v48, -inf }
 0x2ae   : > { %1180 = vmax.xlane.f32.xlu0 %v1179_v50  ;;  %v1240_v49 = vld [vmem:[#allocation5 + $0x8] sm:$0xff] }
 0x31f   : > { %v1021_v52 = vpop.f32.mrb[4].mxu1 }
 0x320   : > { %v2051_v53 = vpop.f32.mrb[5].mxu1  ;;  %v1182_v54 = vsel %vm721_vm2, %v1021_v52, -inf }
 0x321   : > { %1183 = vmax.xlane.f32.xlu1 %v1182_v54 }
 0x323   : > { %v1096_v55 = vpop.f32.mrb[6].mxu1 }
 0x324   : > { %v2056_v56 = vpop.f32.mrb[7].mxu1  ;;  %v1185_v57 = vsel %vm721_vm2, %v1096_v55, -inf }
 0x325   : > { %1186 = vmax.xlane.f32.xlu0 %v1185_v57  ;;  %v1242_v56 = vld [vmem:[#allocation5 + $0x18] sm:$0xff] }
 0x327   : > { %v1171_v58 = vpop.f32.mrb[8].mxu1 }
 0x328   : > { %v2061_v59 = vpop.f32.mrb[9].mxu1  ;;  %v1188_v60 = vsel %vm721_vm2, %v1171_v58, -inf }
 0x329   : > { %1189 = vmax.xlane.f32.xlu0 %v1188_v60 }
 0x33b   : > { %v1181_v62 = vpop.xlane.xlu0 %1180 }
 0x33c   : > { %v3066_v63 = vmax.f32 %v3063_v61, %v1181_v62  ;;  %v1239_v62 = vld [vmem:[#allocation5] sm:$0xff] }
 0x33e   : > { %v1195_v2 = vsub.f32 %v3063_v61, %v3066_v63  ;;  %1595 = vst.msk [vmem:[#allocation4] sm:$0xff] %vm853_vm3, %v3066_v63  ;;  %1209 = vperm.xlu1 %2243, %v3066_v63  }
 0x3ae   : > { %v1184_v4 = vpop.xlane.xlu1 %1183 }
 0x3af   : > { %v3076_v5 = vmax.f32 %v3073_v3, %v1184_v4 }
 0x3b1   : > { %v1196_v7 = vsub.f32 %v3073_v3, %v3076_v5  ;;  %1596 = vst.msk [vmem:[#allocation4 + $0x8] sm:$0xff] %vm853_vm3, %v3076_v5  ;;  %1214 = vperm.xlu0 %2244, %v3076_v5  }
 0x3b2   : > { %v1187_v8 = vpop.xlane.xlu0 %1186 }
 0x3b3   : > { %v3086_v9 = vmax.f32 %v3078_v6, %v1187_v8  ;;  %v1201_v39 = vmul.f32 1.442695, %v1196_v7 }
 0x3b5   : > { %v1197_v11 = vsub.f32 %v3078_v6, %v3086_v9  ;;  %1597 = vst.msk [vmem:[#allocation4 + $0x10] sm:$0xff] %vm853_vm3, %v3086_v9  ;;  %1219 = vperm.xlu1 %2243, %v3086_v9  }
 0x3b6   : > { %v1190_v12 = vpop.xlane.xlu0 %1189 }
 0x3b7   : > { %v1194_v13 = vmax.f32 %v3088_v10, %v1190_v12  ;;  %v1203_v42 = vmul.f32 1.442695, %v1197_v11  ;;  %v1268_v12 = vld [vmem:[#allocation6 + $0x8] sm:$0xff] }
 0x3b9   : > { %v1198_v14 = vsub.f32 %v3088_v10, %v1194_v13  ;;  %1598 = vst.msk [vmem:[#allocation4 + $0x18] sm:$0xff] %vm853_vm3, %v1194_v13  ;;  %1224 = vperm.xlu1 %2243, %v1194_v13  }
 0x3bb   : > { %v1205_v43 = vmul.f32 1.442695, %v1198_v14 }
 0x3bd   : > { %v1210_v15 = vpop.permute.xlu1 %1209  ;;  %732 = vrot.lane.b32.xlu1 %v3024_v35, %s2580_s14  ;;  %s1970_s14 = sshll.u32 %s3288_s15, 7 }
 0x3be   : > { %v1227_v16 = vsub.f32 %v946_v48, %v1210_v15  ;;  %v1199_v48 = vmul.f32 1.442695, %v1195_v2  ;;  %s3160_s16 = scalar_lea.hbm %s3291_s26, %s1970_s14 }
 0x3c0   : > { %v1231_v17 = vmul.f32 1.442695, %v1227_v16  ;;  %v1269_v16 = vld [vmem:[#allocation6 + $0x10] sm:$0xff] }
 0x3c1   : > { %743 = vrot.lane.b32.xlu1 %v3024_v35, %s2581_s17 }
 0x3c2   : > { %2245 = vpow2.f32 %v1231_v17 }
 0x3c5   : > { %754 = vrot.lane.b32.xlu1 %v3024_v35, %s2579_s13  ;;  %s3290_s13 = sld [smem:[#allocation37_spill]] }
 0x3cc   : > { %v2246_v18 = vpop.eup %2245 }
 0x3cd   : > { %2065 = vmatmul.mubr.msk.f32.vlgmr.msra.gmra.mrb[4].mxu0 %vm721_vm2, %v2246_v18  ;;  %v1247_v41 = vsel %vm721_vm2, %v2246_v18, 0.0 }
 0x3ce   : > { %2074 = vmatprep.mubr.msk.f32.mxu0 %vm2577_vm0, %v2578_v1 }
 0x430   : > { %v1215_v19 = vpop.permute.xlu0 %1214 }
 0x431   : > { %v1228_v20 = vsub.f32 %v1021_v52, %v1215_v19  ;;  %v1241_v52 = vld [vmem:[#allocation5 + $0x10] sm:$0xff] }
 0x433   : > { %v1233_v21 = vmul.f32 1.442695, %v1228_v20 }
 0x434   : > { %v1220_v22 = vpop.permute.xlu1 %1219 }
 0x435   : > { %2247 = vpow2.f32 %v1233_v21  ;;  %v1229_v23 = vsub.f32 %v1096_v55, %v1220_v22  ;;  %v1270_v21 = vld [vmem:[#allocation6 + $0x18] sm:$0xff] }
 0x437   : > { %v1235_v24 = vmul.f32 1.442695, %v1229_v23 }
 0x438   : > { %v1225_v25 = vpop.permute.xlu1 %1224 }
 0x439   : > { %2249 = vpow2.f32 %v1235_v24  ;;  %v1230_v26 = vsub.f32 %v1171_v58, %v1225_v25 }
 0x43b   : > { %v1237_v27 = vmul.f32 1.442695, %v1230_v26 }
 0x43c   : > { %v733_v28 = vpop.permute.xlu1 %732 }
 0x43d   : > { %2251 = vpow2.f32 %v1237_v27  ;;  %736 = vst.msk [vmem:[#allocation3 + $0x8] sm:$0xff] %vm721_vm2, %v733_v28 }
 0x43e   : > { %2253 = vpow2.f32 %v1201_v39 }
 0x43f   : > { %v2248_v29 = vpop.eup %2247  ;;  %2255 = vpow2.f32 %v1203_v42  ;;  %v1267_v42 = vld [vmem:[#allocation6] sm:$0xff] }
 0x440   : > { %v744_v30 = vpop.permute.xlu1 %743  ;;  %v1250_v31 = vsel %vm721_vm2, %v2248_v29, 0.0  ;;  %2257 = vpow2.f32 %v1205_v43 }
 0x441   : > { %747 = vst.msk [vmem:[#allocation3 + $0x10] sm:$0xff] %vm721_vm2, %v744_v30  ;;  %1251 = vadd.xlane.f32.xlu1 %v1250_v31  ;;  %2259 = vpow2.f32 %v1199_v48  ;;  %v1659_v30 = vld [vmem:[%s3287_s9] sm:$0xff]  ;;  %v1660_v31 = vld [vmem:[%s3287_s9 + $0x8] sm:$0xff] }
 0x443   : > { %v2250_v32 = vpop.eup %2249 }
 0x444   : > { %v755_v33 = vpop.permute.xlu1 %754  ;;  %v1253_v34 = vsel %vm721_vm2, %v2250_v32, 0.0  ;;  %v872_v35 = vld [vmem:[#allocation3 + $0x8] sm:$0xff] }
 0x445   : > { %758 = vst.msk [vmem:[#allocation3 + $0x18] sm:$0xff] %vm721_vm2, %v755_v33  ;;  %1254 = vadd.xlane.f32.xlu0 %v1253_v34  ;;  %2068 = vmatpush3.msra.mxu1 %v872_v35  ;;  %v1661_v33 = vld [vmem:[%s3287_s9 + $0x10] sm:$0xff]  ;;  %v1662_v34 = vld [vmem:[%s3287_s9 + $0x18] sm:$0xff] }
 0x446   : > { %2070 = vmatmul.mubr.msk.f32.vlgmr.msra.gmra.mrb[10].mxu1 %vm721_vm2, %v2248_v29  ;;  %2077 = vmatprep.subr.mxu1 %v2578_v1  ;;  %v2115_v35 = vpack.c.bf16 %v1662_v34, %v1661_v33 }
 0x447   : > { %v2252_v36 = vpop.eup %2251  ;;  %2079 = vmatprep.mubr.msk.f32.mxu1 %vm2577_vm0, %v2578_v1 }
 0x448   : > { %v873_v37 = vld [vmem:[#allocation3 + $0x10] sm:$0xff]  ;;  %v1256_v38 = vsel %vm721_vm2, %v2252_v36, 0.0  ;;  %v2254_v44 = vpop.eup %2253 }
 0x449   : > { %2073 = vmatpush3.msra.mxu0 %v873_v37  ;;  %1257 = vadd.xlane.f32.xlu1 %v1256_v38  ;;  %v2256_v45 = vpop.eup %2255  ;;  %v1244_v50 = vmul.f32 %v2254_v44, %v1240_v49 }
 0x44a   : > { %2075 = vmatmul.mubr.msk.f32.vlgmr.msra.gmra.mrb[6].mxu0 %vm721_vm2, %v2250_v32  ;;  %2111 = vmatprep.subr.bf16.mxu0 %v2576_v0  ;;  %v2258_v46 = vpop.eup %2257  ;;  %v1245_v54 = vmul.f32 %v2256_v45, %v1241_v52  ;;  %v2112_v32 = vpack.c.bf16 %v1660_v31, %v1659_v30 }
 0x44b   : > { %2090 = vmatprep.mubr.msk.f32.mxu0 %vm2577_vm0, %v2578_v1  ;;  %v1246_v58 = vmul.f32 %v2258_v46, %v1242_v56  ;;  %v2260_v59 = vpop.eup %2259  ;;  %v1967_v56 = vld [vmem:[%s3290_s13] ss:$0 sm:$0xff] }
 0x44c   : > { %v874_v40 = vld [vmem:[#allocation3 + $0x18] sm:$0xff]  ;;  %v1243_v2 = vmul.f32 %v2260_v59, %v1239_v62  ;;  %2113 = vmatpush3.bf16.msra.mxu0 %v2112_v32 }
 0x44d   : > { %2078 = vmatpush3.msra.mxu1 %v874_v40  ;;  %1248 = vadd.xlane.f32.xlu1 %v1247_v41 }
 0x44e   : > { %2080 = vmatmul.mubr.msk.f32.vlgmr.msra.gmra.mrb[12].mxu1 %vm721_vm2, %v2252_v36  ;;  %2114 = vmatprep.subr.bf16.mxu0 %v2576_v0 }
 0x450   : > { %2116 = vmatpush3.bf16.msra.mxu0 %v2115_v35 }
 0x45b   : > { %1278 = vperm.xlu0 %2244, %v2254_v44  }
 0x45e   : > { %1283 = vperm.xlu1 %2243, %v2256_v45  }
 0x462   : > { %1288 = vperm.xlu1 %2243, %v2258_v46  }
 0x4a0   : > { %v3123_v1 = vpop.f32.mrb[4].mxu0 }
 0x4a1   : > { %v2066_v47 = vpop.f32.mrb[5].mxu0 }
 0x4ce   : > { %v1252_v51 = vpop.xlane.xlu1 %1251 }
 0x4cf   : > { %v1260_v53 = vadd.f32 %v1252_v51, %v1244_v50 }
 0x4d1   : > { %1264 = vst.msk [vmem:[#allocation5 + $0x8] sm:$0xff] %vm853_vm3, %v1260_v53 }
 0x4d2   : > { %v1255_v55 = vpop.xlane.xlu0 %1254 }
 0x4d3   : > { %v1261_v57 = vadd.f32 %v1255_v55, %v1245_v54 }
 0x4d5   : > { %1265 = vst.msk [vmem:[#allocation5 + $0x10] sm:$0xff] %vm853_vm3, %v1261_v57 }
 0x4d6   : > { %v1258_v60 = vpop.xlane.xlu1 %1257 }
 0x4d7   : > { %v1262_v61 = vadd.f32 %v1258_v60, %v1246_v58 }
 0x4d8   : > { %v1600_v63 = vld [vmem:[#allocation5 + $0x8] sm:$0xff] }
 0x4d9   : > { %1266 = vst.msk [vmem:[#allocation5 + $0x18] sm:$0xff] %vm853_vm3, %v1262_v61  ;;  %2261 = vrcp.f32 %v1600_v63 }
 0x4da   : > { %v1249_v3 = vpop.xlane.xlu1 %1248  ;;  %v1279_v13 = vpop.permute.xlu0 %1278 }
 0x4db   : > { %v1259_v4 = vadd.f32 %v1249_v3, %v1243_v2  ;;  %v1292_v15 = vmul.f32 %v1279_v13, %v1268_v12 }
 0x4dc   : > { %v1601_v5 = vld [vmem:[#allocation5 + $0x10] sm:$0xff] }
 0x4dd   : > { %1263 = vst.msk [vmem:[#allocation5] sm:$0xff] %vm853_vm3, %v1259_v4  ;;  %2263 = vrcp.f32 %v1601_v5 }
 0x4de   : > { %v1284_v14 = vpop.permute.xlu1 %1283 }
 0x4df   : > { %v1293_v20 = vmul.f32 %v1284_v14, %v1269_v16 }
 0x4e0   : > { %v1602_v6 = vld [vmem:[#allocation5 + $0x18] sm:$0xff] }
 0x4e1   : > { %2265 = vrcp.f32 %v1602_v6 }
 0x4e2   : > { %v1289_v22 = vpop.permute.xlu1 %1288 }
 0x4e3   : > { %v2262_v7 = vpop.eup %2261  ;;  %v1294_v26 = vmul.f32 %v1289_v22, %v1270_v21 }
 0x4e4   : > { %1622 = vperm.xlu0 %2244, %v2262_v7   ;;  %v1599_v8 = vld [vmem:[#allocation5] sm:$0xff] }
 0x4e5   : > { %2267 = vrcp.f32 %v1599_v8 }
 0x4e7   : > { %v2264_v9 = vpop.eup %2263 }
 0x4e8   : > { %1630 = vperm.xlu1 %2243, %v2264_v9  }
 0x4eb   : > { %v2266_v10 = vpop.eup %2265 }
 0x4ec   : > { %1638 = vperm.xlu0 %2244, %v2266_v10   ;;  %1273 = vperm.xlu1 %2243, %v2260_v59  }
 0x4ef   : > { %v2268_v11 = vpop.eup %2267 }
 0x4f0   : > { %1614 = vperm.xlu0 %2244, %v2268_v11  }
 0x519   : > { %v1437_v17 = vpop.f32.mrb[10].mxu1 }
 0x51a   : > { %v1588_v18 = vadd.f32 %v1437_v17, %v1292_v15  ;;  %v2071_v19 = vpop.f32.mrb[11].mxu1 }
 0x51c   : > { %1592 = vst.msk [vmem:[#allocation6 + $0x8] sm:$0xff] %vm721_vm2, %v1588_v18 }
 0x51d   : > { %v1510_v23 = vpop.f32.mrb[6].mxu0 }
 0x51e   : > { %v1589_v24 = vadd.f32 %v1510_v23, %v1293_v20  ;;  %v2076_v25 = vpop.f32.mrb[7].mxu0 }
 0x520   : > { %1593 = vst.msk [vmem:[#allocation6 + $0x10] sm:$0xff] %vm721_vm2, %v1589_v24 }
 0x521   : > { %v1583_v27 = vpop.f32.mrb[12].mxu1 }
 0x522   : > { %v1590_v28 = vadd.f32 %v1583_v27, %v1294_v26  ;;  %v2081_v29 = vpop.f32.mrb[13].mxu1 }
 0x523   : > { %v1619_v37 = vld [vmem:[#allocation6 + $0x8] sm:$0xff] }
 0x524   : > { %1594 = vst.msk [vmem:[#allocation6 + $0x18] sm:$0xff] %vm721_vm2, %v1590_v28 }
 0x527   : > { %v1627_v40 = vld [vmem:[#allocation6 + $0x10] sm:$0xff] }
 0x52b   : > { %v1635_v44 = vld [vmem:[#allocation6 + $0x18] sm:$0xff] }
 0x563   : > { %v1623_v36 = vpop.permute.xlu0 %1622 }
 0x564   : > { %v1625_v38 = vmul.f32 %v1623_v36, %v1619_v37 }
 0x566   : > { %1643 = vrot.lane.b32.xlu1 %v1625_v38, %s2584_s7 }
 0x567   : > { %v1631_v39 = vpop.permute.xlu1 %1630 }
 0x568   : > { %v1633_v41 = vmul.f32 %v1631_v39, %v1627_v40 }
 0x56a   : > { %1647 = vrot.lane.b32.xlu0 %v1633_v41, %s2585_s24 }
 0x56b   : > { %v1274_v0 = vpop.permute.xlu1 %1273  ;;  %v1639_v43 = vpop.permute.xlu0 %1638 }
 0x56c   : > { %v1291_v45 = vmul.f32 %v1274_v0, %v1267_v42  ;;  %v1641_v46 = vmul.f32 %v1639_v43, %v1635_v44 }
 0x56e   : > { %v1587_v47 = vadd.f32 %v3123_v1, %v1291_v45  ;;  %1651 = vrot.lane.b32.xlu1 %v1641_v46, %s2586_s12 }
 0x56f   : > { %v1615_v48 = vpop.permute.xlu0 %1614 }
 0x570   : > { %1591 = vst.msk [vmem:[#allocation6] sm:$0xff] %vm721_vm2, %v1587_v47 }
 0x577   : > { %v1611_v49 = vld [vmem:[#allocation6] sm:$0xff] }
 0x578   : > { %v1617_v51 = vmul.f32 %v1615_v48, %v1611_v49 }
 0x5d8   : > { %v1644_v50 = vpop.permute.xlu1 %1643 }
 0x5d9   : > { %v1654_v53 = vsel %vm721_vm2, %v1617_v51, %v1644_v50 }
 0x5dc   : > { %v1648_v52 = vpop.permute.xlu0 %1647 }
 0x5dd   : > { %v1656_v54 = vsel %vm1655_vm4, %v1654_v53, %v1648_v52 }
 0x5e0   : > { %v1652_v55 = vpop.permute.xlu1 %1651 }
 0x5e1   : > { %v1658_v1 = vsel %vm1657_vm5, %v1656_v54, %v1652_v55 }
 0x5e2   : > { %2091 = vmatmul.mubr.msk.f32.vlgmr.msra.gmra.mrb[8].mxu0 %vm562_vm1, %v1658_v1 }
 0x6b5   : > { %v1739_v57 = vpop.f32.mrb[8].mxu0 }
 0x6b6   : > { %v1740_v58 = vadd.f32 %v1967_v56, %v1739_v57  ;;  %v2092_v59 = vpop.f32.mrb[9].mxu0 }
 0x6b8   : > { %1743 = vst.msk [vmem:[%s545_s22] sm:$0xff] %vm562_vm1, %v1740_v58 }
 0x6b9   : > { %2484 = shalt.err (!%p2481_p11)
}
 0x6ba   : > { %s2485_s21 = scalar_lea.hbm %s3160_s16, 128  ;;  %s2489_s24 = scalar_lea.hbm %s3291_s26, 256 }
 0x6bb   : > { %p2486_p5 = scmp.ne.s32.totalorder %s3160_s16, %s2485_s21  ;;  %p2490_p0 = scmp.lt.u32.totalorder %s3160_s16, %s3291_s26 }
 0x6bc   : > { %p2491_p4 = scmp.lt.u32.totalorder %s2489_s24, %s2485_s21  ;;  %p2493_p13 = scmp.lt.u32.totalorder %s2485_s21, %s3160_s16 }
 0x6bd   : > { %p2487_p3 = pnand %p2486_p5, %p3292_p2 }
 0x6be   : > { %p2492_p10 = por %p2491_p4, %p2490_p0 }
 0x6bf   : > { %p2488_p6 = pneg %p2487_p3 }
 0x6c0   : > { %p2494_p1 = por %p2493_p13, %p2492_p10 }
 0x6c2   : > { %p2495_p12 = pnand %p2494_p1, %p2488_p6 }
 0x6c4   : > { %2498 = shalt.err (!%p2495_p12)
}
 0x6c5   : > { %2139 = dma.vmem_to_hbm [thread:$0]  (%p3292_p2), %s3162_s3, 128, %s3160_s16, %s1745_s29  }
 0x6c6 PF: > { %s3293_s23 = sld [smem:[#allocation25_spill]]  ;;  %s3294_s25 = sld [smem:[#allocation32_spill]] }
 0x6c7   : > { %s3295_s13 = sld [smem:[#allocation28_spill]] }
 0x6cc   : > { %s1771_s14 = sand.u32 1, %s3293_s23   ;;  %p3296_p8 = scmp.ne.s32.totalorder %s3294_s25, 0 }
 0x6cd   : > { %p3297_p9 = scmp.ge.s32.totalorder %s3295_s13, 2  ;;  %s1772_s22 = scalar_lea.sflag [#allocation9], %s1771_s14 }
 0x6cf   : > { %p2165_p7 = pnand %p3297_p9, %p3296_p8 }
 0x6d1   : > { %2540 = dma.done.wait (!%p2165_p7), %s1772_s22, 128  }
 0x6d2   : > { %2542 = vsyncadd (!%p2165_p7), %s1772_s22, 4294967168  ;;  %s32_s22 = sadd.s32 1, %s3295_s13   ;;  %s3298_s11 = sld [smem:[#allocation31_spill]] }
 0x6d3   : > { %p29_p11 = scmp.ge.s32.totalorder %s32_s22, 4   ;;  %s3299_s20 = sld [smem:[#allocation27_spill]] }
 0x6d4   : > { %s3300_s21 = sld [smem:[#allocation29_spill]]  ;;  %s3301_s17 = smov %s2549_s18 }
 0x6d5   : > { %s3302_s18 = smov %s2553_s19  ;;  %31 = sbr.rel (!%p29_p11) target bundleno = 17 (0x11), region = 162 }
 0x6d8   : > { %s3303_s19 = smov %s3298_s11 }
 0x6dc   :  { %1777 = vsyncpa [#allocation8], 1 }
 0x6dd   :  { %1779 = vsyncpa [#allocation8 + $0x1], 1 }
 0x6de   :  { %1780 = vsyncpa [#allocation11], 1 }
 0x6df   :  { %1782 = vsyncpa [#allocation11 + $0x1], 1 }
 0x6e0   :  { %1783 = vsyncpa [#allocation14], 1 }
 0x6e1   :  { %1784 = vsyncpa [#allocation17], 1 }
 0x6e2   :  { %1785 = vsyncpa [#allocation9], 1 }
 0x6e3   :  { %1787 = vsyncpa [#allocation9 + $0x1], 1 }

</bundles_post_ra>
